<compile_context>
chip_gen: v7x
topology: tpu7x:2x2x1
jax: 0.10.0
libtpu: 0.0.40
codegen_flags: <defaults>
</compile_context>

<pallas_src>
import functools

import jax
import jax.numpy as jnp
from jax import lax
from jax.experimental import pallas as pl
from jax.experimental.pallas import tpu as pltpu

BN_EPS = 1e-5
LTQ_EPS = 1e-3
CLIP_VAL = 2.0
LANE = 128
SUBLANE = 8
# Rows per M-tile.  512 x 128ch x 4B x (2 in-bufs + 2 out-bufs) ~ 1 MiB, far
# below the 64 MiB v7x / 128 MiB v5e-v6e VMEM, so the same tile works on all
# generations while still hitting ~85% of HBM roofline on memory-bound passes.
MAX_TM = 512

_SMEM = pl.BlockSpec(memory_space=pltpu.MemorySpace.SMEM)


def _round_up(x, m):
    return (x + m - 1) // m * m


def _m_tiling(m):
    tm = min(MAX_TM, _round_up(m, SUBLANE))
    return tm, _round_up(m, tm)


# --------------------------- Pallas kernels ---------------------------------

def _stage_1x1_kernel(x_ref, s_ref, b_ref, al_ref, b2_ref, w_ref, thre_ref,
                      sc_ref, y_ref, sum_ref, ssq_ref, *, n_val, m_real, tm):
    # fused: per-channel affine (BN) -> bias -> PReLU -> bias -> LTQ ->
    #        1x1 conv (matmul) -> partial BN statistics of the conv output.
    i = pl.program_id(0)

    @pl.when(i == 0)
    def _():
        sum_ref[...] = jnp.zeros_like(sum_ref)
        ssq_ref[...] = jnp.zeros_like(ssq_ref)

    x = x_ref[...]                                   # (TM, Cin)
    x = x * s_ref[...] + b_ref[...]                  # BN affine + LearnableBias
    x = jnp.where(x > 0.0, x, al_ref[...] * x)       # per-channel PReLU
    x = x + b2_ref[...]                              # LearnableBias #2
    x = x * sc_ref[0]                                # LTQ scale1
    cnt = jnp.zeros_like(x)
    for k in range(n_val):                           # staircase == count of
        cnt = cnt + (x > thre_ref[k]).astype(jnp.float32)  # thresholds exceeded
    h = cnt * sc_ref[1]                              # * interval * scale2

    y = jnp.dot(h, w_ref[...], preferred_element_type=jnp.float32)  # MXU
    y_ref[...] = y

    # per-channel BN partial sums; mask rows that are only M-padding
    rows = lax.broadcasted_iota(jnp.int32, (tm, 1), 0) + i * tm
    ym = jnp.where(rows < m_real, y, 0.0)
    sum_ref[...] += jnp.sum(ym, axis=0, keepdims=True)
    ssq_ref[...] += jnp.sum(ym * ym, axis=0, keepdims=True)


def _stage_dw_kernel(x_ref, s_ref, b_ref, al_ref, b2_ref, w_ref, thre_ref,
                     sc_ref, y_ref, sum_ref, ssq_ref, pad_ref,
                     *, n_val, stride, H, W):
    # fused: BN1 affine + bias + PReLU + bias + LTQ -> zero-halo in VMEM ->
    #        3x3 depthwise conv (stride folded in) -> partial BN2 statistics.
    n = pl.program_id(0)

    @pl.when(n == 0)
    def _():
        pad_ref[...] = jnp.zeros_like(pad_ref)       # halo border stays zero
        sum_ref[...] = jnp.zeros_like(sum_ref)
        ssq_ref[...] = jnp.zeros_like(ssq_ref)

    def pc(r):                                       # (1, C) -> (1, 1, C)
        return r[...].reshape(1, 1, -1)

    x = x_ref[0]                                     # (H, W, C)
    x = x * pc(s_ref) + pc(b_ref)
    x = jnp.where(x > 0.0, x, pc(al_ref) * x)
    x = x + pc(b2_ref)
    x = x * sc_ref[0]
    cnt = jnp.zeros_like(x)
    for k in range(n_val):
        cnt = cnt + (x > thre_ref[k]).astype(jnp.float32)
    h = cnt * sc_ref[1]

    pad_ref[1:H + 1, 1:W + 1, :] = h                 # interior of zero halo
    xp = pad_ref[...]                                # (H+2, W+2, C)
    w = w_ref[...]                                   # (3, 3, C)
    acc = jnp.zeros((H, W, xp.shape[-1]), jnp.float32)
    for kh in range(3):
        for kw in range(3):
            acc = acc + xp[kh:kh + H, kw:kw + W, :] * w[kh:kh + 1, kw:kw + 1, :]
    if stride > 1:                                   # strided conv: keep only
        acc = acc[::stride, ::stride, :]             # the needed outputs
    y_ref[0] = acc

    rsum = jnp.sum(acc, axis=0)                      # (Wo, C)
    rssq = jnp.sum(acc * acc, axis=0)
    sum_ref[...] += jnp.sum(rsum, axis=0, keepdims=True)
    ssq_ref[...] += jnp.sum(rssq, axis=0, keepdims=True)


def _bn_res_kernel(y_ref, s_ref, b_ref, res_ref, o_ref):
    o_ref[...] = y_ref[...] * s_ref[...] + b_ref[...] + res_ref[...]


def _bn_only_kernel(y_ref, s_ref, b_ref, o_ref):
    o_ref[...] = y_ref[...] * s_ref[...] + b_ref[...]


# --------------------------- kernel wrappers ---------------------------------

def stage_1x1(x2d, scale, shift, alpha, b2, w, thre, sc, *, n_val, m_real, tm):
    m_pad, cin = x2d.shape
    cout = w.shape[1]
    row_in = pl.BlockSpec((tm, cin), lambda i: (i, 0))
    ch_in = pl.BlockSpec((1, cin), lambda i: (0, 0))
    return pl.pallas_call(
        functools.partial(_stage_1x1_kernel, n_val=n_val, m_real=m_real, tm=tm),
        out_shape=(jax.ShapeDtypeStruct((m_pad, cout), jnp.float32),
                   jax.ShapeDtypeStruct((1, cout), jnp.float32),
                   jax.ShapeDtypeStruct((1, cout), jnp.float32)),
        grid=(m_pad // tm,),
        in_specs=[row_in, ch_in, ch_in, ch_in, ch_in,
                  pl.BlockSpec((cin, cout), lambda i: (0, 0)),
                  _SMEM, _SMEM],
        out_specs=(pl.BlockSpec((tm, cout), lambda i: (i, 0)),
                   pl.BlockSpec((1, cout), lambda i: (0, 0)),
                   pl.BlockSpec((1, cout), lambda i: (0, 0))),
        compiler_params=pltpu.CompilerParams(
            dimension_semantics=("arbitrary",)),   # stats carried across tiles
    )(x2d, scale, shift, alpha, b2, w, thre, sc)


def stage_dw(x_nhwc, scale, shift, alpha, b2, w33c, thre, sc, *, n_val, stride):
    N, H, W, C = x_nhwc.shape
    Ho = (H - 1) // stride + 1
    Wo = (W - 1) // stride + 1
    ch_in = pl.BlockSpec((1, C), lambda n: (0, 0))
    return pl.pallas_call(
        functools.partial(_stage_dw_kernel, n_val=n_val, stride=stride, H=H, W=W),
        out_shape=(jax.ShapeDtypeStruct((N, Ho, Wo, C), jnp.float32),
                   jax.ShapeDtypeStruct((1, C), jnp.float32),
                   jax.ShapeDtypeStruct((1, C), jnp.float32)),
        grid=(N,),
        in_specs=[pl.BlockSpec((1, H, W, C), lambda n: (n, 0, 0, 0)),
                  ch_in, ch_in, ch_in, ch_in,
                  pl.BlockSpec((3, 3, C), lambda n: (0, 0, 0)),
                  _SMEM, _SMEM],
        out_specs=(pl.BlockSpec((1, Ho, Wo, C), lambda n: (n, 0, 0, 0)),
                   pl.BlockSpec((1, C), lambda n: (0, 0)),
                   pl.BlockSpec((1, C), lambda n: (0, 0))),
        scratch_shapes=[pltpu.VMEM((H + 2, W + 2, C), jnp.float32)],
        compiler_params=pltpu.CompilerParams(
            dimension_semantics=("arbitrary",)),
    )(x_nhwc, scale, shift, alpha, b2, w33c, thre, sc)


def bn_final(y2d, scale, shift, res, *, tm):
    m_pad, c = y2d.shape
    row_spec = pl.BlockSpec((tm, c), lambda i: (i, 0))
    ch_spec = pl.BlockSpec((1, c), lambda i: (0, 0))
    cp = pltpu.CompilerParams(dimension_semantics=("parallel",))
    if res is None:   # no residual: don't DMA a zeros tensor through the kernel
        return pl.pallas_call(
            _bn_only_kernel,
            out_shape=jax.ShapeDtypeStruct((m_pad, c), jnp.float32),
            grid=(m_pad // tm,),
            in_specs=[row_spec, ch_spec, ch_spec],
            out_specs=row_spec,
            compiler_params=cp,
        )(y2d, scale, shift)
    return pl.pallas_call(
        _bn_res_kernel,
        out_shape=jax.ShapeDtypeStruct((m_pad, c), jnp.float32),
        grid=(m_pad // tm,),
        in_specs=[row_spec, ch_spec, ch_spec, row_spec],
        out_specs=row_spec,
        compiler_params=cp,
    )(y2d, scale, shift, res)


# --------------------------- parameter glue ---------------------------------

def quantize_weight(w, num_bits):
    # HardQuantizeConv weight fake-quantization (value-level; STE is identity fwd)
    gamma = (2 ** num_bits - 1) / 2 ** (num_bits - 1)
    sf = gamma * jnp.mean(jnp.abs(w), axis=(1, 2, 3), keepdims=True)
    sw = w / sf
    cw = jnp.clip(sw, -CLIP_VAL / 2, CLIP_VAL / 2)
    n = (2 ** num_bits - 1) / CLIP_VAL
    return sf * (jnp.round((cw + CLIP_VAL / 2) * n) / n - CLIP_VAL / 2)


def ltq_thresholds(a, start):
    a_pos = jnp.maximum(a, LTQ_EPS)
    pair = (a_pos[:-1] + a_pos[1:]) / 2
    return (start + a_pos[0] / 2
            + jnp.concatenate([jnp.zeros((1,), jnp.float32), jnp.cumsum(pair)]))


def init_params(key, inp, oup, mid, wt_bits, ac_bits):
    n_val = 2 ** ac_bits - 1
    interval = 2.0 / n_val
    k1, k2, k3 = jax.random.split(key, 3)

    def ltq_init():
        return dict(start=jnp.float32(0.0),
                    a=jnp.full((n_val,), interval, jnp.float32),
                    scale1=jnp.float32(1.0), scale2=jnp.float32(1.0))

    return dict(
        b11=jnp.zeros((inp,), jnp.float32), alpha1=jnp.full((inp,), 0.25, jnp.float32),
        b12=jnp.zeros((inp,), jnp.float32), ltq1=ltq_init(),
        w1=(jax.random.uniform(k1, (mid, inp, 1, 1), jnp.float32) - 0.5) * 0.001,
        b21=jnp.zeros((mid,), jnp.float32), alpha2=jnp.full((mid,), 0.25, jnp.float32),
        b22=jnp.zeros((mid,), jnp.float32), ltq2=ltq_init(),
        w2=(jax.random.uniform(k2, (mid, 1, 3, 3), jnp.float32) - 0.5) * 0.001,
        b31=jnp.zeros((mid,), jnp.float32), alpha3=jnp.full((mid,), 0.25, jnp.float32),
        b32=jnp.zeros((mid,), jnp.float32), ltq3=ltq_init(),
        w3=(jax.random.uniform(k3, (oup, mid, 1, 1), jnp.float32) - 0.5) * 0.001,
    )


# --------------------------- full forward (Pallas) ---------------------------

@functools.partial(jax.jit,
                   static_argnames=("inp", "oup", "mid", "stride",
                                    "wt_bits", "ac_bits"))
def bottleneck_forward(x_nchw, params, *, inp, oup, mid, stride, wt_bits, ac_bits):
    n_val = 2 ** ac_bits - 1
    interval = 2.0 / n_val
    N, C, H, W = x_nchw.shape
    assert C == inp

    # channels padded to a lane multiple so all kernel blocks are 128-lane dense
    cin = _round_up(inp, LANE)
    cmid = _round_up(mid, LANE)
    cout = _round_up(oup, LANE)

    def pad_c(v, c):                                  # (k,) -> (1, c)
        return jnp.pad(v[None, :].astype(jnp.float32), ((0, 0), (0, c - v.shape[0])))

    def ltq_args(p):
        thre = ltq_thresholds(p["a"], p["start"]).astype(jnp.float32)
        sc = jnp.stack([p["scale1"],
                        p["scale2"] * jnp.float32(interval)]).astype(jnp.float32)
        return thre, sc

    x = jnp.transpose(x_nchw, (0, 2, 3, 1)).astype(jnp.float32)   # NHWC
    M1 = N * H * W
    tm1, m1p = _m_tiling(M1)
    xf = x.reshape(M1, inp)
    xfp = jnp.pad(xf, ((0, m1p - M1), (0, cin - inp)))

    ones_c = jnp.ones((1, cin), jnp.float32)

    # ---- stage 1: bias11 -> prelu1 -> bias12 -> quan1 -> conv1(1x1) + BN1 stats
    thre1, sc1 = ltq_args(params["ltq1"])
    wq1 = quantize_weight(params["w1"], wt_bits)[:, :, 0, 0].T    # (inp, mid)
    wq1p = jnp.pad(wq1, ((0, cin - inp), (0, cmid - mid)))
    y1, s1sum, s1ssq = stage_1x1(
        xfp, ones_c, pad_c(params["b11"], cin), pad_c(params["alpha1"], cin),
        pad_c(params["b12"], cin), wq1p, thre1, sc1,
        n_val=n_val, m_real=M1, tm=tm1)
    mean1 = s1sum / M1
    var1 = s1ssq / M1 - mean1 * mean1
    s1 = 1.0 / jnp.sqrt(var1 + BN_EPS)
    sh1 = -mean1 * s1

    # ---- stage 2: BN1 -> bias21 -> prelu2 -> bias22 -> quan2 -> dw3x3(stride) + BN2 stats
    thre2, sc2 = ltq_args(params["ltq2"])
    wq2 = quantize_weight(params["w2"], wt_bits)                  # (mid, 1, 3, 3)
    w33c = jnp.transpose(wq2[:, 0, :, :], (1, 2, 0))              # (3, 3, mid)
    w33cp = jnp.pad(w33c, ((0, 0), (0, 0), (0, cmid - mid)))
    y1_nhwc = y1[:M1].reshape(N, H, W, cmid)
    d, s2sum, s2ssq = stage_dw(
        y1_nhwc, s1, sh1 + pad_c(params["b21"], cmid),
        pad_c(params["alpha2"], cmid), pad_c(params["b22"], cmid),
        w33cp, thre2, sc2, n_val=n_val, stride=stride)
    Ho, Wo = d.shape[1], d.shape[2]
    M2 = N * Ho * Wo
    mean2 = s2sum / M2
    var2 = s2ssq / M2 - mean2 * mean2
    s2 = 1.0 / jnp.sqrt(var2 + BN_EPS)
    sh2 = -mean2 * s2

    # ---- stage 3: BN2 -> bias31 -> prelu3 -> bias32 -> quan3 -> conv3(1x1) + BN3 stats
    thre3, sc3 = ltq_args(params["ltq3"])
    wq3 = quantize_weight(params["w3"], wt_bits)[:, :, 0, 0].T    # (mid, oup)
    wq3p = jnp.pad(wq3, ((0, cmid - mid), (0, cout - oup)))
    tm3, m3p = _m_tiling(M2)
    y2 = jnp.pad(d.reshape(M2, cmid), ((0, m3p - M2), (0, 0)))
    y3, s3sum, s3ssq = stage_1x1(
        y2, s2, sh2 + pad_c(params["b31"], cmid),
        pad_c(params["alpha3"], cmid), pad_c(params["b32"], cmid),
        wq3p, thre3, sc3, n_val=n_val, m_real=M2, tm=tm3)
    mean3 = s3sum / M2
    var3 = s3ssq / M2 - mean3 * mean3
    s3 = 1.0 / jnp.sqrt(var3 + BN_EPS)
    sh3 = -mean3 * s3

    # ---- BN3 affine (+ residual) epilogue
    if inp == oup and stride == 1:
        res = jnp.pad(xf, ((0, m3p - M2), (0, cout - oup)))       # M2 == M1 here
        out2d = bn_final(y3, s3, sh3, res, tm=tm3)
    else:
        out2d = bn_final(y3, s3, sh3, None, tm=tm3)

    out = out2d[:M2, :oup].reshape(N, Ho, Wo, oup)
    return jnp.transpose(out, (0, 3, 1, 2))                       # back to NCHW


# --------------------------- pure-JAX reference (NCHW) -----------------------

def reference_forward(x, params, *, inp, oup, mid, stride, wt_bits, ac_bits):
    n_val = 2 ** ac_bits - 1
    interval = 2.0 / n_val

    def lbias(t, b): return t + b[None, :, None, None]

    def prelu(t, a): return jnp.where(t > 0, t, a[None, :, None, None] * t)

    def bn(t):
        m = jnp.mean(t, axis=(0, 2, 3), keepdims=True)
        v = jnp.mean((t - m) ** 2, axis=(0, 2, 3), keepdims=True)
        return (t - m) / jnp.sqrt(v + BN_EPS)

    def ltq(t, p):
        t = t * p["scale1"]
        a_pos = jnp.maximum(p["a"], LTQ_EPS)
        thre = p["start"] + a_pos[0] / 2
        out = jnp.zeros_like(t)
        step = 0.0
        for i in range(n_val):
            step = step + interval
            if i > 0:
                thre = thre + a_pos[i - 1] / 2 + a_pos[i] / 2
            out = jnp.where(t > thre, step, out)
        return out * p["scale2"]

    def hqconv(t, w, s, pad, groups):
        wq = quantize_weight(w, wt_bits)
        return lax.conv_general_dilated(t, wq, (s, s), ((pad, pad), (pad, pad)),
                                        feature_group_count=groups,
                                        dimension_numbers=("NCHW", "OIHW", "NCHW"))

    out = lbias(x, params["b11"]); out = prelu(out, params["alpha1"])
    out = lbias(out, params["b12"]); out = ltq(out, params["ltq1"])
    out = hqconv(out, params["w1"], 1, 0, 1); out = bn(out)
    out = lbias(out, params["b21"]); out = prelu(out, params["alpha2"])
    out = lbias(out, params["b22"]); out = ltq(out, params["ltq2"])
    out = hqconv(out, params["w2"], stride, 1, mid); out = bn(out)
    out = lbias(out, params["b31"]); out = prelu(out, params["alpha3"])
    out = lbias(out, params["b32"]); out = ltq(out, params["ltq3"])
    out = hqconv(out, params["w3"], 1, 0, 1); out = bn(out)
    if inp == oup and stride == 1:
        out = out + x
    return out


# --------------------------- main --------------------------------------------

if __name__ == "__main__":
    INP, OUP, MID = 8, 8, 16
    STRIDE = 1
    WT_BITS, AC_BITS = 4, 4
    N, H, W = 2, 8, 8

    key = jax.random.PRNGKey(0)
    kx, kp = jax.random.split(key)
    x = jax.random.normal(kx, (N, INP, H, W), jnp.float32)
    params = init_params(kp, INP, OUP, MID, WT_BITS, AC_BITS)

    out = bottleneck_forward(x, params, inp=INP, oup=OUP, mid=MID,
                             stride=STRIDE, wt_bits=WT_BITS, ac_bits=AC_BITS)
    out = jax.block_until_ready(out)

    ref = jax.block_until_ready(
        reference_forward(x, params, inp=INP, oup=OUP, mid=MID,
                          stride=STRIDE, wt_bits=WT_BITS, ac_bits=AC_BITS))

    assert out.shape == ref.shape == (N, OUP, H, W)
    assert bool(jnp.isfinite(out).all())
    diff = jnp.abs(out - ref)
    # The LTQ staircase can flip a few elements on ~1e-6 numerical differences in
    # the conv/BN path, so use a lenient aggregate check rather than strict allclose.
    assert float(jnp.mean(diff)) < 2e-2
    assert float(jnp.mean((diff > 0.25).astype(jnp.float32))) < 0.02

    print("KERNEL_OK")
</pallas_src>

<mosaic_0001>
module attributes {stable_mosaic.version = 11 : i64} {
  func.func @_stage_1x1_kernel(%arg0: i32, %arg1: memref<128x128xf32, #tpu.memory_space<vmem>>, %arg2: memref<1x128xf32, #tpu.memory_space<vmem>>, %arg3: memref<1x128xf32, #tpu.memory_space<vmem>>, %arg4: memref<1x128xf32, #tpu.memory_space<vmem>>, %arg5: memref<1x128xf32, #tpu.memory_space<vmem>>, %arg6: memref<128x128xf32, #tpu.memory_space<vmem>>, %arg7: memref<15xf32, #tpu.memory_space<smem>>, %arg8: memref<2xf32, #tpu.memory_space<smem>>, %arg9: memref<128x128xf32, #tpu.memory_space<vmem>>, %arg10: memref<1x128xf32, #tpu.memory_space<vmem>>, %arg11: memref<1x128xf32, #tpu.memory_space<vmem>>) attributes {dimension_semantics = [#tpu.dimension_semantics<arbitrary>], iteration_bounds = array<i64: 1>, scalar_prefetch = 0 : i64, scratch_operands = 0 : i64, tpu.core_type = #tpu.core_type<tc>, window_params = [{transform_indices = @transform_0, window_bounds = array<i64: 128, 128>}, {pipeline_mode = #tpu.pipeline_mode<synchronous>, transform_indices = @transform_1, window_bounds = array<i64: 1, 128>}, {pipeline_mode = #tpu.pipeline_mode<synchronous>, transform_indices = @transform_2, window_bounds = array<i64: 1, 128>}, {pipeline_mode = #tpu.pipeline_mode<synchronous>, transform_indices = @transform_3, window_bounds = array<i64: 1, 128>}, {pipeline_mode = #tpu.pipeline_mode<synchronous>, transform_indices = @transform_4, window_bounds = array<i64: 1, 128>}, {pipeline_mode = #tpu.pipeline_mode<synchronous>, transform_indices = @transform_5, window_bounds = array<i64: 128, 128>}, {transform_indices = @transform_6, window_bounds = array<i64: 15>}, {transform_indices = @transform_7, window_bounds = array<i64: 2>}, {transform_indices = @transform_8, window_bounds = array<i64: 128, 128>}, {pipeline_mode = #tpu.pipeline_mode<synchronous>, transform_indices = @transform_9, window_bounds = array<i64: 1, 128>}, {pipeline_mode = #tpu.pipeline_mode<synchronous>, transform_indices = @transform_10, window_bounds = array<i64: 1, 128>}]} {
    %c0_i32 = arith.constant 0 : i32
    %0 = arith.cmpi eq, %arg0, %c0_i32 : i32
    %1 = arith.extui %0 : i1 to i32
    %c0_i32_0 = arith.constant 0 : i32
    %2 = arith.cmpi ne, %1, %c0_i32_0 : i32
    scf.if %2 {
      %cst_31 = arith.constant 0.000000e+00 : f32
      %140 = vector.broadcast %cst_31 : f32 to vector<1x128xf32>
      %c0_32 = arith.constant 0 : index
      %c0_33 = arith.constant 0 : index
      %141 = vector.load %arg10[%c0_32, %c0_33] : memref<1x128xf32, #tpu.memory_space<vmem>>, vector<1x128xf32>
      tpu.vector_store %arg10[%c0_32, %c0_33], %140 {strides = array<i32>} : memref<1x128xf32, #tpu.memory_space<vmem>>, vector<1x128xf32>,
      %cst_34 = arith.constant 0.000000e+00 : f32
      %142 = vector.broadcast %cst_34 : f32 to vector<1x128xf32>
      %c0_35 = arith.constant 0 : index
      %c0_36 = arith.constant 0 : index
      %143 = vector.load %arg11[%c0_35, %c0_36] : memref<1x128xf32, #tpu.memory_space<vmem>>, vector<1x128xf32>
      tpu.vector_store %arg11[%c0_35, %c0_36], %142 {strides = array<i32>} : memref<1x128xf32, #tpu.memory_space<vmem>>, vector<1x128xf32>,
    } else {
    }
    %c0 = arith.constant 0 : index
    %c0_1 = arith.constant 0 : index
    %3 = vector.load %arg1[%c0, %c0_1] : memref<128x128xf32, #tpu.memory_space<vmem>>, vector<128x128xf32>
    %c0_2 = arith.constant 0 : index
    %c0_3 = arith.constant 0 : index
    %4 = vector.load %arg2[%c0_2, %c0_3] : memref<1x128xf32, #tpu.memory_space<vmem>>, vector<1x128xf32>
    %5 = vector.broadcast %4 : vector<1x128xf32> to vector<128x128xf32>
    %6 = arith.mulf %3, %5 : vector<128x128xf32>
    %c0_4 = arith.constant 0 : index
    %c0_5 = arith.constant 0 : index
    %7 = vector.load %arg3[%c0_4, %c0_5] : memref<1x128xf32, #tpu.memory_space<vmem>>, vector<1x128xf32>
    %8 = vector.broadcast %7 : vector<1x128xf32> to vector<128x128xf32>
    %9 = arith.addf %6, %8 : vector<128x128xf32>
    %cst = arith.constant 0.000000e+00 : f32
    %10 = vector.broadcast %cst : f32 to vector<128x128xf32>
    %11 = arith.cmpf ogt, %9, %10 : vector<128x128xf32>
    %c0_6 = arith.constant 0 : index
    %c0_7 = arith.constant 0 : index
    %12 = vector.load %arg4[%c0_6, %c0_7] : memref<1x128xf32, #tpu.memory_space<vmem>>, vector<1x128xf32>
    %13 = vector.broadcast %12 : vector<1x128xf32> to vector<128x128xf32>
    %14 = arith.mulf %13, %9 : vector<128x128xf32>
    %15 = arith.select %11, %9, %14 : vector<128x128xi1>, vector<128x128xf32>
    %c0_8 = arith.constant 0 : index
    %c0_9 = arith.constant 0 : index
    %16 = vector.load %arg5[%c0_8, %c0_9] : memref<1x128xf32, #tpu.memory_space<vmem>>, vector<1x128xf32>
    %17 = vector.broadcast %16 : vector<1x128xf32> to vector<128x128xf32>
    %18 = arith.addf %15, %17 : vector<128x128xf32>
    %c0_10 = arith.constant 0 : index
    %19 = memref.load %arg8[%c0_10] : memref<2xf32, #tpu.memory_space<smem>>
    %20 = vector.broadcast %19 : f32 to vector<128x128xf32>
    %21 = arith.mulf %18, %20 : vector<128x128xf32>
    %cst_11 = arith.constant 0.000000e+00 : f32
    %22 = vector.broadcast %cst_11 : f32 to vector<128x128xf32>
    %c0_12 = arith.constant 0 : index
    %23 = memref.load %arg7[%c0_12] : memref<15xf32, #tpu.memory_space<smem>>
    %24 = vector.broadcast %23 : f32 to vector<128x128xf32>
    %25 = arith.cmpf ogt, %21, %24 : vector<128x128xf32>
    %26 = arith.extui %25 : vector<128x128xi1> to vector<128x128xi32>
    %27 = arith.sitofp %26 : vector<128x128xi32> to vector<128x128xf32>
    %28 = arith.addf %22, %27 : vector<128x128xf32>
    %c1 = arith.constant 1 : index
    %29 = memref.load %arg7[%c1] : memref<15xf32, #tpu.memory_space<smem>>
    %30 = vector.broadcast %29 : f32 to vector<128x128xf32>
    %31 = arith.cmpf ogt, %21, %30 : vector<128x128xf32>
    %32 = arith.extui %31 : vector<128x128xi1> to vector<128x128xi32>
    %33 = arith.sitofp %32 : vector<128x128xi32> to vector<128x128xf32>
    %34 = arith.addf %28, %33 : vector<128x128xf32>
    %c2 = arith.constant 2 : index
    %35 = memref.load %arg7[%c2] : memref<15xf32, #tpu.memory_space<smem>>
    %36 = vector.broadcast %35 : f32 to vector<128x128xf32>
    %37 = arith.cmpf ogt, %21, %36 : vector<128x128xf32>
    %38 = arith.extui %37 : vector<128x128xi1> to vector<128x128xi32>
    %39 = arith.sitofp %38 : vector<128x128xi32> to vector<128x128xf32>
    %40 = arith.addf %34, %39 : vector<128x128xf32>
    %c3 = arith.constant 3 : index
    %41 = memref.load %arg7[%c3] : memref<15xf32, #tpu.memory_space<smem>>
    %42 = vector.broadcast %41 : f32 to vector<128x128xf32>
    %43 = arith.cmpf ogt, %21, %42 : vector<128x128xf32>
    %44 = arith.extui %43 : vector<128x128xi1> to vector<128x128xi32>
    %45 = arith.sitofp %44 : vector<128x128xi32> to vector<128x128xf32>
    %46 = arith.addf %40, %45 : vector<128x128xf32>
    %c4 = arith.constant 4 : index
    %47 = memref.load %arg7[%c4] : memref<15xf32, #tpu.memory_space<smem>>
    %48 = vector.broadcast %47 : f32 to vector<128x128xf32>
    %49 = arith.cmpf ogt, %21, %48 : vector<128x128xf32>
    %50 = arith.extui %49 : vector<128x128xi1> to vector<128x128xi32>
    %51 = arith.sitofp %50 : vector<128x128xi32> to vector<128x128xf32>
    %52 = arith.addf %46, %51 : vector<128x128xf32>
    %c5 = arith.constant 5 : index
    %53 = memref.load %arg7[%c5] : memref<15xf32, #tpu.memory_space<smem>>
    %54 = vector.broadcast %53 : f32 to vector<128x128xf32>
    %55 = arith.cmpf ogt, %21, %54 : vector<128x128xf32>
    %56 = arith.extui %55 : vector<128x128xi1> to vector<128x128xi32>
    %57 = arith.sitofp %56 : vector<128x128xi32> to vector<128x128xf32>
    %58 = arith.addf %52, %57 : vector<128x128xf32>
    %c6 = arith.constant 6 : index
    %59 = memref.load %arg7[%c6] : memref<15xf32, #tpu.memory_space<smem>>
    %60 = vector.broadcast %59 : f32 to vector<128x128xf32>
    %61 = arith.cmpf ogt, %21, %60 : vector<128x128xf32>
    %62 = arith.extui %61 : vector<128x128xi1> to vector<128x128xi32>
    %63 = arith.sitofp %62 : vector<128x128xi32> to vector<128x128xf32>
    %64 = arith.addf %58, %63 : vector<128x128xf32>
    %c7 = arith.constant 7 : index
    %65 = memref.load %arg7[%c7] : memref<15xf32, #tpu.memory_space<smem>>
    %66 = vector.broadcast %65 : f32 to vector<128x128xf32>
    %67 = arith.cmpf ogt, %21, %66 : vector<128x128xf32>
    %68 = arith.extui %67 : vector<128x128xi1> to vector<128x128xi32>
    %69 = arith.sitofp %68 : vector<128x128xi32> to vector<128x128xf32>
    %70 = arith.addf %64, %69 : vector<128x128xf32>
    %c8 = arith.constant 8 : index
    %71 = memref.load %arg7[%c8] : memref<15xf32, #tpu.memory_space<smem>>
    %72 = vector.broadcast %71 : f32 to vector<128x128xf32>
    %73 = arith.cmpf ogt, %21, %72 : vector<128x128xf32>
    %74 = arith.extui %73 : vector<128x128xi1> to vector<128x128xi32>
    %75 = arith.sitofp %74 : vector<128x128xi32> to vector<128x128xf32>
    %76 = arith.addf %70, %75 : vector<128x128xf32>
    %c9 = arith.constant 9 : index
    %77 = memref.load %arg7[%c9] : memref<15xf32, #tpu.memory_space<smem>>
    %78 = vector.broadcast %77 : f32 to vector<128x128xf32>
    %79 = arith.cmpf ogt, %21, %78 : vector<128x128xf32>
    %80 = arith.extui %79 : vector<128x128xi1> to vector<128x128xi32>
    %81 = arith.sitofp %80 : vector<128x128xi32> to vector<128x128xf32>
    %82 = arith.addf %76, %81 : vector<128x128xf32>
    %c10 = arith.constant 10 : index
    %83 = memref.load %arg7[%c10] : memref<15xf32, #tpu.memory_space<smem>>
    %84 = vector.broadcast %83 : f32 to vector<128x128xf32>
    %85 = arith.cmpf ogt, %21, %84 : vector<128x128xf32>
    %86 = arith.extui %85 : vector<128x128xi1> to vector<128x128xi32>
    %87 = arith.sitofp %86 : vector<128x128xi32> to vector<128x128xf32>
    %88 = arith.addf %82, %87 : vector<128x128xf32>
    %c11 = arith.constant 11 : index
    %89 = memref.load %arg7[%c11] : memref<15xf32, #tpu.memory_space<smem>>
    %90 = vector.broadcast %89 : f32 to vector<128x128xf32>
    %91 = arith.cmpf ogt, %21, %90 : vector<128x128xf32>
    %92 = arith.extui %91 : vector<128x128xi1> to vector<128x128xi32>
    %93 = arith.sitofp %92 : vector<128x128xi32> to vector<128x128xf32>
    %94 = arith.addf %88, %93 : vector<128x128xf32>
    %c12 = arith.constant 12 : index
    %95 = memref.load %arg7[%c12] : memref<15xf32, #tpu.memory_space<smem>>
    %96 = vector.broadcast %95 : f32 to vector<128x128xf32>
    %97 = arith.cmpf ogt, %21, %96 : vector<128x128xf32>
    %98 = arith.extui %97 : vector<128x128xi1> to vector<128x128xi32>
    %99 = arith.sitofp %98 : vector<128x128xi32> to vector<128x128xf32>
    %100 = arith.addf %94, %99 : vector<128x128xf32>
    %c13 = arith.constant 13 : index
    %101 = memref.load %arg7[%c13] : memref<15xf32, #tpu.memory_space<smem>>
    %102 = vector.broadcast %101 : f32 to vector<128x128xf32>
    %103 = arith.cmpf ogt, %21, %102 : vector<128x128xf32>
    %104 = arith.extui %103 : vector<128x128xi1> to vector<128x128xi32>
    %105 = arith.sitofp %104 : vector<128x128xi32> to vector<128x128xf32>
    %106 = arith.addf %100, %105 : vector<128x128xf32>
    %c14 = arith.constant 14 : index
    %107 = memref.load %arg7[%c14] : memref<15xf32, #tpu.memory_space<smem>>
    %108 = vector.broadcast %107 : f32 to vector<128x128xf32>
    %109 = arith.cmpf ogt, %21, %108 : vector<128x128xf32>
    %110 = arith.extui %109 : vector<128x128xi1> to vector<128x128xi32>
    %111 = arith.sitofp %110 : vector<128x128xi32> to vector<128x128xf32>
    %112 = arith.addf %106, %111 : vector<128x128xf32>
    %c1_13 = arith.constant 1 : index
    %113 = memref.load %arg8[%c1_13] : memref<2xf32, #tpu.memory_space<smem>>
    %114 = vector.broadcast %113 : f32 to vector<128x128xf32>
    %115 = arith.mulf %112, %114 : vector<128x128xf32>
    %c0_14 = arith.constant 0 : index
    %c0_15 = arith.constant 0 : index
    %116 = vector.load %arg6[%c0_14, %c0_15] : memref<128x128xf32, #tpu.memory_space<vmem>>, vector<128x128xf32>
    %cst_16 = arith.constant dense<0.000000e+00> : vector<128x128xf32>
    %117 = tpu.matmul %115, %116, %cst_16 {dimension_numbers = #tpu.dot_dimension_numbers<[1], [0], [0], [1], [0, 0, 1, 1], [], []>} : vector<128x128xf32>, vector<128x128xf32>, vector<128x128xf32> -> vector<128x128xf32>
    %c0_17 = arith.constant 0 : index
    %c0_18 = arith.constant 0 : index
    %118 = vector.load %arg9[%c0_17, %c0_18] : memref<128x128xf32, #tpu.memory_space<vmem>>, vector<128x128xf32>
    tpu.vector_store %arg9[%c0_17, %c0_18], %117 {strides = array<i32>} : memref<128x128xf32, #tpu.memory_space<vmem>>, vector<128x128xf32>,
    %119 = tpu.iota {dimensions = array<i32: 0>} : vector<128x1xi32>
    %c128_i32 = arith.constant 128 : i32
    %120 = arith.muli %arg0, %c128_i32 : i32
    %121 = vector.broadcast %120 : i32 to vector<128x1xi32>
    %122 = arith.addi %119, %121 : vector<128x1xi32>
    %c128_i32_19 = arith.constant 128 : i32
    %123 = vector.broadcast %c128_i32_19 : i32 to vector<128x1xi32>
    %124 = arith.cmpi slt, %122, %123 : vector<128x1xi32>
    %cst_20 = arith.constant 0.000000e+00 : f32
    %125 = vector.shape_cast %124 : vector<128x1xi1> to vector<128x1xi1>
    %126 = vector.broadcast %125 : vector<128x1xi1> to vector<128x128xi1>
    %127 = vector.broadcast %cst_20 : f32 to vector<128x128xf32>
    %128 = arith.select %126, %117, %127 : vector<128x128xi1>, vector<128x128xf32>
    %c0_21 = arith.constant 0 : index
    %c0_22 = arith.constant 0 : index
    %129 = vector.load %arg10[%c0_21, %c0_22] : memref<1x128xf32, #tpu.memory_space<vmem>>, vector<1x128xf32>
    %cst_23 = arith.constant dense<0.000000e+00> : vector<128xf32>
    %130 = vector.multi_reduction <add>, %128, %cst_23 [0] : vector<128x128xf32> to vector<128xf32>
    %131 = vector.shape_cast %130 : vector<128xf32> to vector<1x128xf32>
    %132 = arith.addf %129, %131 : vector<1x128xf32>
    %c0_24 = arith.constant 0 : index
    %c0_25 = arith.constant 0 : index
    %133 = vector.load %arg10[%c0_24, %c0_25] : memref<1x128xf32, #tpu.memory_space<vmem>>, vector<1x128xf32>
    tpu.vector_store %arg10[%c0_24, %c0_25], %132 {strides = array<i32>} : memref<1x128xf32, #tpu.memory_space<vmem>>, vector<1x128xf32>,
    %c0_26 = arith.constant 0 : index
    %c0_27 = arith.constant 0 : index
    %134 = vector.load %arg11[%c0_26, %c0_27] : memref<1x128xf32, #tpu.memory_space<vmem>>, vector<1x128xf32>
    %135 = arith.mulf %128, %128 : vector<128x128xf32>
    %cst_28 = arith.constant dense<0.000000e+00> : vector<128xf32>
    %136 = vector.multi_reduction <add>, %135, %cst_28 [0] : vector<128x128xf32> to vector<128xf32>
    %137 = vector.shape_cast %136 : vector<128xf32> to vector<1x128xf32>
    %138 = arith.addf %134, %137 : vector<1x128xf32>
    %c0_29 = arith.constant 0 : index
    %c0_30 = arith.constant 0 : index
    %139 = vector.load %arg11[%c0_29, %c0_30] : memref<1x128xf32, #tpu.memory_space<vmem>>, vector<1x128xf32>
    tpu.vector_store %arg11[%c0_29, %c0_30], %138 {strides = array<i32>} : memref<1x128xf32, #tpu.memory_space<vmem>>, vector<1x128xf32>,
    return
  }
  func.func @transform_0(%arg0: i32) -> (i32, i32) {
    %c0_i32 = arith.constant 0 : i32
    %c0_i32_0 = arith.constant 0 : i32
    return %arg0, %c0_i32 : i32, i32
  }
  func.func @transform_1(%arg0: i32) -> (i32, i32) {
    %c0_i32 = arith.constant 0 : i32
    %c0_i32_0 = arith.constant 0 : i32
    %c0_i32_1 = arith.constant 0 : i32
    return %c0_i32, %c0_i32_0 : i32, i32
  }
  func.func @transform_2(%arg0: i32) -> (i32, i32) {
    %c0_i32 = arith.constant 0 : i32
    %c0_i32_0 = arith.constant 0 : i32
    %c0_i32_1 = arith.constant 0 : i32
    return %c0_i32, %c0_i32_0 : i32, i32
  }
  func.func @transform_3(%arg0: i32) -> (i32, i32) {
    %c0_i32 = arith.constant 0 : i32
    %c0_i32_0 = arith.constant 0 : i32
    %c0_i32_1 = arith.constant 0 : i32
    return %c0_i32, %c0_i32_0 : i32, i32
  }
  func.func @transform_4(%arg0: i32) -> (i32, i32) {
    %c0_i32 = arith.constant 0 : i32
    %c0_i32_0 = arith.constant 0 : i32
    %c0_i32_1 = arith.constant 0 : i32
    return %c0_i32, %c0_i32_0 : i32, i32
  }
  func.func @transform_5(%arg0: i32) -> (i32, i32) {
    %c0_i32 = arith.constant 0 : i32
    %c0_i32_0 = arith.constant 0 : i32
    %c0_i32_1 = arith.constant 0 : i32
    return %c0_i32, %c0_i32_0 : i32, i32
  }
  func.func @transform_6(%arg0: i32) -> i32 {
    %c0_i32 = arith.constant 0 : i32
    %c0_i32_0 = arith.constant 0 : i32
    return %c0_i32 : i32
  }
  func.func @transform_7(%arg0: i32) -> i32 {
    %c0_i32 = arith.constant 0 : i32
    %c0_i32_0 = arith.constant 0 : i32
    return %c0_i32 : i32
  }
  func.func @transform_8(%arg0: i32) -> (i32, i32) {
    %c0_i32 = arith.constant 0 : i32
    %c0_i32_0 = arith.constant 0 : i32
    return %arg0, %c0_i32 : i32, i32
  }
  func.func @transform_9(%arg0: i32) -> (i32, i32) {
    %c0_i32 = arith.constant 0 : i32
    %c0_i32_0 = arith.constant 0 : i32
    %c0_i32_1 = arith.constant 0 : i32
    return %c0_i32, %c0_i32_0 : i32, i32
  }
  func.func @transform_10(%arg0: i32) -> (i32, i32) {
    %c0_i32 = arith.constant 0 : i32
    %c0_i32_0 = arith.constant 0 : i32
    %c0_i32_1 = arith.constant 0 : i32
    return %c0_i32, %c0_i32_0 : i32, i32
  }
}

module attributes {stable_mosaic.version = 11 : i64} {
  func.func @_stage_dw_kernel(%arg0: i32, %arg1: memref<1x8x8x128xf32, #tpu.memory_space<vmem>>, %arg2: memref<1x128xf32, #tpu.memory_space<vmem>>, %arg3: memref<1x128xf32, #tpu.memory_space<vmem>>, %arg4: memref<1x128xf32, #tpu.memory_space<vmem>>, %arg5: memref<1x128xf32, #tpu.memory_space<vmem>>, %arg6: memref<3x3x128xf32, #tpu.memory_space<vmem>>, %arg7: memref<15xf32, #tpu.memory_space<smem>>, %arg8: memref<2xf32, #tpu.memory_space<smem>>, %arg9: memref<1x8x8x128xf32, #tpu.memory_space<vmem>>, %arg10: memref<1x128xf32, #tpu.memory_space<vmem>>, %arg11: memref<1x128xf32, #tpu.memory_space<vmem>>, %arg12: memref<10x10x128xf32, #tpu.memory_space<vmem>>) attributes {dimension_semantics = [#tpu.dimension_semantics<arbitrary>], iteration_bounds = array<i64: 2>, scalar_prefetch = 0 : i64, scratch_operands = 1 : i64, tpu.core_type = #tpu.core_type<tc>, window_params = [{transform_indices = @transform_0, window_bounds = array<i64: 1, 8, 8, 128>}, {pipeline_mode = #tpu.pipeline_mode<synchronous>, transform_indices = @transform_1, window_bounds = array<i64: 1, 128>}, {pipeline_mode = #tpu.pipeline_mode<synchronous>, transform_indices = @transform_2, window_bounds = array<i64: 1, 128>}, {pipeline_mode = #tpu.pipeline_mode<synchronous>, transform_indices = @transform_3, window_bounds = array<i64: 1, 128>}, {pipeline_mode = #tpu.pipeline_mode<synchronous>, transform_indices = @transform_4, window_bounds = array<i64: 1, 128>}, {pipeline_mode = #tpu.pipeline_mode<synchronous>, transform_indices = @transform_5, window_bounds = array<i64: 3, 3, 128>}, {transform_indices = @transform_6, window_bounds = array<i64: 15>}, {transform_indices = @transform_7, window_bounds = array<i64: 2>}, {transform_indices = @transform_8, window_bounds = array<i64: 1, 8, 8, 128>}, {pipeline_mode = #tpu.pipeline_mode<synchronous>, transform_indices = @transform_9, window_bounds = array<i64: 1, 128>}, {pipeline_mode = #tpu.pipeline_mode<synchronous>, transform_indices = @transform_10, window_bounds = array<i64: 1, 128>}]} {
    %c0_i32 = arith.constant 0 : i32
    %0 = arith.cmpi eq, %arg0, %c0_i32 : i32
    %1 = arith.extui %0 : i1 to i32
    %c0_i32_0 = arith.constant 0 : i32
    %2 = arith.cmpi ne, %1, %c0_i32_0 : i32
    scf.if %2 {
      %cst_42 = arith.constant 0.000000e+00 : f32
      %186 = vector.broadcast %cst_42 : f32 to vector<10x10x128xf32>
      %c0_43 = arith.constant 0 : index
      %c0_44 = arith.constant 0 : index
      %c0_45 = arith.constant 0 : index
      %187 = vector.load %arg12[%c0_43, %c0_44, %c0_45] : memref<10x10x128xf32, #tpu.memory_space<vmem>>, vector<10x10x128xf32>
      tpu.vector_store %arg12[%c0_43, %c0_44, %c0_45], %186 {strides = array<i32>} : memref<10x10x128xf32, #tpu.memory_space<vmem>>, vector<10x10x128xf32>,
      %cst_46 = arith.constant 0.000000e+00 : f32
      %188 = vector.broadcast %cst_46 : f32 to vector<1x128xf32>
      %c0_47 = arith.constant 0 : index
      %c0_48 = arith.constant 0 : index
      %189 = vector.load %arg10[%c0_47, %c0_48] : memref<1x128xf32, #tpu.memory_space<vmem>>, vector<1x128xf32>
      tpu.vector_store %arg10[%c0_47, %c0_48], %188 {strides = array<i32>} : memref<1x128xf32, #tpu.memory_space<vmem>>, vector<1x128xf32>,
      %cst_49 = arith.constant 0.000000e+00 : f32
      %190 = vector.broadcast %cst_49 : f32 to vector<1x128xf32>
      %c0_50 = arith.constant 0 : index
      %c0_51 = arith.constant 0 : index
      %191 = vector.load %arg11[%c0_50, %c0_51] : memref<1x128xf32, #tpu.memory_space<vmem>>, vector<1x128xf32>
      tpu.vector_store %arg11[%c0_50, %c0_51], %190 {strides = array<i32>} : memref<1x128xf32, #tpu.memory_space<vmem>>, vector<1x128xf32>,
    } else {
    }
    %c0 = arith.constant 0 : index
    %c0_1 = arith.constant 0 : index
    %c0_2 = arith.constant 0 : index
    %c0_3 = arith.constant 0 : index
    %3 = vector.load %arg1[%c0, %c0_1, %c0_2, %c0_3] : memref<1x8x8x128xf32, #tpu.memory_space<vmem>>, vector<1x8x8x128xf32>
    %4 = vector.shape_cast %3 : vector<1x8x8x128xf32> to vector<8x8x128xf32>
    %c0_4 = arith.constant 0 : index
    %c0_5 = arith.constant 0 : index
    %5 = vector.load %arg2[%c0_4, %c0_5] : memref<1x128xf32, #tpu.memory_space<vmem>>, vector<1x128xf32>
    %6 = vector.shape_cast %5 : vector<1x128xf32> to vector<1x1x128xf32>
    %7 = vector.broadcast %6 : vector<1x1x128xf32> to vector<8x8x128xf32>
    %8 = arith.mulf %4, %7 : vector<8x8x128xf32>
    %c0_6 = arith.constant 0 : index
    %c0_7 = arith.constant 0 : index
    %9 = vector.load %arg3[%c0_6, %c0_7] : memref<1x128xf32, #tpu.memory_space<vmem>>, vector<1x128xf32>
    %10 = vector.shape_cast %9 : vector<1x128xf32> to vector<1x1x128xf32>
    %11 = vector.broadcast %10 : vector<1x1x128xf32> to vector<8x8x128xf32>
    %12 = arith.addf %8, %11 : vector<8x8x128xf32>
    %cst = arith.constant 0.000000e+00 : f32
    %13 = vector.broadcast %cst : f32 to vector<8x8x128xf32>
    %14 = arith.cmpf ogt, %12, %13 : vector<8x8x128xf32>
    %c0_8 = arith.constant 0 : index
    %c0_9 = arith.constant 0 : index
    %15 = vector.load %arg4[%c0_8, %c0_9] : memref<1x128xf32, #tpu.memory_space<vmem>>, vector<1x128xf32>
    %16 = vector.shape_cast %15 : vector<1x128xf32> to vector<1x1x128xf32>
    %17 = vector.broadcast %16 : vector<1x1x128xf32> to vector<8x8x128xf32>
    %18 = arith.mulf %17, %12 : vector<8x8x128xf32>
    %19 = arith.select %14, %12, %18 : vector<8x8x128xi1>, vector<8x8x128xf32>
    %c0_10 = arith.constant 0 : index
    %c0_11 = arith.constant 0 : index
    %20 = vector.load %arg5[%c0_10, %c0_11] : memref<1x128xf32, #tpu.memory_space<vmem>>, vector<1x128xf32>
    %21 = vector.shape_cast %20 : vector<1x128xf32> to vector<1x1x128xf32>
    %22 = vector.broadcast %21 : vector<1x1x128xf32> to vector<8x8x128xf32>
    %23 = arith.addf %19, %22 : vector<8x8x128xf32>
    %c0_12 = arith.constant 0 : index
    %24 = memref.load %arg8[%c0_12] : memref<2xf32, #tpu.memory_space<smem>>
    %25 = vector.broadcast %24 : f32 to vector<8x8x128xf32>
    %26 = arith.mulf %23, %25 : vector<8x8x128xf32>
    %cst_13 = arith.constant 0.000000e+00 : f32
    %27 = vector.broadcast %cst_13 : f32 to vector<8x8x128xf32>
    %c0_14 = arith.constant 0 : index
    %28 = memref.load %arg7[%c0_14] : memref<15xf32, #tpu.memory_space<smem>>
    %29 = vector.broadcast %28 : f32 to vector<8x8x128xf32>
    %30 = arith.cmpf ogt, %26, %29 : vector<8x8x128xf32>
    %31 = arith.extui %30 : vector<8x8x128xi1> to vector<8x8x128xi32>
    %32 = arith.sitofp %31 : vector<8x8x128xi32> to vector<8x8x128xf32>
    %33 = arith.addf %27, %32 : vector<8x8x128xf32>
    %c1 = arith.constant 1 : index
    %34 = memref.load %arg7[%c1] : memref<15xf32, #tpu.memory_space<smem>>
    %35 = vector.broadcast %34 : f32 to vector<8x8x128xf32>
    %36 = arith.cmpf ogt, %26, %35 : vector<8x8x128xf32>
    %37 = arith.extui %36 : vector<8x8x128xi1> to vector<8x8x128xi32>
    %38 = arith.sitofp %37 : vector<8x8x128xi32> to vector<8x8x128xf32>
    %39 = arith.addf %33, %38 : vector<8x8x128xf32>
    %c2 = arith.constant 2 : index
    %40 = memref.load %arg7[%c2] : memref<15xf32, #tpu.memory_space<smem>>
    %41 = vector.broadcast %40 : f32 to vector<8x8x128xf32>
    %42 = arith.cmpf ogt, %26, %41 : vector<8x8x128xf32>
    %43 = arith.extui %42 : vector<8x8x128xi1> to vector<8x8x128xi32>
    %44 = arith.sitofp %43 : vector<8x8x128xi32> to vector<8x8x128xf32>
    %45 = arith.addf %39, %44 : vector<8x8x128xf32>
    %c3 = arith.constant 3 : index
    %46 = memref.load %arg7[%c3] : memref<15xf32, #tpu.memory_space<smem>>
    %47 = vector.broadcast %46 : f32 to vector<8x8x128xf32>
    %48 = arith.cmpf ogt, %26, %47 : vector<8x8x128xf32>
    %49 = arith.extui %48 : vector<8x8x128xi1> to vector<8x8x128xi32>
    %50 = arith.sitofp %49 : vector<8x8x128xi32> to vector<8x8x128xf32>
    %51 = arith.addf %45, %50 : vector<8x8x128xf32>
    %c4 = arith.constant 4 : index
    %52 = memref.load %arg7[%c4] : memref<15xf32, #tpu.memory_space<smem>>
    %53 = vector.broadcast %52 : f32 to vector<8x8x128xf32>
    %54 = arith.cmpf ogt, %26, %53 : vector<8x8x128xf32>
    %55 = arith.extui %54 : vector<8x8x128xi1> to vector<8x8x128xi32>
    %56 = arith.sitofp %55 : vector<8x8x128xi32> to vector<8x8x128xf32>
    %57 = arith.addf %51, %56 : vector<8x8x128xf32>
    %c5 = arith.constant 5 : index
    %58 = memref.load %arg7[%c5] : memref<15xf32, #tpu.memory_space<smem>>
    %59 = vector.broadcast %58 : f32 to vector<8x8x128xf32>
    %60 = arith.cmpf ogt, %26, %59 : vector<8x8x128xf32>
    %61 = arith.extui %60 : vector<8x8x128xi1> to vector<8x8x128xi32>
    %62 = arith.sitofp %61 : vector<8x8x128xi32> to vector<8x8x128xf32>
    %63 = arith.addf %57, %62 : vector<8x8x128xf32>
    %c6 = arith.constant 6 : index
    %64 = memref.load %arg7[%c6] : memref<15xf32, #tpu.memory_space<smem>>
    %65 = vector.broadcast %64 : f32 to vector<8x8x128xf32>
    %66 = arith.cmpf ogt, %26, %65 : vector<8x8x128xf32>
    %67 = arith.extui %66 : vector<8x8x128xi1> to vector<8x8x128xi32>
    %68 = arith.sitofp %67 : vector<8x8x128xi32> to vector<8x8x128xf32>
    %69 = arith.addf %63, %68 : vector<8x8x128xf32>
    %c7 = arith.constant 7 : index
    %70 = memref.load %arg7[%c7] : memref<15xf32, #tpu.memory_space<smem>>
    %71 = vector.broadcast %70 : f32 to vector<8x8x128xf32>
    %72 = arith.cmpf ogt, %26, %71 : vector<8x8x128xf32>
    %73 = arith.extui %72 : vector<8x8x128xi1> to vector<8x8x128xi32>
    %74 = arith.sitofp %73 : vector<8x8x128xi32> to vector<8x8x128xf32>
    %75 = arith.addf %69, %74 : vector<8x8x128xf32>
    %c8 = arith.constant 8 : index
    %76 = memref.load %arg7[%c8] : memref<15xf32, #tpu.memory_space<smem>>
    %77 = vector.broadcast %76 : f32 to vector<8x8x128xf32>
    %78 = arith.cmpf ogt, %26, %77 : vector<8x8x128xf32>
    %79 = arith.extui %78 : vector<8x8x128xi1> to vector<8x8x128xi32>
    %80 = arith.sitofp %79 : vector<8x8x128xi32> to vector<8x8x128xf32>
    %81 = arith.addf %75, %80 : vector<8x8x128xf32>
    %c9 = arith.constant 9 : index
    %82 = memref.load %arg7[%c9] : memref<15xf32, #tpu.memory_space<smem>>
    %83 = vector.broadcast %82 : f32 to vector<8x8x128xf32>
    %84 = arith.cmpf ogt, %26, %83 : vector<8x8x128xf32>
    %85 = arith.extui %84 : vector<8x8x128xi1> to vector<8x8x128xi32>
    %86 = arith.sitofp %85 : vector<8x8x128xi32> to vector<8x8x128xf32>
    %87 = arith.addf %81, %86 : vector<8x8x128xf32>
    %c10 = arith.constant 10 : index
    %88 = memref.load %arg7[%c10] : memref<15xf32, #tpu.memory_space<smem>>
    %89 = vector.broadcast %88 : f32 to vector<8x8x128xf32>
    %90 = arith.cmpf ogt, %26, %89 : vector<8x8x128xf32>
    %91 = arith.extui %90 : vector<8x8x128xi1> to vector<8x8x128xi32>
    %92 = arith.sitofp %91 : vector<8x8x128xi32> to vector<8x8x128xf32>
    %93 = arith.addf %87, %92 : vector<8x8x128xf32>
    %c11 = arith.constant 11 : index
    %94 = memref.load %arg7[%c11] : memref<15xf32, #tpu.memory_space<smem>>
    %95 = vector.broadcast %94 : f32 to vector<8x8x128xf32>
    %96 = arith.cmpf ogt, %26, %95 : vector<8x8x128xf32>
    %97 = arith.extui %96 : vector<8x8x128xi1> to vector<8x8x128xi32>
    %98 = arith.sitofp %97 : vector<8x8x128xi32> to vector<8x8x128xf32>
    %99 = arith.addf %93, %98 : vector<8x8x128xf32>
    %c12 = arith.constant 12 : index
    %100 = memref.load %arg7[%c12] : memref<15xf32, #tpu.memory_space<smem>>
    %101 = vector.broadcast %100 : f32 to vector<8x8x128xf32>
    %102 = arith.cmpf ogt, %26, %101 : vector<8x8x128xf32>
    %103 = arith.extui %102 : vector<8x8x128xi1> to vector<8x8x128xi32>
    %104 = arith.sitofp %103 : vector<8x8x128xi32> to vector<8x8x128xf32>
    %105 = arith.addf %99, %104 : vector<8x8x128xf32>
    %c13 = arith.constant 13 : index
    %106 = memref.load %arg7[%c13] : memref<15xf32, #tpu.memory_space<smem>>
    %107 = vector.broadcast %106 : f32 to vector<8x8x128xf32>
    %108 = arith.cmpf ogt, %26, %107 : vector<8x8x128xf32>
    %109 = arith.extui %108 : vector<8x8x128xi1> to vector<8x8x128xi32>
    %110 = arith.sitofp %109 : vector<8x8x128xi32> to vector<8x8x128xf32>
    %111 = arith.addf %105, %110 : vector<8x8x128xf32>
    %c14 = arith.constant 14 : index
    %112 = memref.load %arg7[%c14] : memref<15xf32, #tpu.memory_space<smem>>
    %113 = vector.broadcast %112 : f32 to vector<8x8x128xf32>
    %114 = arith.cmpf ogt, %26, %113 : vector<8x8x128xf32>
    %115 = arith.extui %114 : vector<8x8x128xi1> to vector<8x8x128xi32>
    %116 = arith.sitofp %115 : vector<8x8x128xi32> to vector<8x8x128xf32>
    %117 = arith.addf %111, %116 : vector<8x8x128xf32>
    %c1_15 = arith.constant 1 : index
    %118 = memref.load %arg8[%c1_15] : memref<2xf32, #tpu.memory_space<smem>>
    %119 = vector.broadcast %118 : f32 to vector<8x8x128xf32>
    %120 = arith.mulf %117, %119 : vector<8x8x128xf32>
    %c1_16 = arith.constant 1 : index
    %c1_17 = arith.constant 1 : index
    %c0_18 = arith.constant 0 : index
    %121 = vector.load %arg12[%c1_16, %c1_17, %c0_18] : memref<10x10x128xf32, #tpu.memory_space<vmem>>, vector<8x8x128xf32>
    tpu.vector_store %arg12[%c1_16, %c1_17, %c0_18], %120 {strides = array<i32>} : memref<10x10x128xf32, #tpu.memory_space<vmem>>, vector<8x8x128xf32>,
    %c0_19 = arith.constant 0 : index
    %c0_20 = arith.constant 0 : index
    %c0_21 = arith.constant 0 : index
    %122 = vector.load %arg12[%c0_19, %c0_20, %c0_21] : memref<10x10x128xf32, #tpu.memory_space<vmem>>, vector<10x10x128xf32>
    %c0_22 = arith.constant 0 : index
    %c0_23 = arith.constant 0 : index
    %c0_24 = arith.constant 0 : index
    %123 = vector.load %arg6[%c0_22, %c0_23, %c0_24] : memref<3x3x128xf32, #tpu.memory_space<vmem>>, vector<3x3x128xf32>
    %cst_25 = arith.constant 0.000000e+00 : f32
    %124 = vector.broadcast %cst_25 : f32 to vector<8x8x128xf32>
    %125 = vector.extract_strided_slice %122 {offsets = [0, 0, 0], sizes = [8, 8, 128], strides = [1, 1, 1]} : vector<10x10x128xf32> to vector<8x8x128xf32>
    %126 = vector.extract_strided_slice %123 {offsets = [0, 0, 0], sizes = [1, 1, 128], strides = [1, 1, 1]} : vector<3x3x128xf32> to vector<1x1x128xf32>
    %127 = vector.broadcast %126 : vector<1x1x128xf32> to vector<8x8x128xf32>
    %128 = arith.mulf %125, %127 : vector<8x8x128xf32>
    %129 = arith.addf %124, %128 : vector<8x8x128xf32>
    %130 = vector.extract_strided_slice %122 {offsets = [0, 1, 0], sizes = [8, 8, 128], strides = [1, 1, 1]} : vector<10x10x128xf32> to vector<8x8x128xf32>
    %131 = vector.extract_strided_slice %123 {offsets = [0, 1, 0], sizes = [1, 1, 128], strides = [1, 1, 1]} : vector<3x3x128xf32> to vector<1x1x128xf32>
    %132 = vector.broadcast %131 : vector<1x1x128xf32> to vector<8x8x128xf32>
    %133 = arith.mulf %130, %132 : vector<8x8x128xf32>
    %134 = arith.addf %129, %133 : vector<8x8x128xf32>
    %135 = vector.extract_strided_slice %122 {offsets = [0, 2, 0], sizes = [8, 8, 128], strides = [1, 1, 1]} : vector<10x10x128xf32> to vector<8x8x128xf32>
    %136 = vector.extract_strided_slice %123 {offsets = [0, 2, 0], sizes = [1, 1, 128], strides = [1, 1, 1]} : vector<3x3x128xf32> to vector<1x1x128xf32>
    %137 = vector.broadcast %136 : vector<1x1x128xf32> to vector<8x8x128xf32>
    %138 = arith.mulf %135, %137 : vector<8x8x128xf32>
    %139 = arith.addf %134, %138 : vector<8x8x128xf32>
    %140 = vector.extract_strided_slice %122 {offsets = [1, 0, 0], sizes = [8, 8, 128], strides = [1, 1, 1]} : vector<10x10x128xf32> to vector<8x8x128xf32>
    %141 = vector.extract_strided_slice %123 {offsets = [1, 0, 0], sizes = [1, 1, 128], strides = [1, 1, 1]} : vector<3x3x128xf32> to vector<1x1x128xf32>
    %142 = vector.broadcast %141 : vector<1x1x128xf32> to vector<8x8x128xf32>
    %143 = arith.mulf %140, %142 : vector<8x8x128xf32>
    %144 = arith.addf %139, %143 : vector<8x8x128xf32>
    %145 = vector.extract_strided_slice %122 {offsets = [1, 1, 0], sizes = [8, 8, 128], strides = [1, 1, 1]} : vector<10x10x128xf32> to vector<8x8x128xf32>
    %146 = vector.extract_strided_slice %123 {offsets = [1, 1, 0], sizes = [1, 1, 128], strides = [1, 1, 1]} : vector<3x3x128xf32> to vector<1x1x128xf32>
    %147 = vector.broadcast %146 : vector<1x1x128xf32> to vector<8x8x128xf32>
    %148 = arith.mulf %145, %147 : vector<8x8x128xf32>
    %149 = arith.addf %144, %148 : vector<8x8x128xf32>
    %150 = vector.extract_strided_slice %122 {offsets = [1, 2, 0], sizes = [8, 8, 128], strides = [1, 1, 1]} : vector<10x10x128xf32> to vector<8x8x128xf32>
    %151 = vector.extract_strided_slice %123 {offsets = [1, 2, 0], sizes = [1, 1, 128], strides = [1, 1, 1]} : vector<3x3x128xf32> to vector<1x1x128xf32>
    %152 = vector.broadcast %151 : vector<1x1x128xf32> to vector<8x8x128xf32>
    %153 = arith.mulf %150, %152 : vector<8x8x128xf32>
    %154 = arith.addf %149, %153 : vector<8x8x128xf32>
    %155 = vector.extract_strided_slice %122 {offsets = [2, 0, 0], sizes = [8, 8, 128], strides = [1, 1, 1]} : vector<10x10x128xf32> to vector<8x8x128xf32>
    %156 = vector.extract_strided_slice %123 {offsets = [2, 0, 0], sizes = [1, 1, 128], strides = [1, 1, 1]} : vector<3x3x128xf32> to vector<1x1x128xf32>
    %157 = vector.broadcast %156 : vector<1x1x128xf32> to vector<8x8x128xf32>
    %158 = arith.mulf %155, %157 : vector<8x8x128xf32>
    %159 = arith.addf %154, %158 : vector<8x8x128xf32>
    %160 = vector.extract_strided_slice %122 {offsets = [2, 1, 0], sizes = [8, 8, 128], strides = [1, 1, 1]} : vector<10x10x128xf32> to vector<8x8x128xf32>
    %161 = vector.extract_strided_slice %123 {offsets = [2, 1, 0], sizes = [1, 1, 128], strides = [1, 1, 1]} : vector<3x3x128xf32> to vector<1x1x128xf32>
    %162 = vector.broadcast %161 : vector<1x1x128xf32> to vector<8x8x128xf32>
    %163 = arith.mulf %160, %162 : vector<8x8x128xf32>
    %164 = arith.addf %159, %163 : vector<8x8x128xf32>
    %165 = vector.extract_strided_slice %122 {offsets = [2, 2, 0], sizes = [8, 8, 128], strides = [1, 1, 1]} : vector<10x10x128xf32> to vector<8x8x128xf32>
    %166 = vector.extract_strided_slice %123 {offsets = [2, 2, 0], sizes = [1, 1, 128], strides = [1, 1, 1]} : vector<3x3x128xf32> to vector<1x1x128xf32>
    %167 = vector.broadcast %166 : vector<1x1x128xf32> to vector<8x8x128xf32>
    %168 = arith.mulf %165, %167 : vector<8x8x128xf32>
    %169 = arith.addf %164, %168 : vector<8x8x128xf32>
    %c0_26 = arith.constant 0 : index
    %c0_27 = arith.constant 0 : index
    %c0_28 = arith.constant 0 : index
    %c0_29 = arith.constant 0 : index
    %170 = vector.load %arg9[%c0_26, %c0_27, %c0_28, %c0_29] : memref<1x8x8x128xf32, #tpu.memory_space<vmem>>, vector<1x8x8x128xf32>
    %171 = vector.shape_cast %170 : vector<1x8x8x128xf32> to vector<8x8x128xf32>
    %172 = vector.shape_cast %169 : vector<8x8x128xf32> to vector<1x8x8x128xf32>
    tpu.vector_store %arg9[%c0_26, %c0_27, %c0_28, %c0_29], %172 {strides = array<i32>} : memref<1x8x8x128xf32, #tpu.memory_space<vmem>>, vector<1x8x8x128xf32>,
    %cst_30 = arith.constant dense<0.000000e+00> : vector<8x128xf32>
    %173 = vector.multi_reduction <add>, %169, %cst_30 [0] : vector<8x8x128xf32> to vector<8x128xf32>
    %174 = arith.mulf %169, %169 : vector<8x8x128xf32>
    %cst_31 = arith.constant dense<0.000000e+00> : vector<8x128xf32>
    %175 = vector.multi_reduction <add>, %174, %cst_31 [0] : vector<8x8x128xf32> to vector<8x128xf32>
    %c0_32 = arith.constant 0 : index
    %c0_33 = arith.constant 0 : index
    %176 = vector.load %arg10[%c0_32, %c0_33] : memref<1x128xf32, #tpu.memory_space<vmem>>, vector<1x128xf32>
    %cst_34 = arith.constant dense<0.000000e+00> : vector<128xf32>
    %177 = vector.multi_reduction <add>, %173, %cst_34 [0] : vector<8x128xf32> to vector<128xf32>
    %178 = vector.shape_cast %177 : vector<128xf32> to vector<1x128xf32>
    %179 = arith.addf %176, %178 : vector<1x128xf32>
    %c0_35 = arith.constant 0 : index
    %c0_36 = arith.constant 0 : index
    %180 = vector.load %arg10[%c0_35, %c0_36] : memref<1x128xf32, #tpu.memory_space<vmem>>, vector<1x128xf32>
    tpu.vector_store %arg10[%c0_35, %c0_36], %179 {strides = array<i32>} : memref<1x128xf32, #tpu.memory_space<vmem>>, vector<1x128xf32>,
    %c0_37 = arith.constant 0 : index
    %c0_38 = arith.constant 0 : index
    %181 = vector.load %arg11[%c0_37, %c0_38] : memref<1x128xf32, #tpu.memory_space<vmem>>, vector<1x128xf32>
    %cst_39 = arith.constant dense<0.000000e+00> : vector<128xf32>
    %182 = vector.multi_reduction <add>, %175, %cst_39 [0] : vector<8x128xf32> to vector<128xf32>
    %183 = vector.shape_cast %182 : vector<128xf32> to vector<1x128xf32>
    %184 = arith.addf %181, %183 : vector<1x128xf32>
    %c0_40 = arith.constant 0 : index
    %c0_41 = arith.constant 0 : index
    %185 = vector.load %arg11[%c0_40, %c0_41] : memref<1x128xf32, #tpu.memory_space<vmem>>, vector<1x128xf32>
    tpu.vector_store %arg11[%c0_40, %c0_41], %184 {strides = array<i32>} : memref<1x128xf32, #tpu.memory_space<vmem>>, vector<1x128xf32>,
    return
  }
  func.func @transform_0(%arg0: i32) -> (i32, i32, i32, i32) {
    %c0_i32 = arith.constant 0 : i32
    %c0_i32_0 = arith.constant 0 : i32
    %c0_i32_1 = arith.constant 0 : i32
    %c0_i32_2 = arith.constant 0 : i32
    return %arg0, %c0_i32, %c0_i32_0, %c0_i32_1 : i32, i32, i32, i32
  }
  func.func @transform_1(%arg0: i32) -> (i32, i32) {
    %c0_i32 = arith.constant 0 : i32
    %c0_i32_0 = arith.constant 0 : i32
    %c0_i32_1 = arith.constant 0 : i32
    return %c0_i32, %c0_i32_0 : i32, i32
  }
  func.func @transform_2(%arg0: i32) -> (i32, i32) {
    %c0_i32 = arith.constant 0 : i32
    %c0_i32_0 = arith.constant 0 : i32
    %c0_i32_1 = arith.constant 0 : i32
    return %c0_i32, %c0_i32_0 : i32, i32
  }
  func.func @transform_3(%arg0: i32) -> (i32, i32) {
    %c0_i32 = arith.constant 0 : i32
    %c0_i32_0 = arith.constant 0 : i32
    %c0_i32_1 = arith.constant 0 : i32
    return %c0_i32, %c0_i32_0 : i32, i32
  }
  func.func @transform_4(%arg0: i32) -> (i32, i32) {
    %c0_i32 = arith.constant 0 : i32
    %c0_i32_0 = arith.constant 0 : i32
    %c0_i32_1 = arith.constant 0 : i32
    return %c0_i32, %c0_i32_0 : i32, i32
  }
  func.func @transform_5(%arg0: i32) -> (i32, i32, i32) {
    %c0_i32 = arith.constant 0 : i32
    %c0_i32_0 = arith.constant 0 : i32
    %c0_i32_1 = arith.constant 0 : i32
    %c0_i32_2 = arith.constant 0 : i32
    return %c0_i32, %c0_i32_0, %c0_i32_1 : i32, i32, i32
  }
  func.func @transform_6(%arg0: i32) -> i32 {
    %c0_i32 = arith.constant 0 : i32
    %c0_i32_0 = arith.constant 0 : i32
    return %c0_i32 : i32
  }
  func.func @transform_7(%arg0: i32) -> i32 {
    %c0_i32 = arith.constant 0 : i32
    %c0_i32_0 = arith.constant 0 : i32
    return %c0_i32 : i32
  }
  func.func @transform_8(%arg0: i32) -> (i32, i32, i32, i32) {
    %c0_i32 = arith.constant 0 : i32
    %c0_i32_0 = arith.constant 0 : i32
    %c0_i32_1 = arith.constant 0 : i32
    %c0_i32_2 = arith.constant 0 : i32
    return %arg0, %c0_i32, %c0_i32_0, %c0_i32_1 : i32, i32, i32, i32
  }
  func.func @transform_9(%arg0: i32) -> (i32, i32) {
    %c0_i32 = arith.constant 0 : i32
    %c0_i32_0 = arith.constant 0 : i32
    %c0_i32_1 = arith.constant 0 : i32
    return %c0_i32, %c0_i32_0 : i32, i32
  }
  func.func @transform_10(%arg0: i32) -> (i32, i32) {
    %c0_i32 = arith.constant 0 : i32
    %c0_i32_0 = arith.constant 0 : i32
    %c0_i32_1 = arith.constant 0 : i32
    return %c0_i32, %c0_i32_0 : i32, i32
  }
}

module attributes {stable_mosaic.version = 11 : i64} {
  func.func @_bn_res_kernel(%arg0: i32, %arg1: memref<128x128xf32, #tpu.memory_space<vmem>>, %arg2: memref<1x128xf32, #tpu.memory_space<vmem>>, %arg3: memref<1x128xf32, #tpu.memory_space<vmem>>, %arg4: memref<128x128xf32, #tpu.memory_space<vmem>>, %arg5: memref<128x128xf32, #tpu.memory_space<vmem>>) attributes {dimension_semantics = [#tpu.dimension_semantics<parallel>], iteration_bounds = array<i64: 1>, scalar_prefetch = 0 : i64, scratch_operands = 0 : i64, tpu.core_type = #tpu.core_type<tc>, window_params = [{transform_indices = @transform_0, window_bounds = array<i64: 128, 128>}, {pipeline_mode = #tpu.pipeline_mode<synchronous>, transform_indices = @transform_1, window_bounds = array<i64: 1, 128>}, {pipeline_mode = #tpu.pipeline_mode<synchronous>, transform_indices = @transform_2, window_bounds = array<i64: 1, 128>}, {transform_indices = @transform_3, window_bounds = array<i64: 128, 128>}, {transform_indices = @transform_4, window_bounds = array<i64: 128, 128>}]} {
    %c0 = arith.constant 0 : index
    %c0_0 = arith.constant 0 : index
    %0 = vector.load %arg1[%c0, %c0_0] : memref<128x128xf32, #tpu.memory_space<vmem>>, vector<128x128xf32>
    %c0_1 = arith.constant 0 : index
    %c0_2 = arith.constant 0 : index
    %1 = vector.load %arg2[%c0_1, %c0_2] : memref<1x128xf32, #tpu.memory_space<vmem>>, vector<1x128xf32>
    %2 = vector.broadcast %1 : vector<1x128xf32> to vector<128x128xf32>
    %3 = arith.mulf %0, %2 : vector<128x128xf32>
    %c0_3 = arith.constant 0 : index
    %c0_4 = arith.constant 0 : index
    %4 = vector.load %arg3[%c0_3, %c0_4] : memref<1x128xf32, #tpu.memory_space<vmem>>, vector<1x128xf32>
    %5 = vector.broadcast %4 : vector<1x128xf32> to vector<128x128xf32>
    %6 = arith.addf %3, %5 : vector<128x128xf32>
    %c0_5 = arith.constant 0 : index
    %c0_6 = arith.constant 0 : index
    %7 = vector.load %arg4[%c0_5, %c0_6] : memref<128x128xf32, #tpu.memory_space<vmem>>, vector<128x128xf32>
    %8 = arith.addf %6, %7 : vector<128x128xf32>
    %c0_7 = arith.constant 0 : index
    %c0_8 = arith.constant 0 : index
    %9 = vector.load %arg5[%c0_7, %c0_8] : memref<128x128xf32, #tpu.memory_space<vmem>>, vector<128x128xf32>
    tpu.vector_store %arg5[%c0_7, %c0_8], %8 {strides = array<i32>} : memref<128x128xf32, #tpu.memory_space<vmem>>, vector<128x128xf32>,
    return
  }
  func.func @transform_0(%arg0: i32) -> (i32, i32) {
    %c0_i32 = arith.constant 0 : i32
    %c0_i32_0 = arith.constant 0 : i32
    return %arg0, %c0_i32 : i32, i32
  }
  func.func @transform_1(%arg0: i32) -> (i32, i32) {
    %c0_i32 = arith.constant 0 : i32
    %c0_i32_0 = arith.constant 0 : i32
    %c0_i32_1 = arith.constant 0 : i32
    return %c0_i32, %c0_i32_0 : i32, i32
  }
  func.func @transform_2(%arg0: i32) -> (i32, i32) {
    %c0_i32 = arith.constant 0 : i32
    %c0_i32_0 = arith.constant 0 : i32
    %c0_i32_1 = arith.constant 0 : i32
    return %c0_i32, %c0_i32_0 : i32, i32
  }
  func.func @transform_3(%arg0: i32) -> (i32, i32) {
    %c0_i32 = arith.constant 0 : i32
    %c0_i32_0 = arith.constant 0 : i32
    return %arg0, %c0_i32 : i32, i32
  }
  func.func @transform_4(%arg0: i32) -> (i32, i32) {
    %c0_i32 = arith.constant 0 : i32
    %c0_i32_0 = arith.constant 0 : i32
    return %arg0, %c0_i32 : i32, i32
  }
}

</mosaic_0001>

<bundles_post_ra>
// kernel: bottleneck_forward.7
= control target key start
LH: loop header
LB: loop body
LE: loop exit
PB: predicated region body
PF: predicated region fallthrough
CT: control target
= control target key end

     0   :  { %s344_s0 = inlined_call_operand.vmem [shape: f32[128,128], index: 0, kind: input, shape index: {}]   ;;  %s345_s1 = inlined_call_operand.vmem [shape: f32[1,128], index: 1, kind: input, shape index: {}]   ;;  %s346_s2 = inlined_call_operand.vmem [shape: f32[1,128], index: 2, kind: input, shape index: {}]   ;;  %s347_s3 = inlined_call_operand.vmem [shape: f32[128,128], index: 3, kind: input, shape index: {}]   ;;  %s348_s4 = inlined_call_operand.vmem [shape: f32[128,128], index: 4, kind: output, shape index: {}]  }
   0x1   :  { %v17_v0 = vld [vmem:[%s344_s0] sm:$0xff]  ;;  %v18_v4 = vld [vmem:[%s344_s0 + $0x8] sm:$0xff]  ;;  %v19_v7 = vld [vmem:[%s344_s0 + $0x10] sm:$0xff] }
   0x2   :  { %v164_v1 = vld [vmem:[%s345_s1] ss:$0 sm:$0xff]  ;;  %v20_v8 = vld [vmem:[%s344_s0 + $0x18] sm:$0xff]  ;;  %v80_v10 = vld [vmem:[%s347_s3 + $0x8] sm:$0xff] }
   0x3   :  { %v169_v2 = vld [vmem:[%s346_s2] ss:$0 sm:$0xff]  ;;  %v40_v3 = vmul.f32 %v164_v1, %v17_v0  ;;  %v41_v6 = vmul.f32 %v164_v1, %v18_v4  ;;  %v42_v11 = vmul.f32 %v164_v1, %v19_v7  ;;  %v81_v12 = vld [vmem:[%s347_s3 + $0x10] sm:$0xff]  ;;  %v43_v13 = vmul.f32 %v164_v1, %v20_v8  ;;  %v82_v16 = vld [vmem:[%s347_s3 + $0x18] sm:$0xff] }
   0x4   :  { %v79_v5 = vld [vmem:[%s347_s3] sm:$0xff]  ;;  %v22_v18 = vld [vmem:[%s344_s0 + $0x28] sm:$0xff]  ;;  %v23_v19 = vld [vmem:[%s344_s0 + $0x30] sm:$0xff] }
   0x5   :  { %v63_v9 = vadd.f32 %v169_v2, %v40_v3  ;;  %v21_v14 = vld [vmem:[%s344_s0 + $0x20] sm:$0xff]  ;;  %v64_v15 = vadd.f32 %v169_v2, %v41_v6  ;;  %v65_v21 = vadd.f32 %v169_v2, %v42_v11  ;;  %v66_v22 = vadd.f32 %v169_v2, %v43_v13  ;;  %v24_v25 = vld [vmem:[%s344_s0 + $0x38] sm:$0xff]  ;;  %v84_v28 = vld [vmem:[%s347_s3 + $0x28] sm:$0xff] }
   0x6   :  { %v44_v17 = vmul.f32 %v164_v1, %v21_v14  ;;  %v83_v23 = vld [vmem:[%s347_s3 + $0x20] sm:$0xff]  ;;  %v45_v24 = vmul.f32 %v164_v1, %v22_v18  ;;  %v46_v29 = vmul.f32 %v164_v1, %v23_v19  ;;  %v47_v30 = vmul.f32 %v164_v1, %v24_v25  ;;  %v26_v32 = vld [vmem:[%s344_s0 + $0x48] sm:$0xff]  ;;  %v85_v36 = vld [vmem:[%s347_s3 + $0x30] sm:$0xff] }
   0x7   :  { %v95_v20 = vadd.f32 %v79_v5, %v63_v9  ;;  %v96_v26 = vadd.f32 %v80_v10, %v64_v15  ;;  %v25_v31 = vld [vmem:[%s344_s0 + $0x40] sm:$0xff]  ;;  %v97_v33 = vadd.f32 %v81_v12, %v65_v21  ;;  %v98_v34 = vadd.f32 %v82_v16, %v66_v22  ;;  %v86_v37 = vld [vmem:[%s347_s3 + $0x38] sm:$0xff]  ;;  %v27_v39 = vld [vmem:[%s344_s0 + $0x50] sm:$0xff] }
   0x8   :  { %v67_v27 = vadd.f32 %v169_v2, %v44_v17  ;;  %v68_v35 = vadd.f32 %v169_v2, %v45_v24  ;;  %v48_v38 = vmul.f32 %v164_v1, %v25_v31  ;;  %v69_v41 = vadd.f32 %v169_v2, %v46_v29  ;;  %v87_v43 = vld [vmem:[%s347_s3 + $0x40] sm:$0xff]  ;;  %v28_v45 = vld [vmem:[%s344_s0 + $0x58] sm:$0xff]  ;;  %v88_v49 = vld [vmem:[%s347_s3 + $0x48] sm:$0xff] }
   0x9   :  { %111 = vst [vmem:[%s348_s4] sm:$0xff] %v95_v20  ;;  %112 = vst [vmem:[%s348_s4 + $0x8] sm:$0xff] %v96_v26  ;;  %v70_v42 = vadd.f32 %v169_v2, %v47_v30  ;;  %v49_v44 = vmul.f32 %v164_v1, %v26_v32  ;;  %v29_v46 = vld [vmem:[%s344_s0 + $0x60] sm:$0xff]  ;;  %v50_v50 = vmul.f32 %v164_v1, %v27_v39  ;;  %v89_v51 = vld [vmem:[%s347_s3 + $0x50] sm:$0xff] }
   0xa   :  { %v99_v40 = vadd.f32 %v83_v23, %v67_v27  ;;  %113 = vst [vmem:[%s348_s4 + $0x10] sm:$0xff] %v97_v33  ;;  %114 = vst [vmem:[%s348_s4 + $0x18] sm:$0xff] %v98_v34  ;;  %v100_v47 = vadd.f32 %v84_v28, %v68_v35  ;;  %v71_v48 = vadd.f32 %v169_v2, %v48_v38  ;;  %v30_v53 = vld [vmem:[%s344_s0 + $0x68] sm:$0xff]  ;;  %v90_v57 = vld [vmem:[%s347_s3 + $0x58] sm:$0xff] }
   0xb   :  { %v51_v52 = vmul.f32 %v164_v1, %v28_v45  ;;  %v101_v54 = vadd.f32 %v85_v36, %v69_v41  ;;  %v102_v55 = vadd.f32 %v86_v37, %v70_v42  ;;  %v72_v56 = vadd.f32 %v169_v2, %v49_v44  ;;  %v31_v59 = vld [vmem:[%s344_s0 + $0x70] sm:$0xff]  ;;  %v32_v60 = vld [vmem:[%s344_s0 + $0x78] sm:$0xff]  ;;  %v91_v0 = vld [vmem:[%s347_s3 + $0x60] sm:$0xff] }
   0xc   :  { %115 = vst [vmem:[%s348_s4 + $0x20] sm:$0xff] %v99_v40  ;;  %v52_v58 = vmul.f32 %v164_v1, %v29_v46  ;;  %116 = vst [vmem:[%s348_s4 + $0x28] sm:$0xff] %v100_v47  ;;  %v103_v61 = vadd.f32 %v87_v43, %v71_v48  ;;  %v73_v62 = vadd.f32 %v169_v2, %v50_v50  ;;  %v92_v6 = vld [vmem:[%s347_s3 + $0x68] sm:$0xff]  ;;  %v93_v12 = vld [vmem:[%s347_s3 + $0x70] sm:$0xff] }
   0xd   :  { %v74_v63 = vadd.f32 %v169_v2, %v51_v52  ;;  %v53_v3 = vmul.f32 %v164_v1, %v30_v53  ;;  %117 = vst [vmem:[%s348_s4 + $0x30] sm:$0xff] %v101_v54  ;;  %118 = vst [vmem:[%s348_s4 + $0x38] sm:$0xff] %v102_v55  ;;  %v104_v4 = vadd.f32 %v88_v49, %v72_v56  ;;  %v94_v13 = vld [vmem:[%s347_s3 + $0x78] sm:$0xff] }
   0xe   :  { %v75_v5 = vadd.f32 %v169_v2, %v52_v58  ;;  %v54_v7 = vmul.f32 %v164_v1, %v31_v59  ;;  %v55_v8 = vmul.f32 %v164_v1, %v32_v60  ;;  %119 = vst [vmem:[%s348_s4 + $0x40] sm:$0xff] %v103_v61  ;;  %v105_v9 = vadd.f32 %v89_v51, %v73_v62 }
   0xf   :  { %v106_v10 = vadd.f32 %v90_v57, %v74_v63  ;;  %v76_v11 = vadd.f32 %v169_v2, %v53_v3  ;;  %120 = vst [vmem:[%s348_s4 + $0x48] sm:$0xff] %v104_v4 }
  0x10   :  { %v107_v1 = vadd.f32 %v91_v0, %v75_v5  ;;  %v77_v14 = vadd.f32 %v169_v2, %v54_v7  ;;  %v78_v15 = vadd.f32 %v169_v2, %v55_v8  ;;  %121 = vst [vmem:[%s348_s4 + $0x50] sm:$0xff] %v105_v9 }
  0x11   :  { %122 = vst [vmem:[%s348_s4 + $0x58] sm:$0xff] %v106_v10  ;;  %v108_v16 = vadd.f32 %v92_v6, %v76_v11 }
  0x12   :  { %123 = vst [vmem:[%s348_s4 + $0x60] sm:$0xff] %v107_v1  ;;  %v109_v17 = vadd.f32 %v93_v12, %v77_v14  ;;  %v110_v18 = vadd.f32 %v94_v13, %v78_v15 }
  0x13   :  { %124 = vst [vmem:[%s348_s4 + $0x68] sm:$0xff] %v108_v16 }
  0x14   :  { %125 = vst [vmem:[%s348_s4 + $0x70] sm:$0xff] %v109_v17  ;;  %126 = vst [vmem:[%s348_s4 + $0x78] sm:$0xff] %v110_v18 }

// kernel: bottleneck_forward.5
= control target key start
LH: loop header
LB: loop body
LE: loop exit
PB: predicated region body
PF: predicated region fallthrough
CT: control target
= control target key end

     0   :  { %16 = vsyncpa [#allocation4], 0  ;;  %s2999_s0 = inlined_call_operand.vmem [shape: f32[2,8,8,128], index: 0, kind: input, shape index: {}]   ;;  %s3000_s1 = inlined_call_operand.vmem [shape: f32[1,128], index: 1, kind: input, shape index: {}]   ;;  %s3001_s2 = inlined_call_operand.vmem [shape: f32[1,128], index: 2, kind: input, shape index: {}]   ;;  %s3002_s3 = inlined_call_operand.vmem [shape: f32[1,128], index: 3, kind: input, shape index: {}]   ;;  %s3003_s4 = inlined_call_operand.vmem [shape: f32[1,128], index: 4, kind: input, shape index: {}]   ;;  %s3004_s5 = inlined_call_operand.vmem [shape: f32[3,3,128], index: 5, kind: input, shape index: {}]   ;;  %s3005_s6 = inlined_call_operand.vmem [shape: f32[15], index: 6, kind: input, shape index: {}]   ;;  %s3006_s7 = inlined_call_operand.vmem [shape: f32[2], index: 7, kind: input, shape index: {}]   ;;  %s3007_s8 = inlined_call_operand.vmem [shape: f32[2,8,8,128], index: 8, kind: output, shape index: {0}]   ;;  %s3008_s9 = inlined_call_operand.vmem [shape: f32[1,128], index: 9, kind: output, shape index: {1}]   ;;  %s3009_s10 = inlined_call_operand.vmem [shape: f32[1,128], index: 10, kind: output, shape index: {2}]  }
   0x1   :  { %17 = vsyncpa [#allocation6], 0  ;;  %s2002_s13 = smov 0  }
   0x2 LB: > { %s2008_s14 = sadd.s32 4294967295, %s1941_s13   ;;  %p1711_p0 = scmp.ge.s32.totalorder %s1941_s13, 1  ;;  %s1941_s13 = sphi %s2002_s13, %s23_s13  }
   0x3   : > { %p269_p1 = scmp.lt.s32.totalorder %s1941_s13, 3  ;;  %s297_s17 = sshll.u32 %s3005_s6, 4  ;;  %s298_s17 = int_to_ptr.vmem [resolvable:$true] %s297_s17 }
   0x4   : > { %p3010_p4 = scmp.eq.s32.totalorder %s2008_s14, 0  ;;  %s308_s21 = sshll.u32 %s3006_s7, 4  ;;  %s309_s21 = int_to_ptr.vmem [resolvable:$true] %s308_s21 }
   0x5   : > { %p2016_p3 = pnand %p1711_p0, %p269_p1  ;;  %s1897_s23 = scalar_lea.vmem %s298_s17, 16 }
   0x6   : > { %p1898_p7 = scmp.ne.s32.totalorder %s298_s17, %s1897_s23  ;;  %p1905_p11 = scmp.lt.s32.totalorder %s298_s17, %s298_s17 }
   0x7   : > { %s3012_s18 = scalar_select %p2016_p3, 1, 0 }
   0x8   : > { %p1874_p5 = pneg %p2016_p3  ;;  %p1906_p12 = scmp.lt.s32.totalorder %s1897_s23, %s1897_s23 }
   0xa   : > { %p2028_p6 = pnand %p3010_p4, %p1874_p5  ;;  %p1907_p13 = por %p1906_p12, %p1905_p11 }
   0xc   : > { %p1899_p8 = pneg %p2028_p6 }
   0xe   : > { %p1900_p9 = pnand %p1899_p8, %p1898_p7 }
  0x10   : > { %p1901_p10 = pneg %p1900_p9 }
  0x12   : > { %p1908_p0 = pnand %p1907_p13, %p1901_p10 }
  0x14   : > { %1911 = shalt.err (!%p1908_p0)
}
  0x15   : > { %s1943_s24 = smov [#allocation3]   ;;  %s1912_s25 = scalar_lea.vmem %s309_s21, 16 }
  0x16   : > { %1877 = dma.vmem_to_smem (!%p2028_p6), %s298_s17, 16, %s1943_s24, [#allocation4]  }
  0x17   : > { %p1913_p1 = scmp.ne.s32.totalorder %s309_s21, %s1912_s25  ;;  %p1920_p4 = scmp.lt.s32.totalorder %s309_s21, %s309_s21 }
  0x18   : > { %p1921_p3 = scmp.lt.s32.totalorder %s1912_s25, %s1912_s25 }
  0x19   : > { %p1915_p5 = pnand %p1913_p1, %p1899_p8 }
  0x1a   : > { %p1922_p7 = por %p1921_p3, %p1920_p4 }
  0x1b   : > { %p1916_p2 = pneg %p1915_p5 }
  0x1d   : > { %p1923_p9 = pnand %p1922_p7, %p1916_p2 }
  0x1f   : > { %1926 = shalt.err (!%p1923_p9)
}
  0x20   : > { %s1944_s26 = smov [#allocation5]   ;;  %p3014_p10 = scmp.ne.s32.totalorder %s3012_s18, 0 }
  0x21   : > { %1880 = dma.vmem_to_smem (!%p2028_p6), %s309_s21, 16, %s1944_s26, [#allocation6]  }
  0x22   : > { %329 = sbr.rel (%p3014_p10) target bundleno = 290 (0x122), region = 52  ;;  %p3015_p11 = scmp.eq.s32.totalorder (!%p3014_p10), %s2008_s14, 0 }
  0x29   : > { %1932 = dma.done.wait (%p3015_p11), [#allocation4], 16   ;;  %p3016_p12 = pmov %p3015_p11 }
  0x2a   : > { %p3017_p8 = pmov %p3015_p11 }
  0x2b   : > { %1934 = vsyncadd (%p3016_p12), [#allocation4], 4294967280 }
  0x2c   : > { %1936 = dma.done.wait (%p3017_p8), [#allocation6], 16   ;;  %p3018_p3 = pmov %p3017_p8 }
  0x2e   : > { %1938 = vsyncadd (%p3018_p3), [#allocation6], 4294967280 }
  0x2f   : > { %339 = sfence }
  0x30   : > { %p372_p2 = scmp.lt.s32.totalorder %s2008_s14, 1  ;;  %p3019_p4 = scmp.ne.s32.totalorder %s2008_s14, 0 }
  0x31   : > { %v1945_v0 = vmov (!%p3019_p4), 0.0  }
  0x32   : > { %s373_s27 = scalar_select %p372_p2, %s2008_s14, 1 }
  0x33   : > { %385 = sbr.rel (%p3019_p4) target bundleno = 62 (0x3e), region = 64  ;;  %386 = vst [vmem:[#allocation2] sm:$0xff] (!%p3019_p4), %v1945_v0  ;;  %387 = vst [vmem:[#allocation2 + $0x8] sm:$0x3] (!%p3019_p4), %v1945_v0 }
  0x34   : > { %s1864_s28 = sshll.u32 %s373_s27, 6  ;;  %388 = vst [vmem:[#allocation2 + $0x10] sm:$0xff] (!%p3019_p4), %v1945_v0  ;;  %389 = vst [vmem:[#allocation2 + $0x18] sm:$0x3] (!%p3019_p4), %v1945_v0 }
  0x35   : > { %s2053_s11 = scalar_lea.vmem %s2999_s0, %s1864_s28  ;;  %s2058_s16 = scalar_lea.vmem %s3007_s8, %s1864_s28  ;;  %390 = vst [vmem:[#allocation2 + $0x20] sm:$0xff] (!%p3019_p4), %v1945_v0  ;;  %391 = vst [vmem:[#allocation2 + $0x28] sm:$0x3] (!%p3019_p4), %v1945_v0 }
  0x36   : > { %392 = vst [vmem:[#allocation2 + $0x30] sm:$0xff] (!%p3019_p4), %v1945_v0  ;;  %393 = vst [vmem:[#allocation2 + $0x38] sm:$0x3] (!%p3019_p4), %v1945_v0 }
  0x37   : > { %394 = vst [vmem:[#allocation2 + $0x40] sm:$0xff] (!%p3019_p4), %v1945_v0  ;;  %395 = vst [vmem:[#allocation2 + $0x48] sm:$0x3] (!%p3019_p4), %v1945_v0 }
  0x38   : > { %396 = vst [vmem:[#allocation2 + $0x50] sm:$0xff] (!%p3019_p4), %v1945_v0  ;;  %397 = vst [vmem:[#allocation2 + $0x58] sm:$0x3] (!%p3019_p4), %v1945_v0 }
  0x39   : > { %398 = vst [vmem:[#allocation2 + $0x60] sm:$0xff] (!%p3019_p4), %v1945_v0  ;;  %399 = vst [vmem:[#allocation2 + $0x68] sm:$0x3] (!%p3019_p4), %v1945_v0 }
  0x3a   : > { %400 = vst [vmem:[#allocation2 + $0x70] sm:$0xff] %v1945_v0  ;;  %401 = vst [vmem:[#allocation2 + $0x78] sm:$0x3] %v1945_v0 }
  0x3b   : > { %402 = vst [vmem:[#allocation2 + $0x80] sm:$0xff] %v1945_v0  ;;  %403 = vst [vmem:[#allocation2 + $0x88] sm:$0x3] %v1945_v0 }
  0x3c   : > { %404 = vst [vmem:[#allocation2 + $0x90] sm:$0xff] %v1945_v0  ;;  %405 = vst [vmem:[#allocation2 + $0x98] sm:$0x3] %v1945_v0 }
  0x3d   : > { %406 = vst [vmem:[%s3008_s9] sm:$0x1] %v1945_v0  ;;  %407 = vst [vmem:[%s3009_s10] sm:$0x1] %v1945_v0 }
  0x3e PF: > { %v408_v1 = vld [vmem:[%s2053_s11] sm:$0xff]  ;;  %s492_s26 = sld [smem:[#allocation5]]  ;;  %s2087_s28 = sld [smem:[#allocation3 + $0x1]]  ;;  %v409_v6 = vld [vmem:[%s2053_s11 + $0x8] sm:$0xff]  ;;  %v410_v7 = vld [vmem:[%s2053_s11 + $0x10] sm:$0xff]  ;;  %v1054_v24 = vlaneseq  ;;  %v1946_v38 = vmov 0.0  }
  0x3f   : > { %v2072_v2 = vld [vmem:[%s3000_s1] ss:$0 sm:$0xff]  ;;  %s2085_s27 = sld [smem:[#allocation3]]  ;;  %s1744_s29 = sld [smem:[#allocation3 + $0x2]]  ;;  %v411_v11 = vld [vmem:[%s2053_s11 + $0x18] sm:$0xff]  ;;  %v413_v22 = vld [vmem:[%s2053_s11 + $0x28] sm:$0xff] }
  0x40   : > { %v2077_v3 = vld [vmem:[%s3001_s2] ss:$0 sm:$0xff]  ;;  %v423_v4 = vmul.f32 %v2072_v2, %v408_v1  ;;  %s1753_s30 = sld [smem:[#allocation3 + $0x3]]  ;;  %v424_v9 = vmul.f32 %v2072_v2, %v409_v6  ;;  %v425_v10 = vmul.f32 %v2072_v2, %v410_v7  ;;  %s1762_s12 = sld [smem:[#allocation3 + $0x4]]  ;;  %v426_v16 = vmul.f32 %v2072_v2, %v411_v11  ;;  %v414_v37 = vld [vmem:[%s2053_s11 + $0x30] sm:$0xff] }
  0x41   : > { %v2083_v5 = vld [vmem:[%s3002_s3] ss:$0 sm:$0xff]  ;;  %s1771_s15 = sld [smem:[#allocation3 + $0x5]]  ;;  %s2103_s18 = sld [smem:[#allocation3 + $0x6]]  ;;  %v2143_v32 = vmul.f32 %v2072_v2, %v413_v22  ;;  %v2175_v44 = vmul.f32 %v2072_v2, %v414_v37 }
  0x42   : > { %v438_v8 = vadd.f32 %v2077_v3, %v423_v4  ;;  %v412_v12 = vld [vmem:[%s2053_s11 + $0x20] sm:$0xff]  ;;  %v439_v15 = vadd.f32 %v2077_v3, %v424_v9  ;;  %s2109_s19 = sld [smem:[#allocation3 + $0x7]]  ;;  %v440_v21 = vadd.f32 %v2077_v3, %v425_v10  ;;  %s2115_s20 = sld [smem:[#allocation3 + $0x8]]  ;;  %v2137_v30 = vadd.f32 %v2077_v3, %v426_v16 }
  0x43   : > { %v2100_v14 = vld [vmem:[%s3003_s4] ss:$0 sm:$0xff]  ;;  %v427_v17 = vmul.f32 %v2072_v2, %v412_v12  ;;  %s2117_s21 = sld [smem:[#allocation3 + $0x9]]  ;;  %s2129_s22 = sld [smem:[#allocation3 + $0xa]] }
  0x44   : > { %vm446_vm0 = vcmp.gt.f32.partialorder %v438_v8, 0.0  ;;  %v461_v13 = vmul.f32 %v2083_v5, %v438_v8  ;;  %v2107_v19 = vstv %s492_s26  ;;  %v462_v20 = vmul.f32 %v2083_v5, %v439_v15  ;;  %s2131_s23 = sld [smem:[#allocation3 + $0xb]]  ;;  %s2149_s24 = sld [smem:[#allocation3 + $0xc]] }
  0x45   : > { %vm447_vm1 = vcmp.gt.f32.partialorder %v439_v15, 0.0  ;;  %v2120_v25 = vstv %s2085_s27  ;;  %v2123_v26 = vstv %s2087_s28  ;;  %v2125_v27 = vstv %s1744_s29  ;;  %s2151_s25 = sld [smem:[#allocation3 + $0xd]]  ;;  %s2167_s26 = sld [smem:[#allocation3 + $0xe]] }
  0x46   : > { %v469_v18 = vsel %vm446_vm0, %v438_v8, %v461_v13  ;;  %v2127_v28 = vstv %s1753_s30  ;;  %v2140_v31 = vadd.f32 %v2077_v3, %v427_v17  ;;  %v2145_v33 = vstv %s1762_s12  ;;  %s2204_s27 = sld [smem:[#allocation5 + $0x1]] }
  0x47   : > { %v484_v23 = vadd.f32 %v2100_v14, %v469_v18  ;;  %v2147_v34 = vstv %s1771_s15  ;;  %v470_v35 = vsel %vm447_vm1, %v439_v15, %v462_v20  ;;  %v463_v36 = vmul.f32 %v2083_v5, %v440_v21 }
  0x48   : > { %vm448_vm6 = vcmp.gt.f32.partialorder %v440_v21, 0.0  ;;  %v2172_v43 = vstv %s2103_s18  ;;  %v2181_v46 = vstv %s2109_s19  ;;  %v485_v47 = vadd.f32 %v2100_v14, %v470_v35 }
  0x49   : > { %v2134_v29 = vmul.f32 %v2107_v19, %v484_v23  ;;  %v2185_v49 = vstv %s2115_s20  ;;  %v2188_v50 = vstv %s2117_s21  ;;  %v471_v51 = vsel %vm448_vm6, %v440_v21, %v463_v36 }
  0x4a   : > { %v2194_v53 = vstv %s2129_s22  ;;  %v2197_v54 = vstv %s2131_s23  ;;  %v2211_v57 = vstv %s2149_s24  ;;  %v2234_v6 = vmul.f32 %v2107_v19, %v485_v47 }
  0x4b   : > { %vm504_vm2 = vcmp.gt.f32.partialorder %v2134_v29, %v2120_v25  ;;  %vm538_vm3 = vcmp.gt.f32.partialorder %v2134_v29, %v2123_v26  ;;  %vm572_vm4 = vcmp.gt.f32.partialorder %v2134_v29, %v2125_v27  ;;  %vm606_vm5 = vcmp.gt.f32.partialorder %v2134_v29, %v2127_v28 }
  0x4c   : > { %v1727_v39 = vsel %vm504_vm2, 1.0, %v1946_v38  ;;  %v1736_v40 = vsel %vm538_vm3, 1.0, %v1946_v38  ;;  %v1745_v41 = vsel %vm572_vm4, 1.0, %v1946_v38  ;;  %vm640_vm7 = vcmp.gt.f32.partialorder %v2134_v29, %v2145_v33 }
  0x4d   : > { %v562_v42 = vadd.f32 %v1736_v40, %v1727_v39  ;;  %v1754_v45 = vsel %vm606_vm5, 1.0, %v1946_v38  ;;  %vm674_vm8 = vcmp.gt.f32.partialorder %v2134_v29, %v2147_v34  ;;  %v1763_v52 = vsel %vm640_vm7, 1.0, %v1946_v38 }
  0x4e   : > { %vm708_vm9 = vcmp.gt.f32.partialorder %v2134_v29, %v2172_v43  ;;  %v1772_v56 = vsel %vm674_vm8, 1.0, %v1946_v38  ;;  %vm742_vm10 = vcmp.gt.f32.partialorder %v2134_v29, %v2181_v46  ;;  %vm776_vm11 = vcmp.gt.f32.partialorder %v2134_v29, %v2185_v49 }
  0x4f   : > { %v596_v48 = vadd.f32 %v1745_v41, %v562_v42  ;;  %vm810_vm12 = vcmp.gt.f32.partialorder %v2134_v29, %v2188_v50  ;;  %vm844_vm13 = vcmp.gt.f32.partialorder %v2134_v29, %v2194_v53  ;;  %v2214_v58 = vstv %s2151_s25 }
  0x50   : > { %vm878_vm14 = vcmp.gt.f32.partialorder %v2134_v29, %v2197_v54  ;;  %vm912_vm15 = vcmp.gt.f32.partialorder %v2134_v29, %v2211_v57  ;;  %vm946_vm0 = vcmp.gt.f32.partialorder %v2134_v29, %v2214_v58  ;;  %v1781_v60 = vsel %vm708_vm9, 1.0, %v1946_v38 }
  0x51   : > { %v630_v55 = vadd.f32 %v1754_v45, %v596_v48  ;;  %v1790_v61 = vsel %vm742_vm10, 1.0, %v1946_v38  ;;  %v1799_v62 = vsel %vm776_vm11, 1.0, %v1946_v38  ;;  %v2229_v63 = vstv %s2167_s26 }
  0x52   : > { %v1808_v1 = vsel %vm810_vm12, 1.0, %v1946_v38  ;;  %v1817_v4 = vsel %vm844_vm13, 1.0, %v1946_v38  ;;  %v1826_v7 = vsel %vm878_vm14, 1.0, %v1946_v38  ;;  %v1835_v8 = vsel %vm912_vm15, 1.0, %v1946_v38 }
  0x53   : > { %v664_v59 = vadd.f32 %v1763_v52, %v630_v55  ;;  %v1844_v9 = vsel %vm946_vm0, 1.0, %v1946_v38  ;;  %vm980_vm1 = vcmp.gt.f32.partialorder %v2134_v29, %v2229_v63  ;;  %vm449_vm2 = vcmp.gt.f32.partialorder %v2137_v30, 0.0 }
  0x54   : > { %vm505_vm3 = vcmp.gt.f32.partialorder %v2234_v6, %v2120_v25  ;;  %vm539_vm4 = vcmp.gt.f32.partialorder %v2234_v6, %v2123_v26  ;;  %vm573_vm5 = vcmp.gt.f32.partialorder %v2234_v6, %v2125_v27  ;;  %vm607_vm6 = vcmp.gt.f32.partialorder %v2234_v6, %v2127_v28 }
  0x55   : > { %v698_v0 = vadd.f32 %v1772_v56, %v664_v59  ;;  %v1728_v11 = vsel %vm505_vm3, 1.0, %v1946_v38  ;;  %v1737_v12 = vsel %vm539_vm4, 1.0, %v1946_v38  ;;  %v1746_v13 = vsel %vm573_vm5, 1.0, %v1946_v38 }
  0x56   : > { %v2254_v16 = vstv %s2204_s27  ;;  %v563_v17 = vadd.f32 %v1737_v12, %v1728_v11  ;;  %vm641_vm7 = vcmp.gt.f32.partialorder %v2234_v6, %v2145_v33  ;;  %v1853_v18 = vsel %vm980_vm1, 1.0, %v1946_v38 }
  0x57   : > { %v732_v10 = vadd.f32 %v1781_v60, %v698_v0  ;;  %v1755_v20 = vsel %vm607_vm6, 1.0, %v1946_v38  ;;  %vm675_vm8 = vcmp.gt.f32.partialorder %v2234_v6, %v2147_v34  ;;  %v486_v21 = vadd.f32 %v2100_v14, %v471_v51 }
  0x58   : > { %v597_v23 = vadd.f32 %v1746_v13, %v563_v17  ;;  %vm709_vm9 = vcmp.gt.f32.partialorder %v2234_v6, %v2172_v43  ;;  %vm743_vm10 = vcmp.gt.f32.partialorder %v2234_v6, %v2181_v46  ;;  %v1764_v29 = vsel %vm641_vm7, 1.0, %v1946_v38 }
  0x59   : > { %v766_v15 = vadd.f32 %v1790_v61, %v732_v10  ;;  %vm777_vm11 = vcmp.gt.f32.partialorder %v2234_v6, %v2185_v49  ;;  %vm811_vm12 = vcmp.gt.f32.partialorder %v2234_v6, %v2188_v50  ;;  %v464_v35 = vmul.f32 %v2083_v5, %v2137_v30 }
  0x5a   : > { %v631_v37 = vadd.f32 %v1755_v20, %v597_v23  ;;  %vm845_vm13 = vcmp.gt.f32.partialorder %v2234_v6, %v2194_v53  ;;  %v2278_v39 = vmul.f32 %v2083_v5, %v2140_v31  ;;  %v1773_v40 = vsel %vm675_vm8, 1.0, %v1946_v38 }
  0x5b   : > { %v800_v22 = vadd.f32 %v1799_v62, %v766_v15  ;;  %v1782_v41 = vsel %vm709_vm9, 1.0, %v1946_v38  ;;  %v1791_v42 = vsel %vm743_vm10, 1.0, %v1946_v38  ;;  %vm879_vm14 = vcmp.gt.f32.partialorder %v2234_v6, %v2197_v54 }
  0x5c   : > { %v665_v47 = vadd.f32 %v1764_v29, %v631_v37  ;;  %v1800_v48 = vsel %vm777_vm11, 1.0, %v1946_v38  ;;  %v1809_v51 = vsel %vm811_vm12, 1.0, %v1946_v38  ;;  %v1818_v52 = vsel %vm845_vm13, 1.0, %v1946_v38 }
  0x5d   : > { %v834_v36 = vadd.f32 %v1808_v1, %v800_v22  ;;  %vm913_vm15 = vcmp.gt.f32.partialorder %v2234_v6, %v2211_v57  ;;  %vm947_vm0 = vcmp.gt.f32.partialorder %v2234_v6, %v2214_v58  ;;  %v2293_v55 = vmul.f32 %v2107_v19, %v486_v21 }
  0x5e   : > { %v699_v59 = vadd.f32 %v1773_v40, %v665_v47  ;;  %v1827_v60 = vsel %vm879_vm14, 1.0, %v1946_v38  ;;  %v472_v61 = vsel %vm449_vm2, %v2137_v30, %v464_v35  ;;  %v1836_v30 = vsel %vm913_vm15, 1.0, %v1946_v38 }
  0x5f   : > { %v868_v45 = vadd.f32 %v1817_v4, %v834_v36  ;;  %vm506_vm1 = vcmp.gt.f32.partialorder %v2293_v55, %v2120_v25  ;;  %vm540_vm3 = vcmp.gt.f32.partialorder %v2293_v55, %v2123_v26  ;;  %vm574_vm4 = vcmp.gt.f32.partialorder %v2293_v55, %v2125_v27 }
  0x60   : > { %vm608_vm5 = vcmp.gt.f32.partialorder %v2293_v55, %v2127_v28  ;;  %v733_v0 = vadd.f32 %v1782_v41, %v699_v59  ;;  %v1729_v1 = vsel %vm506_vm1, 1.0, %v1946_v38  ;;  %v1738_v4 = vsel %vm540_vm3, 1.0, %v1946_v38 }
  0x61   : > { %v902_v56 = vadd.f32 %v1826_v7, %v868_v45  ;;  %v564_v7 = vadd.f32 %v1738_v4, %v1729_v1  ;;  %v1747_v10 = vsel %vm574_vm4, 1.0, %v1946_v38  ;;  %vm642_vm2 = vcmp.gt.f32.partialorder %v2293_v55, %v2145_v33 }
  0x62   : > { %v767_v12 = vadd.f32 %v1791_v42, %v733_v0  ;;  %v1756_v13 = vsel %vm608_vm5, 1.0, %v1946_v38  ;;  %vm981_vm6 = vcmp.gt.f32.partialorder %v2234_v6, %v2229_v63  ;;  %vm676_vm7 = vcmp.gt.f32.partialorder %v2293_v55, %v2147_v34 }
  0x63   : > { %v936_v62 = vadd.f32 %v1835_v8, %v902_v56  ;;  %v1845_v8 = vsel %vm947_vm0, 1.0, %v1946_v38  ;;  %v598_v15 = vadd.f32 %v1747_v10, %v564_v7  ;;  %v487_v17 = vadd.f32 %v2100_v14, %v472_v61 }
  0x64   : > { %v801_v21 = vadd.f32 %v1800_v48, %v767_v12  ;;  %vm710_vm8 = vcmp.gt.f32.partialorder %v2293_v55, %v2172_v43  ;;  %vm744_vm9 = vcmp.gt.f32.partialorder %v2293_v55, %v2181_v46  ;;  %vm778_vm10 = vcmp.gt.f32.partialorder %v2293_v55, %v2185_v49 }
  0x65   : > { %v970_v11 = vadd.f32 %v1844_v9, %v936_v62  ;;  %v1765_v9 = vsel %vm642_vm2, 1.0, %v1946_v38  ;;  %v632_v22 = vadd.f32 %v1756_v13, %v598_v15  ;;  %vm812_vm11 = vcmp.gt.f32.partialorder %v2293_v55, %v2188_v50 }
  0x66   : > { %vm450_vm12 = vcmp.gt.f32.partialorder %v2140_v31, 0.0  ;;  %v835_v23 = vadd.f32 %v1809_v51, %v801_v21  ;;  %v1774_v29 = vsel %vm676_vm7, 1.0, %v1946_v38  ;;  %vm846_vm13 = vcmp.gt.f32.partialorder %v2293_v55, %v2194_v53 }
  0x67   : > { %v1004_v20 = vadd.f32 %v1853_v18, %v970_v11  ;;  %v1854_v35 = vsel %vm981_vm6, 1.0, %v1946_v38  ;;  %v666_v36 = vadd.f32 %v1765_v9, %v632_v22  ;;  %v1783_v37 = vsel %vm710_vm8, 1.0, %v1946_v38 }
  0x68   : > { %vm880_vm14 = vcmp.gt.f32.partialorder %v2293_v55, %v2197_v54  ;;  %v869_v40 = vadd.f32 %v1818_v52, %v835_v23  ;;  %v1792_v41 = vsel %vm744_vm9, 1.0, %v1946_v38  ;;  %v1801_v42 = vsel %vm778_vm10, 1.0, %v1946_v38 }
  0x69   : > { %v1014_v18 = vmul.f32 %v2254_v16, %v1004_v20  ;;  %v1810_v45 = vsel %vm812_vm11, 1.0, %v1946_v38  ;;  %v700_v47 = vadd.f32 %v1774_v29, %v666_v36  ;;  %v1819_v48 = vsel %vm846_vm13, 1.0, %v1946_v38 }
  0x6a   : > { %vm914_vm15 = vcmp.gt.f32.partialorder %v2293_v55, %v2211_v57  ;;  %v497_v6 = vmul.f32 %v2107_v19, %v487_v17  ;;  %v903_v51 = vadd.f32 %v1827_v60, %v869_v40  ;;  %v1828_v56 = vsel %vm880_vm14, 1.0, %v1946_v38 }
  0x6b   : > { %1023 = vst [vmem:[#allocation2 + $0x11] sm:$0xff] %v1014_v18  ;;  %vm948_vm0 = vcmp.gt.f32.partialorder %v2293_v55, %v2214_v58  ;;  %vm982_vm1 = vcmp.gt.f32.partialorder %v2293_v55, %v2229_v63  ;;  %v734_v52 = vadd.f32 %v1783_v37, %v700_v47  ;;  %v1837_v7 = vsel %vm914_vm15, 1.0, %v1946_v38 }
  0x6c   : > { %vm507_vm3 = vcmp.gt.f32.partialorder %v497_v6, %v2120_v25  ;;  %vm541_vm4 = vcmp.gt.f32.partialorder %v497_v6, %v2123_v26  ;;  %vm575_vm5 = vcmp.gt.f32.partialorder %v497_v6, %v2125_v27  ;;  %v937_v59 = vadd.f32 %v1836_v30, %v903_v51 }
  0x6d   : > { %v1730_v61 = vsel %vm507_vm3, 1.0, %v1946_v38  ;;  %v1739_v60 = vsel %vm541_vm4, 1.0, %v1946_v38  ;;  %v1748_v62 = vsel %vm575_vm5, 1.0, %v1946_v38  ;;  %v768_v0 = vadd.f32 %v1792_v41, %v734_v52 }
  0x6e   : > { %v565_v1 = vadd.f32 %v1739_v60, %v1730_v61  ;;  %vm609_vm2 = vcmp.gt.f32.partialorder %v497_v6, %v2127_v28  ;;  %vm643_vm6 = vcmp.gt.f32.partialorder %v497_v6, %v2145_v33  ;;  %v971_v4 = vadd.f32 %v1845_v8, %v937_v59 }
  0x6f   : > { %v1846_v30 = vsel %vm948_vm0, 1.0, %v1946_v38  ;;  %v1757_v10 = vsel %vm609_vm2, 1.0, %v1946_v38  ;;  %v802_v11 = vadd.f32 %v1801_v42, %v768_v0  ;;  %v1855_v12 = vsel %vm982_vm1, 1.0, %v1946_v38  ;;  %v415_v42 = vld [vmem:[%s2053_s11 + $0x38] sm:$0xff] }
  0x70   : > { %v599_v13 = vadd.f32 %v1748_v62, %v565_v1  ;;  %vm677_vm7 = vcmp.gt.f32.partialorder %v497_v6, %v2147_v34  ;;  %v1005_v8 = vadd.f32 %v1854_v35, %v971_v4  ;;  %v1766_v15 = vsel %vm643_vm6, 1.0, %v1946_v38 }
  0x71   : > { %v473_v17 = vsel %vm450_vm12, %v2140_v31, %v2278_v39  ;;  %v443_v20 = vadd.f32 %v2077_v3, %v2143_v32  ;;  %v836_v21 = vadd.f32 %v1810_v45, %v802_v11  ;;  %vm711_vm8 = vcmp.gt.f32.partialorder %v497_v6, %v2172_v43 }
  0x72   : > { %v633_v9 = vadd.f32 %v1757_v10, %v599_v13  ;;  %vm745_vm9 = vcmp.gt.f32.partialorder %v497_v6, %v2181_v46  ;;  %v1015_v55 = vmul.f32 %v2254_v16, %v1005_v8  ;;  %v1775_v22 = vsel %vm677_vm7, 1.0, %v1946_v38 }
  0x73   : > { %vm779_vm10 = vcmp.gt.f32.partialorder %v497_v6, %v2185_v49  ;;  %vm813_vm11 = vcmp.gt.f32.partialorder %v497_v6, %v2188_v50  ;;  %v870_v18 = vadd.f32 %v1819_v48, %v836_v21  ;;  %vm847_vm12 = vcmp.gt.f32.partialorder %v497_v6, %v2194_v53 }
  0x74   : > { %v667_v23 = vadd.f32 %v1766_v15, %v633_v9  ;;  %vm881_vm13 = vcmp.gt.f32.partialorder %v497_v6, %v2197_v54  ;;  %1024 = vst [vmem:[#allocation2 + $0x21] sm:$0xff] %v1015_v55  ;;  %v1784_v31 = vsel %vm711_vm8, 1.0, %v1946_v38  ;;  %v1793_v32 = vsel %vm745_vm9, 1.0, %v1946_v38 }
  0x75   : > { %vm915_vm14 = vcmp.gt.f32.partialorder %v497_v6, %v2211_v57  ;;  %vm949_vm15 = vcmp.gt.f32.partialorder %v497_v6, %v2214_v58  ;;  %v904_v39 = vadd.f32 %v1828_v56, %v870_v18  ;;  %v1802_v35 = vsel %vm779_vm10, 1.0, %v1946_v38 }
  0x76   : > { %v701_v29 = vadd.f32 %v1775_v22, %v667_v23  ;;  %vm983_vm0 = vcmp.gt.f32.partialorder %v497_v6, %v2229_v63  ;;  %v1811_v36 = vsel %vm813_vm11, 1.0, %v1946_v38  ;;  %v1820_v37 = vsel %vm847_vm12, 1.0, %v1946_v38 }
  0x77   : > { %v1829_v40 = vsel %vm881_vm13, 1.0, %v1946_v38  ;;  %v488_v41 = vadd.f32 %v2100_v14, %v473_v17  ;;  %v938_v45 = vadd.f32 %v1837_v7, %v904_v39  ;;  %v1838_v48 = vsel %vm915_vm14, 1.0, %v1946_v38 }
  0x78   : > { %v735_v47 = vadd.f32 %v1784_v31, %v701_v29  ;;  %v1847_v51 = vsel %vm949_vm15, 1.0, %v1946_v38  ;;  %v1856_v56 = vsel %vm983_vm0, 1.0, %v1946_v38  ;;  %vm451_vm1 = vcmp.gt.f32.partialorder %v443_v20, 0.0 }
  0x79   : > { %v498_v52 = vmul.f32 %v2107_v19, %v488_v41  ;;  %v466_v6 = vmul.f32 %v2083_v5, %v443_v20  ;;  %v972_v59 = vadd.f32 %v1846_v30, %v938_v45  ;;  %v2411_v60 = vadd.f32 %v2077_v3, %v2175_v44 }
  0x7a   : > { %v769_v61 = vadd.f32 %v1793_v32, %v735_v47  ;;  %v2414_v62 = vmul.f32 %v2072_v2, %v415_v42  ;;  %v2431_v8 = vshrl.u32 %v1054_v24, 7 }
  0x7b   : > { %vm508_vm3 = vcmp.gt.f32.partialorder %v498_v52, %v2120_v25  ;;  %vm542_vm4 = vcmp.gt.f32.partialorder %v498_v52, %v2123_v26  ;;  %vm576_vm5 = vcmp.gt.f32.partialorder %v498_v52, %v2125_v27  ;;  %vm610_vm2 = vcmp.gt.f32.partialorder %v498_v52, %v2127_v28 }
  0x7c   : > { %v1006_v0 = vadd.f32 %v1855_v12, %v972_v59  ;;  %v803_v1 = vadd.f32 %v1802_v35, %v769_v61  ;;  %v1731_v4 = vsel %vm508_vm3, 1.0, %v1946_v38  ;;  %v1740_v7 = vsel %vm542_vm4, 1.0, %v1946_v38 }
  0x7d   : > { %v566_v30 = vadd.f32 %v1740_v7, %v1731_v4  ;;  %v1749_v44 = vsel %vm576_vm5, 1.0, %v1946_v38  ;;  %vm644_vm6 = vcmp.gt.f32.partialorder %v498_v52, %v2145_v33  ;;  %v474_v2 = vsel %vm451_vm1, %v443_v20, %v466_v6 }
  0x7e   : > { %v1016_v10 = vmul.f32 %v2254_v16, %v1006_v0  ;;  %v837_v11 = vadd.f32 %v1811_v36, %v803_v1  ;;  %v1758_v13 = vsel %vm610_vm2, 1.0, %v1946_v38  ;;  %vm678_vm7 = vcmp.gt.f32.partialorder %v498_v52, %v2147_v34 }
  0x7f   : > { %v600_v12 = vadd.f32 %v1749_v44, %v566_v30  ;;  %vm712_vm8 = vcmp.gt.f32.partialorder %v498_v52, %v2172_v43  ;;  %vm746_vm9 = vcmp.gt.f32.partialorder %v498_v52, %v2181_v46  ;;  %v1767_v17 = vsel %vm644_vm6, 1.0, %v1946_v38 }
  0x80   : > { %1025 = vst [vmem:[#allocation2 + $0x31] sm:$0xff] %v1016_v10  ;;  %v871_v15 = vadd.f32 %v1820_v37, %v837_v11  ;;  %vm780_vm10 = vcmp.gt.f32.partialorder %v498_v52, %v2185_v49  ;;  %v489_v20 = vadd.f32 %v2100_v14, %v474_v2  ;;  %v1776_v9 = vsel %vm678_vm7, 1.0, %v1946_v38 }
  0x81   : > { %v634_v21 = vadd.f32 %v1758_v13, %v600_v12  ;;  %vm814_vm11 = vcmp.gt.f32.partialorder %v498_v52, %v2188_v50  ;;  %vm848_vm12 = vcmp.gt.f32.partialorder %v498_v52, %v2194_v53  ;;  %v1785_v22 = vsel %vm712_vm8, 1.0, %v1946_v38 }
  0x82   : > { %v905_v55 = vadd.f32 %v1829_v40, %v871_v15  ;;  %v1794_v24 = vsel %vm746_vm9, 1.0, %v1946_v38  ;;  %vm882_vm13 = vcmp.gt.f32.partialorder %v498_v52, %v2197_v54  ;;  %v1803_v23 = vsel %vm780_vm10, 1.0, %v1946_v38 }
  0x83   : > { %v668_v18 = vadd.f32 %v1767_v17, %v634_v21  ;;  %vm916_vm14 = vcmp.gt.f32.partialorder %v498_v52, %v2211_v57  ;;  %vm950_vm15 = vcmp.gt.f32.partialorder %v498_v52, %v2214_v58  ;;  %v1812_v32 = vsel %vm814_vm11, 1.0, %v1946_v38 }
  0x84   : > { %v939_v31 = vadd.f32 %v1838_v48, %v905_v55  ;;  %v1821_v39 = vsel %vm848_vm12, 1.0, %v1946_v38  ;;  %vm984_vm0 = vcmp.gt.f32.partialorder %v498_v52, %v2229_v63  ;;  %v1830_v35 = vsel %vm882_vm13, 1.0, %v1946_v38 }
  0x85   : > { %v702_v29 = vadd.f32 %v1776_v9, %v668_v18  ;;  %v1839_v36 = vsel %vm916_vm14, 1.0, %v1946_v38  ;;  %v499_v37 = vmul.f32 %v2107_v19, %v489_v20  ;;  %vm452_vm1 = vcmp.gt.f32.partialorder %v2411_v60, 0.0  ;;  %v2500_v18 = vld [vmem:[%s3004_s5] sm:$0x7] }
  0x86   : > { %v973_v40 = vadd.f32 %v1847_v51, %v939_v31  ;;  %v1848_v41 = vsel %vm950_vm15, 1.0, %v1946_v38  ;;  %v2454_v42 = vsel %vm984_vm0, 1.0, %v1946_v38  ;;  %v467_v45 = vmul.f32 %v2083_v5, %v2411_v60 }
  0x87   : > { %v736_v47 = vadd.f32 %v1785_v22, %v702_v29  ;;  %vm509_vm3 = vcmp.gt.f32.partialorder %v499_v37, %v2120_v25  ;;  %vm543_vm4 = vcmp.gt.f32.partialorder %v499_v37, %v2123_v26  ;;  %vm577_vm5 = vcmp.gt.f32.partialorder %v499_v37, %v2125_v27 }
  0x88   : > { %v1007_v48 = vadd.f32 %v1856_v56, %v973_v40  ;;  %v1732_v52 = vsel %vm509_vm3, 1.0, %v1946_v38  ;;  %v1741_v51 = vsel %vm543_vm4, 1.0, %v1946_v38  ;;  %v1750_v6 = vsel %vm577_vm5, 1.0, %v1946_v38 }
  0x89   : > { %v770_v59 = vadd.f32 %v1794_v24, %v736_v47  ;;  %v567_v61 = vadd.f32 %v1741_v51, %v1732_v52  ;;  %vm611_vm2 = vcmp.gt.f32.partialorder %v499_v37, %v2127_v28  ;;  %vm645_vm6 = vcmp.gt.f32.partialorder %v499_v37, %v2145_v33 }
  0x8a   : > { %v1017_v0 = vmul.f32 %v2254_v16, %v1007_v48  ;;  %v1759_v1 = vsel %vm611_vm2, 1.0, %v1946_v38  ;;  %vm679_vm7 = vcmp.gt.f32.partialorder %v499_v37, %v2147_v34  ;;  %v445_v56 = vadd.f32 %v2077_v3, %v2414_v62 }
  0x8b   : > { %v804_v4 = vadd.f32 %v1803_v23, %v770_v59  ;;  %v601_v7 = vadd.f32 %v1750_v6, %v567_v61  ;;  %vm713_vm8 = vcmp.gt.f32.partialorder %v499_v37, %v2172_v43  ;;  %v2473_v30 = vsub.s32 0, %v2431_v8 }
  0x8c   : > { %1026 = vst [vmem:[#allocation2 + $0x41] sm:$0xff] %v1017_v0  ;;  %v1768_v44 = vsel %vm645_vm6, 1.0, %v1946_v38  ;;  %vm747_vm9 = vcmp.gt.f32.partialorder %v499_v37, %v2181_v46  ;;  %vm781_vm10 = vcmp.gt.f32.partialorder %v499_v37, %v2185_v49  ;;  %vm815_vm11 = vcmp.gt.f32.partialorder %v499_v37, %v2188_v50 }
  0x8d   : > { %v838_v2 = vadd.f32 %v1812_v32, %v804_v4  ;;  %v635_v10 = vadd.f32 %v1759_v1, %v601_v7  ;;  %v1777_v3 = vsel %vm679_vm7, 1.0, %v1946_v38  ;;  %v2481_v62 = vsub.s32 1, %v2431_v8 }
  0x8e   : > { %v1786_v11 = vsel %vm713_vm8, 1.0, %v1946_v38  ;;  %v1795_v13 = vsel %vm747_vm9, 1.0, %v1946_v38  ;;  %vm849_vm12 = vcmp.gt.f32.partialorder %v499_v37, %v2194_v53  ;;  %vm883_vm13 = vcmp.gt.f32.partialorder %v499_v37, %v2197_v54 }
  0x8f   : > { %v872_v12 = vadd.f32 %v1821_v39, %v838_v2  ;;  %v669_v15 = vadd.f32 %v1768_v44, %v635_v10  ;;  %v1804_v17 = vsel %vm781_vm10, 1.0, %v1946_v38  ;;  %v1813_v20 = vsel %vm815_vm11, 1.0, %v1946_v38 }
  0x90   : > { %v1822_v21 = vsel %vm849_vm12, 1.0, %v1946_v38  ;;  %vm917_vm14 = vcmp.gt.f32.partialorder %v499_v37, %v2211_v57  ;;  %vm951_vm15 = vcmp.gt.f32.partialorder %v499_v37, %v2214_v58  ;;  %v475_v9 = vsel %vm452_vm1, %v2411_v60, %v467_v45  ;;  %v2514_v45 = vld [vmem:[#allocation2] sm:$0xff] }
  0x91   : > { %v906_v55 = vadd.f32 %v1830_v35, %v872_v12  ;;  %v703_v22 = vadd.f32 %v1777_v3, %v669_v15  ;;  %v1831_v24 = vsel %vm883_vm13, 1.0, %v1946_v38  ;;  %vm985_vm0 = vcmp.gt.f32.partialorder %v499_v37, %v2229_v63 }
  0x92   : > { %v490_v23 = vadd.f32 %v2100_v14, %v475_v9  ;;  %vm453_vm3 = vcmp.gt.f32.partialorder %v445_v56, 0.0  ;;  %v468_v31 = vmul.f32 %v2083_v5, %v445_v56  ;;  %v2506_v32 = vrot.slane %v2500_v18, %v2473_v30 }
  0x93   : > { %v940_v60 = vadd.f32 %v1839_v36, %v906_v55  ;;  %v737_v39 = vadd.f32 %v1786_v11, %v703_v22  ;;  %v1840_v29 = vsel %vm917_vm14, 1.0, %v1946_v38  ;;  %v1849_v35 = vsel %vm951_vm15, 1.0, %v1946_v38 }
  0x94   : > { %v2511_v37 = vsel %vm985_vm0, 1.0, %v1946_v38  ;;  %v500_v40 = vmul.f32 %v2107_v19, %v490_v23  ;;  %v2518_v5 = vrot.slane %v2500_v18, %v2481_v62  ;;  %v2521_v47 = vsub.s32 2, %v2431_v8 }
  0x95   : > { %v974_v36 = vadd.f32 %v1848_v41, %v940_v60  ;;  %v771_v48 = vadd.f32 %v1795_v13, %v737_v39  ;;  %v476_v52 = vsel %vm453_vm3, %v445_v56, %v468_v31  ;;  %v2525_v51 = vmul.f32 %v2506_v32, %v2514_v45 }
  0x96   : > { %vm510_vm1 = vcmp.gt.f32.partialorder %v500_v40, %v2120_v25  ;;  %vm544_vm4 = vcmp.gt.f32.partialorder %v500_v40, %v2123_v26  ;;  %vm578_vm5 = vcmp.gt.f32.partialorder %v500_v40, %v2125_v27  ;;  %vm612_vm2 = vcmp.gt.f32.partialorder %v500_v40, %v2127_v28 }
  0x97   : > { %v1008_v6 = vadd.f32 %v2454_v42, %v974_v36  ;;  %v805_v59 = vadd.f32 %v1804_v17, %v771_v48  ;;  %v1733_v8 = vsel %vm510_vm1, 1.0, %v1946_v38  ;;  %v1742_v41 = vsel %vm544_vm4, 1.0, %v1946_v38 }
  0x98   : > { %v568_v61 = vadd.f32 %v1742_v41, %v1733_v8  ;;  %v1751_v0 = vsel %vm578_vm5, 1.0, %v1946_v38  ;;  %vm646_vm6 = vcmp.gt.f32.partialorder %v500_v40, %v2145_v33  ;;  %v491_v1 = vadd.f32 %v2100_v14, %v476_v52 }
  0x99   : > { %v1018_v56 = vmul.f32 %v2254_v16, %v1008_v6  ;;  %v839_v4 = vadd.f32 %v1813_v20, %v805_v59  ;;  %v1760_v7 = vsel %vm612_vm2, 1.0, %v1946_v38  ;;  %vm680_vm7 = vcmp.gt.f32.partialorder %v500_v40, %v2147_v34  ;;  %v1052_v59 = vld [vmem:[%s3004_s5 + $0x4] sm:$0x7] }
  0x9a   : > { %v602_v42 = vadd.f32 %v1751_v0, %v568_v61  ;;  %vm714_vm8 = vcmp.gt.f32.partialorder %v500_v40, %v2172_v43  ;;  %vm748_vm9 = vcmp.gt.f32.partialorder %v500_v40, %v2181_v46  ;;  %v2544_v44 = vmul.f32 %v2518_v5, %v2514_v45 }
  0x9b   : > { %1027 = vst [vmem:[#allocation2 + $0x51] sm:$0xff] %v1018_v56  ;;  %v873_v2 = vadd.f32 %v1822_v21, %v839_v4  ;;  %v1769_v14 = vsel %vm646_vm6, 1.0, %v1946_v38  ;;  %v1778_v10 = vsel %vm680_vm7, 1.0, %v1946_v38  ;;  %vm782_vm10 = vcmp.gt.f32.partialorder %v500_v40, %v2185_v49  ;;  %v2558_v21 = vld [vmem:[#allocation2 + $0x8] sm:$0x3] }
  0x9c   : > { %v636_v3 = vadd.f32 %v1760_v7, %v602_v42  ;;  %v1787_v11 = vsel %vm714_vm8, 1.0, %v1946_v38  ;;  %vm816_vm11 = vcmp.gt.f32.partialorder %v500_v40, %v2188_v50  ;;  %vm850_vm12 = vcmp.gt.f32.partialorder %v500_v40, %v2194_v53 }
  0x9d   : > { %v907_v13 = vadd.f32 %v1831_v24, %v873_v2  ;;  %v1796_v12 = vsel %vm748_vm9, 1.0, %v1946_v38  ;;  %v1805_v15 = vsel %vm782_vm10, 1.0, %v1946_v38  ;;  %vm884_vm13 = vcmp.gt.f32.partialorder %v500_v40, %v2197_v54 }
  0x9e   : > { %v670_v17 = vadd.f32 %v1769_v14, %v636_v3  ;;  %v1814_v20 = vsel %vm816_vm11, 1.0, %v1946_v38  ;;  %vm918_vm14 = vcmp.gt.f32.partialorder %v500_v40, %v2211_v57  ;;  %vm952_vm15 = vcmp.gt.f32.partialorder %v500_v40, %v2214_v58  ;;  %v1034_v14 = vld [vmem:[#allocation2 + $0x18] sm:$0x3] }
  0x9f   : > { %v941_v9 = vadd.f32 %v1840_v29, %v907_v13  ;;  %v1823_v55 = vsel %vm850_vm12, 1.0, %v1946_v38  ;;  %v1832_v22 = vsel %vm884_vm13, 1.0, %v1946_v38  ;;  %vm986_vm0 = vcmp.gt.f32.partialorder %v500_v40, %v2229_v63 }
  0xa0   : > { %v704_v24 = vadd.f32 %v1778_v10, %v670_v17  ;;  %v1841_v23 = vsel %vm918_vm14, 1.0, %v1946_v38  ;;  %v2565_v31 = vsel %vm952_vm15, 1.0, %v1946_v38  ;;  %v2568_v60 = vmul.f32 %v2107_v19, %v491_v1 }
  0xa1   : > { %v975_v39 = vadd.f32 %v1849_v35, %v941_v9  ;;  %v2571_v36 = vsel %vm986_vm0, 1.0, %v1946_v38  ;;  %v1079_v29 = vmul.f32 %v2518_v5, %v2558_v21  ;;  %v1111_v48 = vrot.slane %v2544_v44, 1 }
  0xa2   : > { %v738_v52 = vadd.f32 %v1787_v11, %v704_v24  ;;  %vm511_vm3 = vcmp.gt.f32.partialorder %v2568_v60, %v2120_v25  ;;  %vm545_vm1 = vcmp.gt.f32.partialorder %v2568_v60, %v2123_v26  ;;  %vm579_vm4 = vcmp.gt.f32.partialorder %v2568_v60, %v2125_v27 }
  0xa3   : > { %vm1110_vm5 = vcmask 1046528   ;;  %v1009_v19 = vadd.f32 %v2511_v37, %v975_v39  ;;  %v1734_v35 = vsel %vm511_vm3, 1.0, %v1946_v38  ;;  %v1743_v40 = vsel %vm545_vm1, 1.0, %v1946_v38 }
  0xa4   : > { %v1752_v6 = vsel %vm579_vm4, 1.0, %v1946_v38  ;;  %v772_v25 = vadd.f32 %v1796_v12, %v738_v52  ;;  %v569_v8 = vadd.f32 %v1743_v40, %v1734_v35  ;;  %vm613_vm2 = vcmp.gt.f32.partialorder %v2568_v60, %v2127_v28  ;;  %v1053_v12 = vld [vmem:[%s3004_s5 + $0x8] sm:$0x7] }
  0xa5   : > { %vm647_vm6 = vcmp.gt.f32.partialorder %v2568_v60, %v2145_v33  ;;  %v1019_v26 = vmul.f32 %v2254_v16, %v1009_v19  ;;  %v1761_v27 = vsel %vm613_vm2, 1.0, %v1946_v38  ;;  %vm681_vm7 = vcmp.gt.f32.partialorder %v2568_v60, %v2147_v34 }
  0xa6   : > { %v2599_v37 = vrot.slane %v2500_v18, %v2521_v47  ;;  %v806_v41 = vadd.f32 %v1805_v15, %v772_v25  ;;  %v603_v61 = vadd.f32 %v1752_v6, %v569_v8  ;;  %vm715_vm8 = vcmp.gt.f32.partialorder %v2568_v60, %v2172_v43 }
  0xa7   : > { %vm1187_vm9 = vcmask 1045504   ;;  %v2604_v28 = vrot.slane %v1052_v59, %v2473_v30  ;;  %1028 = vst [vmem:[#allocation2 + $0x61] sm:$0xff] %v1019_v26  ;;  %v1770_v33 = vsel %vm647_vm6, 1.0, %v1946_v38  ;;  %vm749_vm10 = vcmp.gt.f32.partialorder %v2568_v60, %v2181_v46 }
  0xa8   : > { %vm783_vm11 = vcmp.gt.f32.partialorder %v2568_v60, %v2185_v49  ;;  %vm817_vm12 = vcmp.gt.f32.partialorder %v2568_v60, %v2188_v50  ;;  %v840_v34 = vadd.f32 %v1814_v20, %v806_v41  ;;  %v637_v18 = vadd.f32 %v1761_v27, %v603_v61  ;;  %v2664_v27 = vld [vmem:[#allocation2 + $0x20] sm:$0xff]  ;;  %v2666_v41 = vld [vmem:[#allocation2 + $0x28] sm:$0x3] }
  0xa9   : > { %v1779_v43 = vsel %vm681_vm7, 1.0, %v1946_v38  ;;  %v1788_v0 = vsel %vm715_vm8, 1.0, %v1946_v38  ;;  %v1797_v1 = vsel %vm749_vm10, 1.0, %v1946_v38  ;;  %vm851_vm13 = vcmp.gt.f32.partialorder %v2568_v60, %v2194_v53 }
  0xaa   : > { %vm885_vm14 = vcmp.gt.f32.partialorder %v2568_v60, %v2197_v54  ;;  %vm919_vm15 = vcmp.gt.f32.partialorder %v2568_v60, %v2211_v57  ;;  %v874_v46 = vadd.f32 %v1823_v55, %v840_v34  ;;  %v671_v49 = vadd.f32 %v1770_v33, %v637_v18  ;;  %v1033_v57 = vld [vmem:[#allocation2 + $0x10] sm:$0xff] }
  0xab   : > { %v1806_v50 = vsel %vm783_vm11, 1.0, %v1946_v38  ;;  %v1815_v56 = vsel %vm817_vm12, 1.0, %v1946_v38  ;;  %v1824_v4 = vsel %vm851_vm13, 1.0, %v1946_v38  ;;  %v1833_v7 = vsel %vm885_vm14, 1.0, %v1946_v38 }
  0xac   : > { %vm953_vm0 = vcmp.gt.f32.partialorder %v2568_v60, %v2214_v58  ;;  %v1112_v53 = vrot.slane %v1079_v29, 1  ;;  %v908_v42 = vadd.f32 %v1832_v22, %v874_v46  ;;  %v705_v44 = vadd.f32 %v1779_v43, %v671_v49 }
  0xad   : > { %v1842_v54 = vsel %vm919_vm15, 1.0, %v1946_v38  ;;  %vm987_vm3 = vcmp.gt.f32.partialorder %v2568_v60, %v2229_v63  ;;  %v2632_v2 = vsel %vm953_vm0, 1.0, %v1946_v38  ;;  %v1155_v3 = vmul.f32 %v2599_v37, %v2514_v45 }
  0xae   : > { %v1113_v10 = vsel %vm1110_vm5, %v1111_v48, %v1112_v53  ;;  %v1156_v58 = vmul.f32 %v2599_v37, %v2558_v21  ;;  %v942_v11 = vadd.f32 %v1841_v23, %v908_v42  ;;  %v739_v13 = vadd.f32 %v1788_v0, %v705_v44 }
  0xaf   : > { %v1143_v15 = vadd.f32 %v1113_v10, %v2525_v51  ;;  %v2644_v17 = vrot.slane %v1052_v59, %v2481_v62  ;;  %v1188_v20 = vrot.slane %v1155_v3, 2  ;;  %v1232_v55 = vmul.f32 %v2604_v28, %v1033_v57 }
  0xb0   : > { %v1189_v9 = vrot.slane %v1156_v58, 2  ;;  %v2648_v45 = vrot.slane %v1052_v59, %v2521_v47  ;;  %v976_v21 = vadd.f32 %v2565_v31, %v942_v11  ;;  %v773_v22 = vadd.f32 %v1797_v1, %v739_v13 }
  0xb1   : > { %v1252_v24 = vmul.f32 %v2644_v17, %v1033_v57  ;;  %v1253_v23 = vmul.f32 %v2644_v17, %v1034_v14  ;;  %v2657_v48 = vrot.slane %v1053_v12, %v2473_v30  ;;  %v2661_v25 = vrot.slane %v1053_v12, %v2481_v62 }
  0xb2   : > { %v1190_v39 = vsel %vm1187_vm9, %v1188_v20, %v1189_v9  ;;  %v1328_v51 = vmul.f32 %v2648_v45, %v1033_v57  ;;  %v1329_v29 = vmul.f32 %v2648_v45, %v1034_v14  ;;  %v1010_v52 = vadd.f32 %v2571_v36, %v976_v21 }
  0xb3   : > { %v807_v19 = vadd.f32 %v1806_v50, %v773_v22  ;;  %v1220_v35 = vadd.f32 %v1190_v39, %v1143_v15  ;;  %v1284_v40 = vrot.slane %v1252_v24, 1  ;;  %v1285_v31 = vrot.slane %v1253_v23, 1 }
  0xb4   : > { %v1360_v6 = vrot.slane %v1328_v51, 2  ;;  %v1361_v59 = vrot.slane %v1329_v29, 2  ;;  %v1020_v8 = vmul.f32 %v2254_v16, %v1010_v52  ;;  %v2669_v61 = vrot.slane %v1053_v12, %v2521_v47  ;;  %v2706_v51 = vld [vmem:[#allocation2 + $0x30] sm:$0xff] }
  0xb5   : > { %v841_v26 = vadd.f32 %v1815_v56, %v807_v19  ;;  %v1240_v30 = vadd.f32 %v1232_v55, %v1220_v35  ;;  %v1860_v36 = vsel %vm987_vm3, 1.0, %v1946_v38  ;;  %v1286_v33 = vsel %vm1110_vm5, %v1284_v40, %v1285_v31  ;;  %v2712_v31 = vld [vmem:[#allocation2 + $0x38] sm:$0x3] }
  0xb6   : > { %v1424_v62 = vmul.f32 %v2661_v25, %v2664_v27  ;;  %v1425_v34 = vmul.f32 %v2661_v25, %v2666_v41  ;;  %1029 = vst [vmem:[#allocation2 + $0x71] sm:$0xff] %v1020_v8  ;;  %v1500_v47 = vmul.f32 %v2669_v61, %v2664_v27  ;;  %v1501_v0 = vmul.f32 %v2669_v61, %v2666_v41 }
  0xb7   : > { %v875_v18 = vadd.f32 %v1824_v4, %v841_v26  ;;  %v1316_v43 = vadd.f32 %v1286_v33, %v1240_v30  ;;  %v1362_v63 = vsel %vm1187_vm9, %v1360_v6, %v1361_v59  ;;  %v1080_v1 = vmul.f32 %v2518_v5, %v1033_v57 }
  0xb8   : > { %v1456_v38 = vrot.slane %v1424_v62, 1  ;;  %v1457_v60 = vrot.slane %v1425_v34, 1  ;;  %v1404_v50 = vmul.f32 %v2657_v48, %v2664_v27  ;;  %v1532_v56 = vrot.slane %v1500_v47, 2 }
  0xb9   : > { %v909_v46 = vadd.f32 %v1833_v7, %v875_v18  ;;  %v1392_v49 = vadd.f32 %v1362_v63, %v1316_v43  ;;  %v1533_v4 = vrot.slane %v1501_v0, 2  ;;  %v1081_v53 = vmul.f32 %v2518_v5, %v1034_v14 }
  0xba   : > { %v1114_v42 = vrot.slane %v1080_v1, 1  ;;  %v1157_v44 = vmul.f32 %v2599_v37, %v1033_v57  ;;  %v1059_v58 = vmul.f32 %v2506_v32, %v1033_v57  ;;  %v1158_v11 = vmul.f32 %v2599_v37, %v1034_v14 }
  0xbb   : > { %v943_v10 = vadd.f32 %v1842_v54, %v909_v46  ;;  %v1412_v3 = vadd.f32 %v1404_v50, %v1392_v49  ;;  %v1458_v13 = vsel %vm1110_vm5, %v1456_v38, %v1457_v60  ;;  %v1115_v7 = vrot.slane %v1081_v53, 1 }
  0xbc   : > { %v1191_v12 = vrot.slane %v1157_v44, 2  ;;  %v1254_v15 = vmul.f32 %v2644_v17, %v2664_v27  ;;  %v1192_v55 = vrot.slane %v1158_v11, 2  ;;  %v1255_v54 = vmul.f32 %v2644_v17, %v2666_v41 }
  0xbd   : > { %v977_v20 = vadd.f32 %v2632_v2, %v943_v10  ;;  %v1488_v9 = vadd.f32 %v1458_v13, %v1412_v3  ;;  %v1534_v21 = vsel %vm1187_vm9, %v1532_v56, %v1533_v4  ;;  %v1116_v57 = vsel %vm1110_vm5, %v1114_v42, %v1115_v7 }
  0xbe   : > { %v1330_v14 = vmul.f32 %v2648_v45, %v2664_v27  ;;  %v1331_v22 = vmul.f32 %v2648_v45, %v2666_v41  ;;  %v1144_v2 = vadd.f32 %v1116_v57, %v1059_v58  ;;  %v1287_v39 = vrot.slane %v1254_v15, 1  ;;  %v2750_v15 = vld [vmem:[#allocation2 + $0x40] sm:$0xff] }
  0xbf   : > { %v1011_v24 = vadd.f32 %v1860_v36, %v977_v20  ;;  %v2704_v23 = vadd.f32 %v1534_v21, %v1488_v9  ;;  %v1193_v29 = vsel %vm1187_vm9, %v1191_v12, %v1192_v55  ;;  %v1288_v52 = vrot.slane %v1255_v54, 1  ;;  %v2754_v21 = vld [vmem:[#allocation2 + $0x48] sm:$0x3] }
  0xc0   : > { %v1363_v19 = vrot.slane %v1330_v14, 2  ;;  %v1364_v35 = vrot.slane %v1331_v22, 2  ;;  %v1221_v6 = vadd.f32 %v1193_v29, %v1144_v2  ;;  %v1233_v59 = vmul.f32 %v2604_v28, %v2664_v27 }
  0xc1   : > { %v1021_v40 = vmul.f32 %v2254_v16, %v1011_v24  ;;  %1572 = vst [vmem:[%s2058_s16] sm:$0xff] %v2704_v23  ;;  %v1426_v8 = vmul.f32 %v2661_v25, %v2706_v51  ;;  %v1405_v26 = vmul.f32 %v2657_v48, %v2706_v51  ;;  %v1427_v30 = vmul.f32 %v2661_v25, %v2712_v31 }
  0xc2   : > { %v1502_v16 = vmul.f32 %v2669_v61, %v2706_v51  ;;  %v1241_v36 = vadd.f32 %v1233_v59, %v1221_v6  ;;  %v1289_v33 = vsel %vm1110_vm5, %v1287_v39, %v1288_v52  ;;  %v1503_v34 = vmul.f32 %v2669_v61, %v2712_v31 }
  0xc3   : > { %1030 = vst [vmem:[#allocation2 + $0x81] sm:$0xff] %v1021_v40  ;;  %v1459_v62 = vrot.slane %v1426_v8, 1  ;;  %v1365_v18 = vsel %vm1187_vm9, %v1363_v19, %v1364_v35  ;;  %v1460_v43 = vrot.slane %v1427_v30, 1  ;;  %v1082_v47 = vmul.f32 %v2518_v5, %v2664_v27 }
  0xc4   : > { %v1083_v0 = vmul.f32 %v2518_v5, %v2666_v41  ;;  %v1317_v63 = vadd.f32 %v1289_v33, %v1241_v36  ;;  %v1060_v38 = vmul.f32 %v2506_v32, %v2664_v27  ;;  %v1159_v60 = vmul.f32 %v2599_v37, %v2664_v27 }
  0xc5   : > { %v1160_v1 = vmul.f32 %v2599_v37, %v2666_v41  ;;  %v1535_v46 = vrot.slane %v1502_v16, 2  ;;  %v1536_v49 = vrot.slane %v1503_v34, 2  ;;  %v1117_v50 = vrot.slane %v1082_v47, 1 }
  0xc6   : > { %v1118_v56 = vrot.slane %v1083_v0, 1  ;;  %v1393_v4 = vadd.f32 %v1365_v18, %v1317_v63  ;;  %v1461_v53 = vsel %vm1110_vm5, %v1459_v62, %v1460_v43  ;;  %v1194_v42 = vrot.slane %v1159_v60, 2 }
  0xc7   : > { %v1195_v44 = vrot.slane %v1160_v1, 2  ;;  %v1256_v3 = vmul.f32 %v2644_v17, %v2706_v51  ;;  %v1257_v27 = vmul.f32 %v2644_v17, %v2712_v31  ;;  %v1332_v41 = vmul.f32 %v2648_v45, %v2706_v51 }
  0xc8   : > { %v1119_v10 = vsel %vm1110_vm5, %v1117_v50, %v1118_v56  ;;  %v1413_v58 = vadd.f32 %v1405_v26, %v1393_v4  ;;  %v1333_v7 = vmul.f32 %v2648_v45, %v2712_v31  ;;  %v1537_v12 = vsel %vm1187_vm9, %v1535_v46, %v1536_v49 }
  0xc9   : > { %v1145_v11 = vadd.f32 %v1119_v10, %v1060_v38  ;;  %v1196_v13 = vsel %vm1187_vm9, %v1194_v42, %v1195_v44  ;;  %v1234_v20 = vmul.f32 %v2604_v28, %v2706_v51  ;;  %v1290_v9 = vrot.slane %v1256_v3, 1  ;;  %v2795_v44 = vld [vmem:[#allocation2 + $0x50] sm:$0xff]  ;;  %v2797_v10 = vld [vmem:[#allocation2 + $0x58] sm:$0x3] }
  0xca   : > { %v1291_v55 = vrot.slane %v1257_v27, 1  ;;  %v1489_v54 = vadd.f32 %v1461_v53, %v1413_v58  ;;  %v1366_v14 = vrot.slane %v1332_v41, 2  ;;  %v1428_v22 = vmul.f32 %v2661_v25, %v2750_v15 }
  0xcb   : > { %v1222_v57 = vadd.f32 %v1196_v13, %v1145_v11  ;;  %v1367_v24 = vrot.slane %v1333_v7, 2  ;;  %v1429_v2 = vmul.f32 %v2661_v25, %v2754_v21  ;;  %v1504_v39 = vmul.f32 %v2669_v61, %v2750_v15 }
  0xcc   : > { %v1505_v29 = vmul.f32 %v2669_v61, %v2754_v21  ;;  %v2764_v52 = vadd.f32 %v1537_v12, %v1489_v54  ;;  %v1462_v35 = vrot.slane %v1428_v22, 1  ;;  %v1292_v40 = vsel %vm1110_vm5, %v1290_v9, %v1291_v55 }
  0xcd   : > { %v1242_v19 = vadd.f32 %v1234_v20, %v1222_v57  ;;  %v1463_v6 = vrot.slane %v1429_v2, 1  ;;  %v1538_v59 = vrot.slane %v1504_v39, 2  ;;  %v1406_v30 = vmul.f32 %v2657_v48, %v2750_v15 }
  0xce   : > { %v1539_v8 = vrot.slane %v1505_v29, 2  ;;  %1573 = vst [vmem:[%s2058_s16 + $0x8] sm:$0xff] %v2764_v52  ;;  %v1084_v16 = vmul.f32 %v2518_v5, %v2706_v51  ;;  %v1368_v36 = vsel %vm1187_vm9, %v1366_v14, %v1367_v24  ;;  %v1061_v33 = vmul.f32 %v2506_v32, %v2706_v51 }
  0xcf   : > { %v1318_v26 = vadd.f32 %v1292_v40, %v1242_v19  ;;  %v1085_v62 = vmul.f32 %v2518_v5, %v2712_v31  ;;  %v1161_v34 = vmul.f32 %v2599_v37, %v2706_v51  ;;  %v1464_v43 = vsel %vm1110_vm5, %v1462_v35, %v1463_v6 }
  0xd0   : > { %v1120_v47 = vrot.slane %v1084_v16, 1  ;;  %v1162_v0 = vmul.f32 %v2599_v37, %v2712_v31  ;;  %v1540_v63 = vsel %vm1187_vm9, %v1538_v59, %v1539_v8  ;;  %v1258_v1 = vmul.f32 %v2644_v17, %v2750_v15 }
  0xd1   : > { %v1394_v18 = vadd.f32 %v1368_v36, %v1318_v26  ;;  %v1121_v38 = vrot.slane %v1085_v62, 1  ;;  %v1197_v60 = vrot.slane %v1161_v34, 2  ;;  %v1259_v50 = vmul.f32 %v2644_v17, %v2754_v21 }
  0xd2   : > { %v1198_v49 = vrot.slane %v1162_v0, 2  ;;  %v1334_v51 = vmul.f32 %v2648_v45, %v2750_v15  ;;  %v1235_v31 = vmul.f32 %v2604_v28, %v2750_v15  ;;  %v1293_v4 = vrot.slane %v1258_v1, 1  ;;  %v2842_v1 = vld [vmem:[#allocation2 + $0x60] sm:$0xff] }
  0xd3   : > { %v1414_v46 = vadd.f32 %v1406_v30, %v1394_v18  ;;  %v1122_v56 = vsel %vm1110_vm5, %v1120_v47, %v1121_v38  ;;  %v1335_v53 = vmul.f32 %v2648_v45, %v2754_v21  ;;  %v1294_v41 = vrot.slane %v1259_v50, 1 }
  0xd4   : > { %v1146_v3 = vadd.f32 %v1122_v56, %v1061_v33  ;;  %v1199_v27 = vsel %vm1187_vm9, %v1197_v60, %v1198_v49  ;;  %v1369_v58 = vrot.slane %v1334_v51, 2  ;;  %v1430_v13 = vmul.f32 %v2661_v25, %v2795_v44 }
  0xd5   : > { %v1490_v42 = vadd.f32 %v1464_v43, %v1414_v46  ;;  %v1370_v11 = vrot.slane %v1335_v53, 2  ;;  %v1431_v7 = vmul.f32 %v2661_v25, %v2797_v10  ;;  %v1506_v9 = vmul.f32 %v2669_v61, %v2795_v44  ;;  %v2844_v46 = vld [vmem:[#allocation2 + $0x68] sm:$0x3] }
  0xd6   : > { %v1223_v20 = vadd.f32 %v1199_v27, %v1146_v3  ;;  %v1295_v55 = vsel %vm1110_vm5, %v1293_v4, %v1294_v41  ;;  %v1465_v54 = vrot.slane %v1430_v13, 1  ;;  %v1507_v14 = vmul.f32 %v2669_v61, %v2797_v10 }
  0xd7   : > { %v2804_v12 = vadd.f32 %v1540_v63, %v1490_v42  ;;  %v1466_v57 = vrot.slane %v1431_v7, 1  ;;  %v1587_v22 = vmul.f32 %v2704_v23, %v2704_v23  ;;  %v1588_v24 = vmul.f32 %v2764_v52, %v2764_v52 }
  0xd8   : > { %v1243_v2 = vadd.f32 %v1235_v31, %v1223_v20  ;;  %v1371_v39 = vsel %vm1187_vm9, %v1369_v58, %v1370_v11  ;;  %v1407_v29 = vmul.f32 %v2657_v48, %v2795_v44  ;;  %v1541_v19 = vrot.slane %v1506_v9, 2 }
  0xd9   : > { %1574 = vst [vmem:[%s2058_s16 + $0x10] sm:$0xff] %v2804_v12  ;;  %v1086_v35 = vmul.f32 %v2518_v5, %v2750_v15  ;;  %v1467_v6 = vsel %vm1110_vm5, %v1465_v54, %v1466_v57  ;;  %v1087_v59 = vmul.f32 %v2518_v5, %v2754_v21  ;;  %v1163_v8 = vmul.f32 %v2599_v37, %v2750_v15 }
  0xda   : > { %v1319_v40 = vadd.f32 %v1295_v55, %v1243_v2  ;;  %v1542_v26 = vrot.slane %v1507_v14, 2  ;;  %v1062_v30 = vmul.f32 %v2506_v32, %v2750_v15  ;;  %v1164_v36 = vmul.f32 %v2599_v37, %v2754_v21 }
  0xdb   : > { %v1123_v16 = vrot.slane %v1086_v35, 1  ;;  %v1124_v62 = vrot.slane %v1087_v59, 1  ;;  %v1200_v34 = vrot.slane %v1163_v8, 2  ;;  %v1260_v18 = vmul.f32 %v2644_v17, %v2795_v44 }
  0xdc   : > { %v1395_v33 = vadd.f32 %v1371_v39, %v1319_v40  ;;  %v1201_v43 = vrot.slane %v1164_v36, 2  ;;  %v1261_v47 = vmul.f32 %v2644_v17, %v2797_v10  ;;  %v1336_v0 = vmul.f32 %v2648_v45, %v2795_v44 }
  0xdd   : > { %v1337_v15 = vmul.f32 %v2648_v45, %v2797_v10  ;;  %v1125_v38 = vsel %vm1110_vm5, %v1123_v16, %v1124_v62  ;;  %v1236_v21 = vmul.f32 %v2604_v28, %v2795_v44  ;;  %v1296_v60 = vrot.slane %v1260_v18, 1 }
  0xde   : > { %v1415_v63 = vadd.f32 %v1407_v29, %v1395_v33  ;;  %v1147_v49 = vadd.f32 %v1125_v38, %v1062_v30  ;;  %v1202_v50 = vsel %vm1187_vm9, %v1200_v34, %v1201_v43  ;;  %v1297_v51 = vrot.slane %v1261_v47, 1  ;;  %v2890_v43 = vld [vmem:[#allocation2 + $0x70] sm:$0xff]  ;;  %v2892_v47 = vld [vmem:[#allocation2 + $0x78] sm:$0x3] }
  0xdf   : > { %v1372_v56 = vrot.slane %v1336_v0, 2  ;;  %v1373_v4 = vrot.slane %v1337_v15, 2  ;;  %v1432_v53 = vmul.f32 %v2661_v25, %v2842_v1  ;;  %v1433_v42 = vmul.f32 %v2661_v25, %v2844_v46 }
  0xe0   : > { %v1491_v31 = vadd.f32 %v1467_v6, %v1415_v63  ;;  %v1543_v3 = vsel %vm1187_vm9, %v1541_v19, %v1542_v26  ;;  %v1224_v27 = vadd.f32 %v1202_v50, %v1147_v49  ;;  %v1508_v41 = vmul.f32 %v2669_v61, %v2842_v1 }
  0xe1   : > { %v1509_v58 = vmul.f32 %v2669_v61, %v2844_v46  ;;  %v1298_v13 = vsel %vm1110_vm5, %v1296_v60, %v1297_v51  ;;  %v1468_v7 = vrot.slane %v1432_v53, 1  ;;  %v1469_v20 = vrot.slane %v1433_v42, 1 }
  0xe2   : > { %v2856_v11 = vadd.f32 %v1543_v3, %v1491_v31  ;;  %v1580_v9 = vadd.f32 %v2764_v52, %v2704_v23  ;;  %v1595_v55 = vadd.f32 %v1588_v24, %v1587_v22  ;;  %v1589_v54 = vmul.f32 %v2804_v12, %v2804_v12 }
  0xe3   : > { %v1244_v57 = vadd.f32 %v1236_v21, %v1224_v27  ;;  %v1374_v14 = vsel %vm1187_vm9, %v1372_v56, %v1373_v4  ;;  %v1408_v2 = vmul.f32 %v2657_v48, %v2842_v1  ;;  %v1544_v39 = vrot.slane %v1508_v41, 2 }
  0xe4   : > { %1575 = vst [vmem:[%s2058_s16 + $0x18] sm:$0xff] %v2856_v11  ;;  %v1088_v29 = vmul.f32 %v2518_v5, %v2795_v44  ;;  %v1545_v35 = vrot.slane %v1509_v58, 2  ;;  %v1089_v23 = vmul.f32 %v2518_v5, %v2797_v10  ;;  %v1165_v52 = vmul.f32 %v2599_v37, %v2795_v44 }
  0xe5   : > { %v1320_v19 = vadd.f32 %v1298_v13, %v1244_v57  ;;  %v1470_v22 = vsel %vm1110_vm5, %v1468_v7, %v1469_v20  ;;  %v1063_v24 = vmul.f32 %v2506_v32, %v2795_v44  ;;  %v1166_v6 = vmul.f32 %v2599_v37, %v2797_v10 }
  0xe6   : > { %v1126_v40 = vrot.slane %v1088_v29, 1  ;;  %v1127_v8 = vrot.slane %v1089_v23, 1  ;;  %v1203_v26 = vrot.slane %v1165_v52, 2  ;;  %v1262_v30 = vmul.f32 %v2644_v17, %v2842_v1 }
  0xe7   : > { %v1396_v59 = vadd.f32 %v1374_v14, %v1320_v19  ;;  %v1204_v16 = vrot.slane %v1166_v6, 2  ;;  %v1263_v36 = vmul.f32 %v2644_v17, %v2844_v46  ;;  %v1338_v33 = vmul.f32 %v2648_v45, %v2842_v1 }
  0xe8   : > { %v1339_v44 = vmul.f32 %v2648_v45, %v2844_v46  ;;  %v1128_v34 = vsel %vm1110_vm5, %v1126_v40, %v1127_v8  ;;  %v1237_v10 = vmul.f32 %v2604_v28, %v2842_v1  ;;  %v1299_v18 = vrot.slane %v1262_v30, 1  ;;  %v1048_v40 = vld [vmem:[#allocation2 + $0x88] sm:$0x3] }
  0xe9   : > { %v1416_v62 = vadd.f32 %v1408_v2, %v1396_v59  ;;  %v1148_v0 = vadd.f32 %v1128_v34, %v1063_v24  ;;  %v1205_v15 = vsel %vm1187_vm9, %v1203_v26, %v1204_v16  ;;  %v1300_v63 = vrot.slane %v1263_v36, 1  ;;  %v1047_v24 = vld [vmem:[#allocation2 + $0x80] sm:$0xff] }
  0xea   : > { %v1375_v38 = vrot.slane %v1338_v33, 2  ;;  %v1376_v60 = vrot.slane %v1339_v44, 2  ;;  %v1434_v49 = vmul.f32 %v2661_v25, %v2890_v43  ;;  %v1435_v50 = vmul.f32 %v2661_v25, %v2892_v47 }
  0xeb   : > { %v1492_v21 = vadd.f32 %v1470_v22, %v1416_v62  ;;  %v1546_v51 = vsel %vm1187_vm9, %v1544_v39, %v1545_v35  ;;  %v1225_v56 = vadd.f32 %v1205_v15, %v1148_v0  ;;  %v1510_v31 = vmul.f32 %v2669_v61, %v2890_v43 }
  0xec   : > { %v1511_v4 = vmul.f32 %v2669_v61, %v2892_v47  ;;  %v1301_v42 = vsel %vm1110_vm5, %v1299_v18, %v1300_v63  ;;  %v1471_v3 = vrot.slane %v1434_v49, 1  ;;  %v1472_v27 = vrot.slane %v1435_v50, 1 }
  0xed   : > { %v2904_v53 = vadd.f32 %v1546_v51, %v1492_v21  ;;  %v1581_v41 = vadd.f32 %v1580_v9, %v2804_v12  ;;  %v2908_v58 = vadd.f32 %v1595_v55, %v1589_v54  ;;  %v1245_v13 = vadd.f32 %v1237_v10, %v1225_v56 }
  0xee   : > { %v1377_v7 = vsel %vm1187_vm9, %v1375_v38, %v1376_v60  ;;  %v1409_v20 = vmul.f32 %v2657_v48, %v2890_v43  ;;  %v1547_v57 = vrot.slane %v1510_v31, 2  ;;  %v1090_v14 = vmul.f32 %v2518_v5, %v2842_v1 }
  0xef   : > { %1576 = vst [vmem:[%s2058_s16 + $0x20] sm:$0xff] %v2904_v53  ;;  %v1321_v2 = vadd.f32 %v1301_v42, %v1245_v13  ;;  %v1548_v39 = vrot.slane %v1511_v4, 2  ;;  %v1091_v29 = vmul.f32 %v2518_v5, %v2844_v46  ;;  %v1167_v12 = vmul.f32 %v2599_v37, %v2842_v1 }
  0xf0   : > { %v1473_v9 = vsel %vm1110_vm5, %v1471_v3, %v1472_v27  ;;  %v1064_v55 = vmul.f32 %v2506_v32, %v2842_v1  ;;  %v1129_v54 = vrot.slane %v1090_v14, 1  ;;  %v1168_v19 = vmul.f32 %v2599_v37, %v2844_v46 }
  0xf1   : > { %v1397_v35 = vadd.f32 %v1377_v7, %v1321_v2  ;;  %v1130_v23 = vrot.slane %v1091_v29, 1  ;;  %v1206_v52 = vrot.slane %v1167_v12, 2  ;;  %v1264_v22 = vmul.f32 %v2644_v17, %v2890_v43 }
  0xf2   : > { %v1207_v6 = vrot.slane %v1168_v19, 2  ;;  %v1265_v59 = vmul.f32 %v2644_v17, %v2892_v47  ;;  %v1340_v8 = vmul.f32 %v2648_v45, %v2890_v43  ;;  %v1341_v1 = vmul.f32 %v2648_v45, %v2892_v47  ;;  %v1050_v19 = vld [vmem:[#allocation2 + $0x98] sm:$0x3] }
  0xf3   : > { %v1417_v26 = vadd.f32 %v1409_v20, %v1397_v35  ;;  %v1131_v46 = vsel %vm1110_vm5, %v1129_v54, %v1130_v23  ;;  %v1238_v30 = vmul.f32 %v2604_v28, %v2890_v43  ;;  %v1302_v16 = vrot.slane %v1264_v22, 1 }
  0xf4   : > { %v1149_v36 = vadd.f32 %v1131_v46, %v1064_v55  ;;  %v1208_v33 = vsel %vm1187_vm9, %v1206_v52, %v1207_v6  ;;  %v1303_v44 = vrot.slane %v1265_v59, 1  ;;  %v1378_v62 = vrot.slane %v1340_v8, 2 }
  0xf5   : > { %v1493_v34 = vadd.f32 %v1473_v9, %v1417_v26  ;;  %v1379_v10 = vrot.slane %v1341_v1, 2  ;;  %v1436_v18 = vmul.f32 %v2661_v25, %v1047_v24  ;;  %v1437_v0 = vmul.f32 %v2661_v25, %v1048_v40 }
  0xf6   : > { %v1549_v15 = vsel %vm1187_vm9, %v1547_v57, %v1548_v39  ;;  %v1226_v63 = vadd.f32 %v1208_v33, %v1149_v36  ;;  %v1512_v38 = vmul.f32 %v2669_v61, %v1047_v24  ;;  %v1513_v21 = vmul.f32 %v2669_v61, %v1048_v40 }
  0xf7   : > { %v1569_v60 = vadd.f32 %v1549_v15, %v1493_v34  ;;  %v1304_v49 = vsel %vm1110_vm5, %v1302_v16, %v1303_v44  ;;  %v1474_v50 = vrot.slane %v1436_v18, 1  ;;  %v1475_v51 = vrot.slane %v1437_v0, 1 }
  0xf8   : > { %v1582_v56 = vadd.f32 %v1581_v41, %v2856_v11  ;;  %v1246_v31 = vadd.f32 %v1238_v30, %v1226_v63  ;;  %v1550_v4 = vrot.slane %v1512_v38, 2  ;;  %v1551_v42 = vrot.slane %v1513_v21, 2 }
  0xf9   : > { %v1590_v3 = vmul.f32 %v2856_v11, %v2856_v11  ;;  %1577 = vst [vmem:[%s2058_s16 + $0x28] sm:$0xff] %v1569_v60  ;;  %v1380_v27 = vsel %vm1187_vm9, %v1378_v62, %v1379_v10  ;;  %v1410_v13 = vmul.f32 %v2657_v48, %v1047_v24  ;;  %v1092_v7 = vmul.f32 %v2518_v5, %v2890_v43 }
  0xfa   : > { %v1322_v20 = vadd.f32 %v1304_v49, %v1246_v31  ;;  %v1065_v57 = vmul.f32 %v2506_v32, %v2890_v43  ;;  %v1093_v41 = vmul.f32 %v2518_v5, %v2892_v47  ;;  %v1169_v14 = vmul.f32 %v2599_v37, %v2890_v43  ;;  %v1049_v32 = vld [vmem:[#allocation2 + $0x90] sm:$0xff] }
  0xfb   : > { %v1476_v11 = vsel %vm1110_vm5, %v1474_v50, %v1475_v51  ;;  %v1552_v2 = vsel %vm1187_vm9, %v1550_v4, %v1551_v42  ;;  %v1132_v39 = vrot.slane %v1092_v7, 1  ;;  %v1170_v29 = vmul.f32 %v2599_v37, %v2892_v47 }
  0xfc   : > { %v1398_v12 = vadd.f32 %v1380_v27, %v1322_v20  ;;  %v1133_v9 = vrot.slane %v1093_v41, 1  ;;  %v1209_v55 = vrot.slane %v1169_v14, 2  ;;  %v1266_v54 = vmul.f32 %v2644_v17, %v1047_v24 }
  0xfd   : > { %v1210_v35 = vrot.slane %v1170_v29, 2  ;;  %v1267_v5 = vmul.f32 %v2644_v17, %v1048_v40  ;;  %v1342_v43 = vmul.f32 %v2648_v45, %v1047_v24  ;;  %v1343_v23 = vmul.f32 %v2648_v45, %v1048_v40  ;;  %v1602_v29 = vld [vmem:[%s3008_s9] sm:$0x1] }
  0xfe   : > { %v1418_v52 = vadd.f32 %v1410_v13, %v1398_v12  ;;  %v1134_v22 = vsel %vm1110_vm5, %v1132_v39, %v1133_v9  ;;  %v1239_v6 = vmul.f32 %v2604_v28, %v1047_v24  ;;  %v1305_v37 = vrot.slane %v1266_v54, 1 }
  0xff   : > { %v1150_v47 = vadd.f32 %v1134_v22, %v1065_v57  ;;  %v1211_v59 = vsel %vm1187_vm9, %v1209_v55, %v1210_v35  ;;  %v1306_v8 = vrot.slane %v1267_v5, 1  ;;  %v1381_v1 = vrot.slane %v1342_v43, 2  ;;  %v1611_v55 = vld [vmem:[%s3009_s10] sm:$0x1] }
 0x100   : > { %v1494_v26 = vadd.f32 %v1476_v11, %v1418_v52  ;;  %v1382_v46 = vrot.slane %v1343_v23, 2  ;;  %v1438_v17 = vmul.f32 %v2661_v25, %v1049_v32  ;;  %v1439_v30 = vmul.f32 %v2661_v25, %v1050_v19 }
 0x101   : > { %v1597_v45 = vadd.f32 %v2908_v58, %v1590_v3  ;;  %v1227_v40 = vadd.f32 %v1211_v59, %v1150_v47  ;;  %v1307_v36 = vsel %vm1110_vm5, %v1305_v37, %v1306_v8  ;;  %v1514_v28 = vmul.f32 %v2669_v61, %v1049_v32 }
 0x102   : > { %v1570_v16 = vadd.f32 %v1552_v2, %v1494_v26  ;;  %v1515_v24 = vmul.f32 %v2669_v61, %v1050_v19  ;;  %v1583_v33 = vadd.f32 %v1582_v56, %v2904_v53  ;;  %v1591_v44 = vmul.f32 %v2904_v53, %v2904_v53 }
 0x103   : > { %v1247_v62 = vadd.f32 %v1239_v6, %v1227_v40  ;;  %v1383_v34 = vsel %vm1187_vm9, %v1381_v1, %v1382_v46  ;;  %v1477_v25 = vrot.slane %v1438_v17, 1  ;;  %v1478_v10 = vrot.slane %v1439_v30, 1 }
 0x104   : > { %1578 = vst [vmem:[%s2058_s16 + $0x30] sm:$0xff] %v1570_v16  ;;  %v1598_v58 = vadd.f32 %v1597_v45, %v1591_v44  ;;  %v1411_v0 = vmul.f32 %v2657_v48, %v1049_v32  ;;  %v1553_v15 = vrot.slane %v1514_v28, 2  ;;  %v1554_v63 = vrot.slane %v1515_v24, 2 }
 0x105   : > { %v1323_v18 = vadd.f32 %v1307_v36, %v1247_v62  ;;  %v1584_v38 = vadd.f32 %v1583_v33, %v1569_v60  ;;  %v1592_v61 = vmul.f32 %v1569_v60, %v1569_v60  ;;  %v1479_v49 = vsel %vm1110_vm5, %v1477_v25, %v1478_v10 }
 0x106   : > { %v1555_v51 = vsel %vm1187_vm9, %v1553_v15, %v1554_v63  ;;  %v1593_v31 = vmul.f32 %v1570_v16, %v1570_v16 }
 0x107   : > { %v1399_v21 = vadd.f32 %v1383_v34, %v1323_v18  ;;  %v1599_v50 = vadd.f32 %v1598_v58, %v1592_v61  ;;  %v1585_v56 = vadd.f32 %v1584_v38, %v1570_v16 }
 0x109   : > { %v1419_v53 = vadd.f32 %v1411_v0, %v1399_v21  ;;  %v1600_v42 = vadd.f32 %v1599_v50, %v1593_v31 }
 0x10b   : > { %v1495_v4 = vadd.f32 %v1479_v49, %v1419_v53 }
 0x10d   : > { %v1571_v3 = vadd.f32 %v1555_v51, %v1495_v4 }
 0x10f   : > { %1579 = vst [vmem:[%s2058_s16 + $0x38] sm:$0xff] %v1571_v3  ;;  %v1586_v27 = vadd.f32 %v1585_v56, %v1571_v3  ;;  %v1594_v13 = vmul.f32 %v1571_v3, %v1571_v3 }
 0x111   : > { %v1603_v48 = vrot.slane %v1586_v27, 4  ;;  %v1601_v7 = vadd.f32 %v1600_v42, %v1594_v13 }
 0x113   : > { %v1604_v20 = vadd.f32 %v1603_v48, %v1586_v27  ;;  %v1612_v57 = vrot.slane %v1601_v7, 4 }
 0x115   : > { %v1605_v60 = vrot.slane %v1604_v20, 2  ;;  %v1613_v41 = vadd.f32 %v1612_v57, %v1601_v7 }
 0x117   : > { %v1606_v14 = vadd.f32 %v1605_v60, %v1604_v20  ;;  %v1614_v11 = vrot.slane %v1613_v41, 2 }
 0x119   : > { %v1607_v2 = vrot.slane %v1606_v14, 1  ;;  %v1615_v39 = vadd.f32 %v1614_v11, %v1613_v41 }
 0x11b   : > { %v1608_v12 = vadd.f32 %v1607_v2, %v1606_v14  ;;  %v1616_v9 = vrot.slane %v1615_v39, 1 }
 0x11d   : > { %v1609_v54 = vadd.f32 %v1608_v12, %v1602_v29  ;;  %v1617_v32 = vadd.f32 %v1616_v9, %v1615_v39 }
 0x11f   : > { %1610 = vst [vmem:[%s3008_s9] sm:$0x1] %v1609_v54  ;;  %v1618_v19 = vadd.f32 %v1617_v32, %v1611_v55 }
 0x121   : > { %1619 = vst [vmem:[%s3009_s10] sm:$0x1] %v1618_v19 }
 0x122 PF: > { %s23_s13 = sadd.s32 1, %s1941_s13  }
 0x123   : > { %p20_p6 = scmp.ge.s32.totalorder %s23_s13, 4  }
 0x125   :  { %22 = sbr.rel (!%p20_p6) target bundleno = 2 (0x2), region = 112 }
 0x12c   :  { %1653 = vsyncpa [#allocation4], 1 }
 0x12d   :  { %1655 = vsyncpa [#allocation4 + $0x1], 1 }
 0x12e   :  { %1656 = vsyncpa [#allocation6], 1 }

// kernel: bottleneck_forward.4
= control target key start
LH: loop header
LB: loop body
LE: loop exit
PB: predicated region body
PF: predicated region fallthrough
CT: control target
= control target key end

     0   :  { %16 = vsyncpa [#allocation3], 0  ;;  %s3399_s0 = inlined_call_operand.vmem [shape: f32[128,128], index: 0, kind: input, shape index: {}]   ;;  %s3400_s1 = inlined_call_operand.vmem [shape: f32[1,128], index: 1, kind: input, shape index: {}]   ;;  %s3401_s2 = inlined_call_operand.vmem [shape: f32[1,128], index: 2, kind: input, shape index: {}]   ;;  %s3402_s3 = inlined_call_operand.vmem [shape: f32[1,128], index: 3, kind: input, shape index: {}]   ;;  %s3403_s4 = inlined_call_operand.vmem [shape: f32[1,128], index: 4, kind: input, shape index: {}]   ;;  %s3404_s5 = inlined_call_operand.vmem [shape: f32[128,128], index: 5, kind: input, shape index: {}]   ;;  %s3405_s6 = inlined_call_operand.vmem [shape: f32[15], index: 6, kind: input, shape index: {}]   ;;  %s3406_s7 = inlined_call_operand.vmem [shape: f32[2], index: 7, kind: input, shape index: {}]   ;;  %s3407_s8 = inlined_call_operand.vmem [shape: f32[128,128], index: 8, kind: output, shape index: {0}]   ;;  %s3408_s9 = inlined_call_operand.vmem [shape: f32[1,128], index: 9, kind: output, shape index: {1}]   ;;  %s3409_s10 = inlined_call_operand.vmem [shape: f32[1,128], index: 10, kind: output, shape index: {2}]  }
   0x1   :  { %s36_s15 = sshll.u32 %s3405_s6, 4  ;;  %s37_s15 = int_to_ptr.vmem [resolvable:$true] %s36_s15 }
   0x2   :  { %17 = vsyncpa [#allocation5], 0  ;;  %s46_s18 = sshll.u32 %s3406_s7, 4  ;;  %s1985_s19 = scalar_lea.vmem %s37_s15, 16  ;;  %s47_s18 = int_to_ptr.vmem [resolvable:$true] %s46_s18 }
   0x3   :  { %p1986_p0 = scmp.ne.s32.totalorder %s37_s15, %s1985_s19  ;;  %p1990_p1 = scmp.lt.s32.totalorder %s37_s15, %s37_s15 }
   0x4   :  { %p1991_p2 = scmp.lt.s32.totalorder %s1985_s19, %s1985_s19 }
   0x6   :  { %p1992_p3 = por %p1991_p2, %p1990_p1 }
   0x8   :  { %p1993_p4 = pnand %p1992_p3, %p1986_p0 }
   0xa   :  { %1996 = shalt.err (!%p1993_p4)
}
   0xb   :  { %s2013_s20 = smov [#allocation2]   ;;  %s1997_s21 = scalar_lea.vmem %s47_s18, 16 }
   0xc   :  { %39 = dma.vmem_to_smem %s37_s15, 16, %s2013_s20, [#allocation3]  }
   0xd   :  { %p1998_p5 = scmp.ne.s32.totalorder %s47_s18, %s1997_s21  ;;  %p2002_p6 = scmp.lt.s32.totalorder %s47_s18, %s47_s18 }
   0xe   :  { %p2003_p7 = scmp.lt.s32.totalorder %s1997_s21, %s1997_s21 }
  0x10   :  { %p2004_p8 = por %p2003_p7, %p2002_p6 }
  0x12   :  { %p2005_p9 = pnand %p2004_p8, %p1998_p5 }
  0x14   :  { %2008 = shalt.err (!%p2005_p9)
}
  0x15   :  { %s2014_s6 = smov [#allocation4]  }
  0x16   :  { %49 = dma.vmem_to_smem %s47_s18, 16, %s2014_s6, [#allocation5]  }
  0x17   :  { %2009 = dma.done.wait [#allocation3], 16  }
  0x18   :  { %2010 = vsyncadd [#allocation3], 4294967280 }
  0x19   :  { %2011 = dma.done.wait [#allocation5], 16  }
  0x1a   :  { %2012 = vsyncadd [#allocation5], 4294967280 }
  0x1b   :  { %56 = sfence }
  0x1c   :  { %v1229_v0 = vld [vmem:[%s3404_s5] sm:$0xff]  ;;  %v1230_v1 = vld [vmem:[%s3404_s5 + $0x8] sm:$0xff]  ;;  %v1231_v2 = vld [vmem:[%s3404_s5 + $0x10] sm:$0xff]  ;;  %v2015_v5 = vmov 0.0   ;;  %s2106_s19 = sld [smem:[#allocation4]]  ;;  %s2127_s27 = sld [smem:[#allocation2 + $0x1]] }
  0x1d   :  { %v1930_v3 = vpack.c.bf16 %v1230_v1, %v1229_v0  ;;  %v1232_v4 = vld [vmem:[%s3404_s5 + $0x18] sm:$0xff]  ;;  %61 = vst [vmem:[%s3408_s9] sm:$0x1] %v2015_v5  ;;  %62 = vst [vmem:[%s3409_s10] sm:$0x1] %v2015_v5  ;;  %v1233_v7 = vld [vmem:[%s3404_s5 + $0x20] sm:$0xff]  ;;  %s2119_s24 = sld [smem:[#allocation2]]  ;;  %s2129_s28 = sld [smem:[#allocation2 + $0x2]] }
  0x1e   :  { %v1934_v6 = vpack.c.bf16 %v1232_v4, %v1231_v2  ;;  %v1234_v8 = vld [vmem:[%s3404_s5 + $0x28] sm:$0xff]  ;;  %v1235_v9 = vld [vmem:[%s3404_s5 + $0x30] sm:$0xff]  ;;  %v1236_v11 = vld [vmem:[%s3404_s5 + $0x38] sm:$0xff]  ;;  %s2136_s11 = sld [smem:[#allocation2 + $0x3]]  ;;  %s2151_s21 = sld [smem:[#allocation2 + $0x4]] }
  0x1f   :  { %1931 = vmatprep.subr.bf16.mxu0 %v1930_v3  ;;  %1962 = vmatprep.subr.bf16.mxu1 %v1930_v3  ;;  %v1938_v10 = vpack.c.bf16 %v1234_v8, %v1233_v7  ;;  %v63_v12 = vld [vmem:[%s3399_s0] sm:$0xff]  ;;  %v64_v17 = vld [vmem:[%s3399_s0 + $0x8] sm:$0xff]  ;;  %v1239_v20 = vld [vmem:[%s3404_s5 + $0x50] sm:$0xff]  ;;  %v1942_v23 = vpack.c.bf16 %v1236_v11, %v1235_v9  ;;  %s2157_s22 = sld [smem:[#allocation2 + $0x5]]  ;;  %s2183_s7 = sld [smem:[#allocation2 + $0x6]] }
  0x20   :  { %1933 = vmatpush3.bf16.msra.mxu0 %v1930_v3  ;;  %1970 = vmatpush3.bf16.msra.mxu1 %v1930_v3  ;;  %v2117_v13 = vld [vmem:[%s3400_s1] ss:$0 sm:$0xff]  ;;  %v1238_v19 = vld [vmem:[%s3404_s5 + $0x48] sm:$0xff]  ;;  %v1240_v24 = vld [vmem:[%s3404_s5 + $0x58] sm:$0xff]  ;;  %s2189_s23 = sld [smem:[#allocation2 + $0x7]]  ;;  %s2191_s25 = sld [smem:[#allocation2 + $0x8]] }
  0x21   :  { %1935 = vmatprep.subr.bf16.mxu0 %v1934_v6  ;;  %1963 = vmatprep.subr.bf16.mxu1 %v1934_v6  ;;  %v86_v14 = vmul.f32 %v2117_v13, %v63_v12  ;;  %v2125_v15 = vld [vmem:[%s3401_s2] ss:$0 sm:$0xff]  ;;  %v87_v22 = vmul.f32 %v2117_v13, %v64_v17  ;;  %v65_v25 = vld [vmem:[%s3399_s0 + $0x10] sm:$0xff]  ;;  %v66_v26 = vld [vmem:[%s3399_s0 + $0x18] sm:$0xff]  ;;  %v1950_v40 = vpack.c.bf16 %v1240_v24, %v1239_v20  ;;  %s2274_s29 = sld [smem:[#allocation2 + $0xe]]  ;;  %s2308_s30 = sld [smem:[#allocation4 + $0x1]] }
  0x22   :  { %v2134_v16 = vld [vmem:[%s3402_s3] ss:$0 sm:$0xff]  ;;  %v1242_v28 = vld [vmem:[%s3404_s5 + $0x68] sm:$0xff]  ;;  %v1243_v32 = vld [vmem:[%s3404_s5 + $0x70] sm:$0xff]  ;;  %v2187_v36 = vstv %s2106_s19  ;;  %v88_v37 = vmul.f32 %v2117_v13, %v65_v25  ;;  %v89_v38 = vmul.f32 %v2117_v13, %v66_v26  ;;  %s2218_s19 = sld [smem:[#allocation2 + $0x9]] }
  0x23   :  { %v1237_v18 = vld [vmem:[%s3404_s5 + $0x40] sm:$0xff]  ;;  %v109_v21 = vadd.f32 %v2125_v15, %v86_v14  ;;  %v1244_v33 = vld [vmem:[%s3404_s5 + $0x78] sm:$0xff]  ;;  %v110_v34 = vadd.f32 %v2125_v15, %v87_v22  ;;  %v2204_v44 = vstv %s2119_s24  ;;  %v2207_v45 = vstv %s2127_s27  ;;  %s2225_s24 = sld [smem:[#allocation2 + $0xa]]  ;;  %s2227_s27 = sld [smem:[#allocation2 + $0xb]] }
  0x24   :  { %1937 = vmatpush3.bf16.msra.mxu0 %v1934_v6  ;;  %1971 = vmatpush3.bf16.msra.mxu1 %v1934_v6  ;;  %v1241_v27 = vld [vmem:[%s3404_s5 + $0x60] sm:$0xff]  ;;  %v1946_v31 = vpack.c.bf16 %v1238_v19, %v1237_v18  ;;  %v2201_v43 = vpack.c.bf16 %v1244_v33, %v1243_v32  ;;  %v2210_v46 = vstv %s2129_s28  ;;  %v2216_v48 = vstv %s2136_s11  ;;  %s2242_s28 = sld [smem:[#allocation2 + $0xc]]  ;;  %s2244_s11 = sld [smem:[#allocation2 + $0xd]]  ;;  %v68_v61 = vld [vmem:[%s3399_s0 + $0x28] sm:$0xff] }
  0x25   :  { %1939 = vmatprep.subr.bf16.mxu0 %v1938_v10  ;;  %1964 = vmatprep.subr.bf16.mxu1 %v1938_v10  ;;  %vm125_vm0 = vcmp.gt.f32.partialorder %v109_v21, 0.0  ;;  %v148_v29 = vmul.f32 %v2134_v16, %v109_v21  ;;  %v2175_v30 = vld [vmem:[%s3403_s4] ss:$0 sm:$0xff]  ;;  %v2198_v41 = vpack.c.bf16 %v1242_v28, %v1241_v27  ;;  %v149_v49 = vmul.f32 %v2134_v16, %v110_v34 }
  0x26   :  { %v67_v39 = vld [vmem:[%s3399_s0 + $0x20] sm:$0xff]  ;;  %v2223_v51 = vstv %s2151_s21  ;;  %vm126_vm1 = vcmp.gt.f32.partialorder %v110_v34, 0.0  ;;  %v111_v52 = vadd.f32 %v2125_v15, %v88_v37  ;;  %v2231_v53 = vadd.f32 %v2125_v15, %v89_v38 }
  0x27   :  { %v164_v35 = vsel %vm125_vm0, %v109_v21, %v148_v29  ;;  %v90_v50 = vmul.f32 %v2117_v13, %v67_v39  ;;  %v2240_v54 = vstv %s2157_s22  ;;  %v165_v59 = vsel %vm126_vm1, %v110_v34, %v149_v49 }
  0x28   :  { %1941 = vmatpush3.bf16.msra.mxu0 %v1938_v10  ;;  %1972 = vmatpush3.bf16.msra.mxu1 %v1938_v10  ;;  %v187_v42 = vadd.f32 %v2175_v30, %v164_v35  ;;  %v2262_v63 = vstv %s2183_s7  ;;  %v2265_v0 = vstv %s2189_s23  ;;  %v2268_v1 = vstv %s2191_s25 }
  0x29   :  { %1943 = vmatprep.subr.bf16.mxu0 %v1942_v23  ;;  %1965 = vmatprep.subr.bf16.mxu1 %v1942_v23  ;;  %v2255_v60 = vadd.f32 %v2125_v15, %v90_v50  ;;  %v150_v3 = vmul.f32 %v2134_v16, %v111_v52  ;;  %v188_v6 = vadd.f32 %v2175_v30, %v165_v59  ;;  %vm127_vm8 = vcmp.gt.f32.partialorder %v111_v52, 0.0 }
  0x2a   :  { %v2213_v47 = vmul.f32 %v2187_v36, %v187_v42  ;;  %v2278_v7 = vmul.f32 %v2117_v13, %v68_v61  ;;  %v2288_v10 = vstv %s2218_s19  ;;  %v2291_v11 = vstv %s2225_s24 }
  0x2b   :  { %v2294_v12 = vstv %s2227_s27  ;;  %v2298_v17 = vstv %s2242_s28  ;;  %v2301_v18 = vstv %s2244_s11  ;;  %v166_v19 = vsel %vm127_vm8, %v111_v52, %v150_v3 }
  0x2c   :  { %1945 = vmatpush3.bf16.msra.mxu0 %v1942_v23  ;;  %1973 = vmatpush3.bf16.msra.mxu1 %v1942_v23  ;;  %vm223_vm2 = vcmp.gt.f32.partialorder %v2213_v47, %v2204_v44  ;;  %vm289_vm3 = vcmp.gt.f32.partialorder %v2213_v47, %v2207_v45  ;;  %vm355_vm4 = vcmp.gt.f32.partialorder %v2213_v47, %v2210_v46  ;;  %v2362_v42 = vstv %s2308_s30 }
  0x2d   :  { %1947 = vmatprep.subr.bf16.mxu0 %v1946_v31  ;;  %1966 = vmatprep.subr.bf16.mxu1 %v1946_v31  ;;  %v1587_v55 = vsel %vm223_vm2, 1.0, %v2015_v5  ;;  %v1604_v56 = vsel %vm289_vm3, 1.0, %v2015_v5  ;;  %v1621_v57 = vsel %vm355_vm4, 1.0, %v2015_v5  ;;  %vm421_vm5 = vcmp.gt.f32.partialorder %v2213_v47, %v2216_v48 }
  0x2e   :  { %v337_v58 = vadd.f32 %v1604_v56, %v1587_v55  ;;  %vm487_vm6 = vcmp.gt.f32.partialorder %v2213_v47, %v2223_v51  ;;  %v1638_v62 = vsel %vm421_vm5, 1.0, %v2015_v5  ;;  %vm553_vm7 = vcmp.gt.f32.partialorder %v2213_v47, %v2240_v54 }
  0x2f   :  { %v1655_v4 = vsel %vm487_vm6, 1.0, %v2015_v5  ;;  %vm619_vm9 = vcmp.gt.f32.partialorder %v2213_v47, %v2262_v63  ;;  %vm685_vm10 = vcmp.gt.f32.partialorder %v2213_v47, %v2265_v0  ;;  %vm751_vm11 = vcmp.gt.f32.partialorder %v2213_v47, %v2268_v1 }
  0x30   :  { %1949 = vmatpush3.bf16.msra.mxu0 %v1946_v31  ;;  %1974 = vmatpush3.bf16.msra.mxu1 %v1946_v31  ;;  %v403_v2 = vadd.f32 %v1621_v57, %v337_v58  ;;  %v1672_v9 = vsel %vm553_vm7, 1.0, %v2015_v5  ;;  %v1689_v20 = vsel %vm619_vm9, 1.0, %v2015_v5  ;;  %v1706_v21 = vsel %vm685_vm10, 1.0, %v2015_v5 }
  0x31   :  { %1951 = vmatprep.subr.bf16.mxu0 %v1950_v40  ;;  %1967 = vmatprep.subr.bf16.mxu1 %v1950_v40  ;;  %v1723_v22 = vsel %vm751_vm11, 1.0, %v2015_v5  ;;  %v2311_v23 = vmul.f32 %v2187_v36, %v188_v6  ;;  %vm817_vm12 = vcmp.gt.f32.partialorder %v2213_v47, %v2288_v10  ;;  %vm883_vm13 = vcmp.gt.f32.partialorder %v2213_v47, %v2291_v11 }
  0x32   :  { %v469_v8 = vadd.f32 %v1638_v62, %v403_v2  ;;  %vm949_vm14 = vcmp.gt.f32.partialorder %v2213_v47, %v2294_v12  ;;  %v1740_v29 = vsel %vm817_vm12, 1.0, %v2015_v5  ;;  %v2335_v31 = vstv %s2274_s29 }
  0x33   :  { %vm224_vm15 = vcmp.gt.f32.partialorder %v2311_v23, %v2204_v44  ;;  %vm290_vm0 = vcmp.gt.f32.partialorder %v2311_v23, %v2207_v45  ;;  %vm356_vm1 = vcmp.gt.f32.partialorder %v2311_v23, %v2210_v46  ;;  %vm422_vm2 = vcmp.gt.f32.partialorder %v2311_v23, %v2216_v48 }
  0x34   :  { %1953 = vmatpush3.bf16.msra.mxu0 %v1950_v40  ;;  %1975 = vmatpush3.bf16.msra.mxu1 %v1950_v40  ;;  %v535_v14 = vadd.f32 %v1655_v4, %v469_v8  ;;  %v1588_v26 = vsel %vm224_vm15, 1.0, %v2015_v5  ;;  %v1605_v27 = vsel %vm290_vm0, 1.0, %v2015_v5  ;;  %v1622_v28 = vsel %vm356_vm1, 1.0, %v2015_v5 }
  0x35   :  { %1955 = vmatprep.subr.bf16.mxu0 %v2198_v41  ;;  %1968 = vmatprep.subr.bf16.mxu1 %v2198_v41  ;;  %v338_v32 = vadd.f32 %v1605_v27, %v1588_v26  ;;  %vm488_vm3 = vcmp.gt.f32.partialorder %v2311_v23, %v2223_v51  ;;  %v1757_v34 = vsel %vm883_vm13, 1.0, %v2015_v5  ;;  %v1774_v35 = vsel %vm949_vm14, 1.0, %v2015_v5 }
  0x36   :  { %v601_v24 = vadd.f32 %v1672_v9, %v535_v14  ;;  %v1639_v37 = vsel %vm422_vm2, 1.0, %v2015_v5  ;;  %vm1015_vm4 = vcmp.gt.f32.partialorder %v2213_v47, %v2298_v17  ;;  %vm1081_vm5 = vcmp.gt.f32.partialorder %v2213_v47, %v2301_v18 }
  0x37   :  { %v404_v38 = vadd.f32 %v1622_v28, %v338_v32  ;;  %vm554_vm6 = vcmp.gt.f32.partialorder %v2311_v23, %v2240_v54  ;;  %vm1147_vm7 = vcmp.gt.f32.partialorder %v2213_v47, %v2335_v31  ;;  %v1656_v40 = vsel %vm488_vm3, 1.0, %v2015_v5 }
  0x38   :  { %1957 = vmatpush3.bf16.msra.mxu0 %v2198_v41  ;;  %v667_v25 = vadd.f32 %v1689_v20, %v601_v24  ;;  %1976 = vmatpush3.bf16.msra.mxu1 %v2198_v41  ;;  %v189_v41 = vadd.f32 %v2175_v30, %v166_v19  ;;  %vm620_vm8 = vcmp.gt.f32.partialorder %v2311_v23, %v2262_v63  ;;  %v1791_v52 = vsel %vm1015_vm4, 1.0, %v2015_v5 }
  0x39   :  { %1959 = vmatprep.subr.bf16.mxu0 %v2201_v43  ;;  %1969 = vmatprep.subr.bf16.mxu1 %v2201_v43  ;;  %v470_v49 = vadd.f32 %v1639_v37, %v404_v38  ;;  %vm686_vm9 = vcmp.gt.f32.partialorder %v2311_v23, %v2265_v0  ;;  %v1673_v55 = vsel %vm554_vm6, 1.0, %v2015_v5  ;;  %vm752_vm10 = vcmp.gt.f32.partialorder %v2311_v23, %v2268_v1 }
  0x3a   :  { %v733_v33 = vadd.f32 %v1706_v21, %v667_v25  ;;  %v1825_v56 = vsel %vm1147_vm7, 1.0, %v2015_v5  ;;  %vm128_vm11 = vcmp.gt.f32.partialorder %v2231_v53, 0.0  ;;  %v151_v58 = vmul.f32 %v2134_v16, %v2231_v53 }
  0x3b   :  { %v536_v57 = vadd.f32 %v1656_v40, %v470_v49  ;;  %v1690_v61 = vsel %vm620_vm8, 1.0, %v2015_v5  ;;  %v1707_v62 = vsel %vm686_vm9, 1.0, %v2015_v5  ;;  %v2383_v2 = vmul.f32 %v2187_v36, %v189_v41 }
  0x3c   :  { %1961 = vmatpush3.bf16.msra.mxu0 %v2201_v43  ;;  %v799_v39 = vadd.f32 %v1723_v22, %v733_v33  ;;  %1977 = vmatpush3.bf16.msra.mxu1 %v2201_v43  ;;  %v1808_v43 = vsel %vm1081_vm5, 1.0, %v2015_v5  ;;  %v1724_v47 = vsel %vm752_vm10, 1.0, %v2015_v5  ;;  %vm818_vm12 = vcmp.gt.f32.partialorder %v2311_v23, %v2288_v10 }
  0x3d   :  { %v602_v3 = vadd.f32 %v1673_v55, %v536_v57  ;;  %vm884_vm13 = vcmp.gt.f32.partialorder %v2311_v23, %v2291_v11  ;;  %vm129_vm14 = vcmp.gt.f32.partialorder %v2255_v60, 0.0  ;;  %vm225_vm15 = vcmp.gt.f32.partialorder %v2383_v2, %v2204_v44 }
  0x3e   :  { %v865_v50 = vadd.f32 %v1740_v29, %v799_v39  ;;  %vm291_vm0 = vcmp.gt.f32.partialorder %v2383_v2, %v2207_v45  ;;  %vm357_vm1 = vcmp.gt.f32.partialorder %v2383_v2, %v2210_v46  ;;  %v1589_v8 = vsel %vm225_vm15, 1.0, %v2015_v5 }
  0x3f   :  { %v668_v6 = vadd.f32 %v1690_v61, %v602_v3  ;;  %v1606_v9 = vsel %vm291_vm0, 1.0, %v2015_v5  ;;  %v1623_v14 = vsel %vm357_vm1, 1.0, %v2015_v5  ;;  %vm423_vm2 = vcmp.gt.f32.partialorder %v2383_v2, %v2216_v48 }
  0x40   :  { %v931_v59 = vadd.f32 %v1757_v34, %v865_v50  ;;  %v339_v20 = vadd.f32 %v1606_v9, %v1589_v8  ;;  %vm489_vm3 = vcmp.gt.f32.partialorder %v2383_v2, %v2223_v51  ;;  %vm950_vm4 = vcmp.gt.f32.partialorder %v2311_v23, %v2294_v12 }
  0x41   :  { %v734_v21 = vadd.f32 %v1707_v62, %v668_v6  ;;  %v1640_v22 = vsel %vm423_vm2, 1.0, %v2015_v5  ;;  %v152_v24 = vmul.f32 %v2134_v16, %v2255_v60  ;;  %v1741_v26 = vsel %vm818_vm12, 1.0, %v2015_v5 }
  0x42   :  { %v997_v4 = vadd.f32 %v1774_v35, %v931_v59  ;;  %v405_v27 = vadd.f32 %v1623_v14, %v339_v20  ;;  %vm555_vm5 = vcmp.gt.f32.partialorder %v2383_v2, %v2240_v54  ;;  %v1758_v29 = vsel %vm884_vm13, 1.0, %v2015_v5 }
  0x43   :  { %v800_v28 = vadd.f32 %v1724_v47, %v734_v21  ;;  %v1657_v32 = vsel %vm489_vm3, 1.0, %v2015_v5  ;;  %v2422_v33 = vadd.f32 %v2125_v15, %v2278_v7  ;;  %v1775_v35 = vsel %vm950_vm4, 1.0, %v2015_v5 }
  0x44   :  { %v1063_v19 = vadd.f32 %v1791_v52, %v997_v4  ;;  %v471_v37 = vadd.f32 %v1640_v22, %v405_v27  ;;  %vm621_vm6 = vcmp.gt.f32.partialorder %v2383_v2, %v2262_v63  ;;  %vm1016_vm7 = vcmp.gt.f32.partialorder %v2311_v23, %v2298_v17 }
  0x45   :  { %v866_v38 = vadd.f32 %v1741_v26, %v800_v28  ;;  %vm1082_vm8 = vcmp.gt.f32.partialorder %v2311_v23, %v2301_v18  ;;  %v1674_v39 = vsel %vm555_vm5, 1.0, %v2015_v5  ;;  %vm687_vm9 = vcmp.gt.f32.partialorder %v2383_v2, %v2265_v0 }
  0x46   :  { %v1129_v25 = vadd.f32 %v1808_v43, %v1063_v19  ;;  %v537_v7 = vadd.f32 %v1657_v32, %v471_v37  ;;  %v167_v41 = vsel %vm128_vm11, %v2231_v53, %v151_v58  ;;  %vm1148_vm10 = vcmp.gt.f32.partialorder %v2311_v23, %v2335_v31 }
  0x47   :  { %v932_v49 = vadd.f32 %v1758_v29, %v866_v38  ;;  %v1691_v50 = vsel %vm621_vm6, 1.0, %v2015_v5  ;;  %vm753_vm12 = vcmp.gt.f32.partialorder %v2383_v2, %v2268_v1  ;;  %v1792_v52 = vsel %vm1016_vm7, 1.0, %v2015_v5 }
  0x48   :  { %v1195_v34 = vadd.f32 %v1825_v56, %v1129_v25  ;;  %v603_v55 = vadd.f32 %v1674_v39, %v537_v7  ;;  %vm819_vm13 = vcmp.gt.f32.partialorder %v2383_v2, %v2288_v10  ;;  %v168_v53 = vsel %vm129_vm14, %v2255_v60, %v152_v24 }
  0x49   :  { %v998_v43 = vadd.f32 %v1775_v35, %v932_v49  ;;  %v1708_v56 = vsel %vm687_vm9, 1.0, %v2015_v5  ;;  %vm885_vm11 = vcmp.gt.f32.partialorder %v2383_v2, %v2291_v11  ;;  %v190_v57 = vadd.f32 %v2175_v30, %v167_v41  ;;  %v69_v35 = vld [vmem:[%s3399_s0 + $0x30] sm:$0xff] }
  0x4a   :  { %v1213_v40 = vmul.f32 %v2362_v42, %v1195_v34  ;;  %v1809_v58 = vsel %vm1082_vm8, 1.0, %v2015_v5  ;;  %v1826_v59 = vsel %vm1148_vm10, 1.0, %v2015_v5  ;;  %v669_v61 = vadd.f32 %v1691_v50, %v603_v55 }
  0x4b   :  { %v1725_v62 = vsel %vm753_vm12, 1.0, %v2015_v5  ;;  %v1064_v3 = vadd.f32 %v1792_v52, %v998_v43  ;;  %v1742_v60 = vsel %vm819_vm13, 1.0, %v2015_v5  ;;  %vm951_vm14 = vcmp.gt.f32.partialorder %v2383_v2, %v2294_v12 }
  0x4c   :  { %1906 = vmatprep.mubr.f32.mxu0 %v1213_v40  ;;  %v2463_v47 = vmul.f32 %v2187_v36, %v190_v57  ;;  %v735_v4 = vadd.f32 %v1708_v56, %v669_v61  ;;  %v1759_v6 = vsel %vm885_vm11, 1.0, %v2015_v5  ;;  %vm1017_vm15 = vcmp.gt.f32.partialorder %v2383_v2, %v2298_v17 }
  0x4d   :  { %v191_v23 = vadd.f32 %v2175_v30, %v168_v53  ;;  %v1130_v8 = vadd.f32 %v1809_v58, %v1064_v3  ;;  %v1776_v25 = vsel %vm951_vm14, 1.0, %v2015_v5  ;;  %vm130_vm5 = vcmp.gt.f32.partialorder %v2422_v33, 0.0 }
  0x4e   :  { %vm226_vm0 = vcmp.gt.f32.partialorder %v2463_v47, %v2204_v44  ;;  %vm292_vm1 = vcmp.gt.f32.partialorder %v2463_v47, %v2207_v45  ;;  %vm358_vm2 = vcmp.gt.f32.partialorder %v2463_v47, %v2210_v46  ;;  %v801_v9 = vadd.f32 %v1725_v62, %v735_v4  ;;  %v71_v62 = vld [vmem:[%s3399_s0 + $0x40] sm:$0xff] }
  0x4f   :  { %v1590_v14 = vsel %vm226_vm0, 1.0, %v2015_v5  ;;  %v1607_v19 = vsel %vm292_vm1, 1.0, %v2015_v5  ;;  %v1624_v20 = vsel %vm358_vm2, 1.0, %v2015_v5  ;;  %v1196_v21 = vadd.f32 %v1826_v59, %v1130_v8 }
  0x50   :  { %v340_v22 = vadd.f32 %v1607_v19, %v1590_v14  ;;  %vm424_vm3 = vcmp.gt.f32.partialorder %v2463_v47, %v2216_v48  ;;  %vm490_vm4 = vcmp.gt.f32.partialorder %v2463_v47, %v2223_v51  ;;  %v867_v24 = vadd.f32 %v1742_v60, %v801_v9 }
  0x51   :  { %v1641_v26 = vsel %vm424_vm3, 1.0, %v2015_v5  ;;  %v1214_v27 = vmul.f32 %v2362_v42, %v1196_v21  ;;  %vm1083_vm6 = vcmp.gt.f32.partialorder %v2383_v2, %v2301_v18  ;;  %vm556_vm7 = vcmp.gt.f32.partialorder %v2463_v47, %v2240_v54 }
  0x52   :  { %v406_v28 = vadd.f32 %v1624_v20, %v340_v22  ;;  %v933_v29 = vadd.f32 %v1759_v6, %v867_v24  ;;  %v1793_v32 = vsel %vm1017_vm15, 1.0, %v2015_v5  ;;  %vm1149_vm8 = vcmp.gt.f32.partialorder %v2383_v2, %v2335_v31  ;;  %v70_v2 = vld [vmem:[%s3399_s0 + $0x38] sm:$0xff] }
  0x53   :  { %v1658_v34 = vsel %vm490_vm4, 1.0, %v2015_v5  ;;  %1907 = vmatmul.mubr.f32.vlgmr.msra.gmra.mrb[0].mxu0 %v1214_v27  ;;  %vm622_vm9 = vcmp.gt.f32.partialorder %v2463_v47, %v2262_v63  ;;  %vm688_vm10 = vcmp.gt.f32.partialorder %v2463_v47, %v2265_v0  ;;  %v2508_v38 = vmul.f32 %v2187_v36, %v191_v23 }
  0x54   :  { %v472_v37 = vadd.f32 %v1641_v26, %v406_v28  ;;  %v999_v39 = vadd.f32 %v1776_v25, %v933_v29  ;;  %v1810_v40 = vsel %vm1083_vm6, 1.0, %v2015_v5  ;;  %v1675_v7 = vsel %vm556_vm7, 1.0, %v2015_v5 }
  0x55   :  { %vm754_vm12 = vcmp.gt.f32.partialorder %v2463_v47, %v2268_v1  ;;  %v1827_v41 = vsel %vm1149_vm8, 1.0, %v2015_v5  ;;  %v153_v50 = vmul.f32 %v2134_v16, %v2422_v33  ;;  %v2521_v52 = vmul.f32 %v2117_v13, %v69_v35 }
  0x56   :  { %v538_v49 = vadd.f32 %v1658_v34, %v472_v37  ;;  %v1065_v55 = vadd.f32 %v1793_v32, %v999_v39  ;;  %v1692_v53 = vsel %vm622_vm9, 1.0, %v2015_v5  ;;  %v1709_v43 = vsel %vm688_vm10, 1.0, %v2015_v5 }
  0x57   :  { %v2526_v56 = vmul.f32 %v2117_v13, %v70_v2  ;;  %v1726_v58 = vsel %vm754_vm12, 1.0, %v2015_v5  ;;  %vm820_vm13 = vcmp.gt.f32.partialorder %v2463_v47, %v2288_v10  ;;  %vm227_vm11 = vcmp.gt.f32.partialorder %v2508_v38, %v2204_v44 }
  0x58   :  { %v604_v57 = vadd.f32 %v1675_v7, %v538_v49  ;;  %v1131_v59 = vadd.f32 %v1810_v40, %v1065_v55  ;;  %v1591_v61 = vsel %vm227_vm11, 1.0, %v2015_v5  ;;  %vm293_vm14 = vcmp.gt.f32.partialorder %v2508_v38, %v2207_v45 }
  0x59   :  { %vm359_vm15 = vcmp.gt.f32.partialorder %v2508_v38, %v2210_v46  ;;  %v1608_v60 = vsel %vm293_vm14, 1.0, %v2015_v5  ;;  %vm425_vm0 = vcmp.gt.f32.partialorder %v2508_v38, %v2216_v48  ;;  %vm886_vm1 = vcmp.gt.f32.partialorder %v2463_v47, %v2291_v11 }
  0x5a   :  { %v670_v3 = vadd.f32 %v1692_v53, %v604_v57  ;;  %v1625_v4 = vsel %vm359_vm15, 1.0, %v2015_v5  ;;  %v1197_v6 = vadd.f32 %v1827_v41, %v1131_v59  ;;  %v341_v23 = vadd.f32 %v1608_v60, %v1591_v61 }
  0x5b   :  { %vm491_vm2 = vcmp.gt.f32.partialorder %v2508_v38, %v2223_v51  ;;  %v1642_v9 = vsel %vm425_vm0, 1.0, %v2015_v5  ;;  %v169_v14 = vsel %vm130_vm5, %v2422_v33, %v153_v50  ;;  %v2554_v19 = vmul.f32 %v2117_v13, %v71_v62 }
  0x5c   :  { %v736_v8 = vadd.f32 %v1709_v43, %v670_v3  ;;  %v1215_v20 = vmul.f32 %v2362_v42, %v1197_v6  ;;  %v1743_v21 = vsel %vm820_vm13, 1.0, %v2015_v5  ;;  %v407_v22 = vadd.f32 %v1625_v4, %v341_v23 }
  0x5d   :  { %vm557_vm3 = vcmp.gt.f32.partialorder %v2508_v38, %v2240_v54  ;;  %v1760_v25 = vsel %vm886_vm1, 1.0, %v2015_v5  ;;  %vm952_vm4 = vcmp.gt.f32.partialorder %v2463_v47, %v2294_v12  ;;  %v1659_v33 = vsel %vm491_vm2, 1.0, %v2015_v5 }
  0x5e   :  { %v802_v24 = vadd.f32 %v1726_v58, %v736_v8  ;;  %1909 = vmatprep.mubr.f32.mxu0 %v1215_v20  ;;  %vm1018_vm5 = vcmp.gt.f32.partialorder %v2463_v47, %v2298_v17  ;;  %vm1084_vm6 = vcmp.gt.f32.partialorder %v2463_v47, %v2301_v18  ;;  %v473_v26 = vadd.f32 %v1642_v9, %v407_v22 }
  0x5f   :  { %vm623_vm7 = vcmp.gt.f32.partialorder %v2508_v38, %v2262_v63  ;;  %vm1150_vm8 = vcmp.gt.f32.partialorder %v2463_v47, %v2335_v31  ;;  %v1676_v28 = vsel %vm557_vm3, 1.0, %v2015_v5  ;;  %vm689_vm9 = vcmp.gt.f32.partialorder %v2508_v38, %v2265_v0 }
  0x60   :  { %v868_v27 = vadd.f32 %v1743_v21, %v802_v24  ;;  %v1777_v29 = vsel %vm952_vm4, 1.0, %v2015_v5  ;;  %v539_v32 = vadd.f32 %v1659_v33, %v473_v26  ;;  %vm755_vm10 = vcmp.gt.f32.partialorder %v2508_v38, %v2268_v1 }
  0x61   :  { %vm821_vm12 = vcmp.gt.f32.partialorder %v2508_v38, %v2288_v10  ;;  %v1794_v35 = vsel %vm1018_vm5, 1.0, %v2015_v5  ;;  %v1693_v37 = vsel %vm623_vm7, 1.0, %v2015_v5  ;;  %v192_v47 = vadd.f32 %v2175_v30, %v169_v14 }
  0x62   :  { %v934_v34 = vadd.f32 %v1760_v25, %v868_v27  ;;  %v1811_v2 = vsel %vm1084_vm6, 1.0, %v2015_v5  ;;  %v1828_v39 = vsel %vm1150_vm8, 1.0, %v2015_v5  ;;  %v605_v40 = vadd.f32 %v1676_v28, %v539_v32 }
  0x63   :  { %v1710_v7 = vsel %vm689_vm9, 1.0, %v2015_v5  ;;  %v1727_v49 = vsel %vm755_vm10, 1.0, %v2015_v5  ;;  %v1744_v50 = vsel %vm821_vm12, 1.0, %v2015_v5  ;;  %v2592_v55 = vmul.f32 %v2187_v36, %v192_v47 }
  0x64   :  { %v1000_v41 = vadd.f32 %v1777_v29, %v934_v34  ;;  %v671_v53 = vadd.f32 %v1693_v37, %v605_v40  ;;  %vm887_vm13 = vcmp.gt.f32.partialorder %v2508_v38, %v2291_v11  ;;  %vm953_vm11 = vcmp.gt.f32.partialorder %v2508_v38, %v2294_v12 }
  0x65   :  { %vm1019_vm14 = vcmp.gt.f32.partialorder %v2508_v38, %v2298_v17  ;;  %vm228_vm15 = vcmp.gt.f32.partialorder %v2592_v55, %v2204_v44  ;;  %vm294_vm0 = vcmp.gt.f32.partialorder %v2592_v55, %v2207_v45  ;;  %vm360_vm1 = vcmp.gt.f32.partialorder %v2592_v55, %v2210_v46 }
  0x66   :  { %v1066_v43 = vadd.f32 %v1794_v35, %v1000_v41  ;;  %v737_v57 = vadd.f32 %v1710_v7, %v671_v53  ;;  %v1592_v58 = vsel %vm228_vm15, 1.0, %v2015_v5  ;;  %v1609_v59 = vsel %vm294_vm0, 1.0, %v2015_v5 }
  0x67   :  { %v1626_v61 = vsel %vm360_vm1, 1.0, %v2015_v5  ;;  %v342_v3 = vadd.f32 %v1609_v59, %v1592_v58  ;;  %vm426_vm2 = vcmp.gt.f32.partialorder %v2592_v55, %v2216_v48  ;;  %vm492_vm3 = vcmp.gt.f32.partialorder %v2592_v55, %v2223_v51 }
  0x68   :  { %v1132_v62 = vadd.f32 %v1811_v2, %v1066_v43  ;;  %v803_v60 = vadd.f32 %v1727_v49, %v737_v57  ;;  %v1643_v4 = vsel %vm426_vm2, 1.0, %v2015_v5  ;;  %v115_v6 = vadd.f32 %v2125_v15, %v2521_v52 }
  0x69   :  { %v116_v23 = vadd.f32 %v2125_v15, %v2526_v56  ;;  %v1761_v9 = vsel %vm887_vm13, 1.0, %v2015_v5  ;;  %v408_v14 = vadd.f32 %v1626_v61, %v342_v3  ;;  %vm558_vm4 = vcmp.gt.f32.partialorder %v2592_v55, %v2240_v54  ;;  %v72_v3 = vld [vmem:[%s3399_s0 + $0x48] sm:$0xff] }
  0x6a   :  { %v1198_v8 = vadd.f32 %v1828_v39, %v1132_v62  ;;  %v869_v20 = vadd.f32 %v1744_v50, %v803_v60  ;;  %v1778_v21 = vsel %vm953_vm11, 1.0, %v2015_v5  ;;  %v1795_v52 = vsel %vm1019_vm14, 1.0, %v2015_v5 }
  0x6b   :  { %v1660_v56 = vsel %vm492_vm3, 1.0, %v2015_v5  ;;  %vm1085_vm5 = vcmp.gt.f32.partialorder %v2508_v38, %v2301_v18  ;;  %v474_v24 = vadd.f32 %v1643_v4, %v408_v14  ;;  %vm624_vm6 = vcmp.gt.f32.partialorder %v2592_v55, %v2262_v63 }
  0x6c   :  { %v1216_v22 = vmul.f32 %v2362_v42, %v1198_v8  ;;  %v935_v25 = vadd.f32 %v1761_v9, %v869_v20  ;;  %vm1151_vm7 = vcmp.gt.f32.partialorder %v2508_v38, %v2335_v31  ;;  %v1677_v33 = vsel %vm558_vm4, 1.0, %v2015_v5 }
  0x6d   :  { %v154_v26 = vmul.f32 %v2134_v16, %v115_v6  ;;  %v540_v27 = vadd.f32 %v1660_v56, %v474_v24  ;;  %vm690_vm8 = vcmp.gt.f32.partialorder %v2592_v55, %v2265_v0  ;;  %vm131_vm9 = vcmp.gt.f32.partialorder %v115_v6, 0.0 }
  0x6e   :  { %1910 = vmatmul.mubr.f32.gmra.mrb[2].mxu0 %v1216_v22  ;;  %v155_v28 = vmul.f32 %v2134_v16, %v116_v23  ;;  %v1001_v29 = vadd.f32 %v1778_v21, %v935_v25  ;;  %v1812_v32 = vsel %vm1085_vm5, 1.0, %v2015_v5  ;;  %v1694_v34 = vsel %vm624_vm6, 1.0, %v2015_v5 }
  0x6f   :  { %vm132_vm10 = vcmp.gt.f32.partialorder %v116_v23, 0.0  ;;  %v606_v35 = vadd.f32 %v1677_v33, %v540_v27  ;;  %vm756_vm12 = vcmp.gt.f32.partialorder %v2592_v55, %v2268_v1  ;;  %vm822_vm13 = vcmp.gt.f32.partialorder %v2592_v55, %v2288_v10 }
  0x70   :  { %v117_v37 = vadd.f32 %v2125_v15, %v2554_v19  ;;  %v1067_v47 = vadd.f32 %v1795_v52, %v1001_v29  ;;  %v1711_v2 = vsel %vm690_vm8, 1.0, %v2015_v5  ;;  %vm888_vm11 = vcmp.gt.f32.partialorder %v2592_v55, %v2291_v11 }
  0x71   :  { %v170_v39 = vsel %vm131_vm9, %v115_v6, %v154_v26  ;;  %v1829_v40 = vsel %vm1151_vm7, 1.0, %v2015_v5  ;;  %v672_v7 = vadd.f32 %v1694_v34, %v606_v35  ;;  %v171_v49 = vsel %vm132_vm10, %v116_v23, %v155_v28  ;;  %v73_v26 = vld [vmem:[%s3399_s0 + $0x50] sm:$0xff] }
  0x72   :  { %v193_v41 = vadd.f32 %v2175_v30, %v170_v39  ;;  %v1133_v50 = vadd.f32 %v1812_v32, %v1067_v47  ;;  %v1728_v53 = vsel %vm756_vm12, 1.0, %v2015_v5  ;;  %v1745_v19 = vsel %vm822_vm13, 1.0, %v2015_v5 }
  0x73   :  { %vm954_vm14 = vcmp.gt.f32.partialorder %v2592_v55, %v2294_v12  ;;  %v738_v43 = vadd.f32 %v1711_v2, %v672_v7  ;;  %v1762_v57 = vsel %vm888_vm11, 1.0, %v2015_v5  ;;  %vm1020_vm15 = vcmp.gt.f32.partialorder %v2592_v55, %v2298_v17 }
  0x74   :  { %v2669_v38 = vmul.f32 %v2187_v36, %v193_v41  ;;  %v1199_v58 = vadd.f32 %v1829_v40, %v1133_v50  ;;  %v194_v59 = vadd.f32 %v2175_v30, %v171_v49  ;;  %vm133_vm0 = vcmp.gt.f32.partialorder %v117_v37, 0.0 }
  0x75   :  { %v156_v61 = vmul.f32 %v2134_v16, %v117_v37  ;;  %v804_v62 = vadd.f32 %v1728_v53, %v738_v43  ;;  %v1779_v14 = vsel %vm954_vm14, 1.0, %v2015_v5  ;;  %vm1086_vm6 = vcmp.gt.f32.partialorder %v2592_v55, %v2301_v18 }
  0x76   :  { %vm229_vm1 = vcmp.gt.f32.partialorder %v2669_v38, %v2204_v44  ;;  %vm295_vm2 = vcmp.gt.f32.partialorder %v2669_v38, %v2207_v45  ;;  %vm361_vm3 = vcmp.gt.f32.partialorder %v2669_v38, %v2210_v46  ;;  %v1217_v60 = vmul.f32 %v2362_v42, %v1199_v58 }
  0x77   :  { %v1593_v4 = vsel %vm229_vm1, 1.0, %v2015_v5  ;;  %v1610_v6 = vsel %vm295_vm2, 1.0, %v2015_v5  ;;  %v1627_v23 = vsel %vm361_vm3, 1.0, %v2015_v5  ;;  %v870_v8 = vadd.f32 %v1745_v19, %v804_v62 }
  0x78   :  { %v343_v9 = vadd.f32 %v1610_v6, %v1593_v4  ;;  %vm427_vm4 = vcmp.gt.f32.partialorder %v2669_v38, %v2216_v48  ;;  %vm493_vm5 = vcmp.gt.f32.partialorder %v2669_v38, %v2223_v51  ;;  %1912 = vmatprep.mubr.f32.mxu0 %v1217_v60  ;;  %v95_v21 = vmul.f32 %v2117_v13, %v72_v3 }
  0x79   :  { %v1644_v20 = vsel %vm427_vm4, 1.0, %v2015_v5  ;;  %v936_v52 = vadd.f32 %v1762_v57, %v870_v8  ;;  %vm1152_vm7 = vcmp.gt.f32.partialorder %v2592_v55, %v2335_v31  ;;  %vm559_vm8 = vcmp.gt.f32.partialorder %v2669_v38, %v2240_v54 }
  0x7a   :  { %v409_v56 = vadd.f32 %v1627_v23, %v343_v9  ;;  %v1796_v22 = vsel %vm1020_vm15, 1.0, %v2015_v5  ;;  %v1661_v24 = vsel %vm493_vm5, 1.0, %v2015_v5  ;;  %v2708_v25 = vmul.f32 %v2187_v36, %v194_v59 }
  0x7b   :  { %v172_v33 = vsel %vm133_vm0, %v117_v37, %v156_v61  ;;  %v1002_v27 = vadd.f32 %v1779_v14, %v936_v52  ;;  %v1813_v28 = vsel %vm1086_vm6, 1.0, %v2015_v5  ;;  %vm625_vm9 = vcmp.gt.f32.partialorder %v2669_v38, %v2262_v63 }
  0x7c   :  { %v475_v29 = vadd.f32 %v1644_v20, %v409_v56  ;;  %v1830_v55 = vsel %vm1152_vm7, 1.0, %v2015_v5  ;;  %v1678_v32 = vsel %vm559_vm8, 1.0, %v2015_v5  ;;  %vm691_vm10 = vcmp.gt.f32.partialorder %v2669_v38, %v2265_v0 }
  0x7d   :  { %v2722_v34 = vadd.f32 %v2125_v15, %v95_v21  ;;  %v1068_v35 = vadd.f32 %v1796_v22, %v1002_v27  ;;  %v195_v47 = vadd.f32 %v2175_v30, %v172_v33  ;;  %v2726_v2 = vmul.f32 %v2117_v13, %v73_v26 }
  0x7e   :  { %v541_v37 = vadd.f32 %v1661_v24, %v475_v29  ;;  %v1695_v39 = vsel %vm625_vm9, 1.0, %v2015_v5  ;;  %vm757_vm12 = vcmp.gt.f32.partialorder %v2669_v38, %v2268_v1  ;;  %vm230_vm13 = vcmp.gt.f32.partialorder %v2708_v25, %v2204_v44 }
  0x7f   :  { %vm296_vm11 = vcmp.gt.f32.partialorder %v2708_v25, %v2207_v45  ;;  %v1134_v15 = vadd.f32 %v1813_v28, %v1068_v35  ;;  %v1712_v7 = vsel %vm691_vm10, 1.0, %v2015_v5  ;;  %vm823_vm14 = vcmp.gt.f32.partialorder %v2669_v38, %v2288_v10 }
  0x80   :  { %v607_v40 = vadd.f32 %v1678_v32, %v541_v37  ;;  %v1594_v13 = vsel %vm230_vm13, 1.0, %v2015_v5  ;;  %v1611_v41 = vsel %vm296_vm11, 1.0, %v2015_v5  ;;  %vm362_vm15 = vcmp.gt.f32.partialorder %v2708_v25, %v2210_v46 }
  0x81   :  { %vm428_vm0 = vcmp.gt.f32.partialorder %v2708_v25, %v2216_v48  ;;  %v1200_v49 = vadd.f32 %v1830_v55, %v1134_v15  ;;  %v344_v53 = vadd.f32 %v1611_v41, %v1594_v13  ;;  %v1628_v19 = vsel %vm362_vm15, 1.0, %v2015_v5 }
  0x82   :  { %v673_v50 = vadd.f32 %v1695_v39, %v607_v40  ;;  %v1729_v43 = vsel %vm757_vm12, 1.0, %v2015_v5  ;;  %vm889_vm1 = vcmp.gt.f32.partialorder %v2669_v38, %v2291_v11  ;;  %v1645_v57 = vsel %vm428_vm0, 1.0, %v2015_v5 }
  0x83   :  { %vm494_vm2 = vcmp.gt.f32.partialorder %v2708_v25, %v2223_v51  ;;  %v1218_v58 = vmul.f32 %v2362_v42, %v1200_v49  ;;  %v410_v61 = vadd.f32 %v1628_v19, %v344_v53  ;;  %vm560_vm3 = vcmp.gt.f32.partialorder %v2708_v25, %v2240_v54 }
  0x84   :  { %v739_v59 = vadd.f32 %v1712_v7, %v673_v50  ;;  %v1746_v62 = vsel %vm823_vm14, 1.0, %v2015_v5  ;;  %vm955_vm4 = vcmp.gt.f32.partialorder %v2669_v38, %v2294_v12  ;;  %vm1021_vm5 = vcmp.gt.f32.partialorder %v2669_v38, %v2298_v17 }
  0x85   :  { %v1662_v3 = vsel %vm494_vm2, 1.0, %v2015_v5  ;;  %vm134_vm6 = vcmp.gt.f32.partialorder %v2722_v34, 0.0  ;;  %1913 = vmatmul.mubr.f32.gmra.mrb[4].mxu0 %v1218_v58  ;;  %vm1087_vm7 = vcmp.gt.f32.partialorder %v2669_v38, %v2301_v18  ;;  %v476_v4 = vadd.f32 %v1645_v57, %v410_v61 }
  0x86   :  { %v805_v60 = vadd.f32 %v1729_v43, %v739_v59  ;;  %vm626_vm8 = vcmp.gt.f32.partialorder %v2708_v25, %v2262_v63  ;;  %v1763_v6 = vsel %vm889_vm1, 1.0, %v2015_v5  ;;  %vm1153_vm9 = vcmp.gt.f32.partialorder %v2669_v38, %v2335_v31  ;;  %v74_v43 = vld [vmem:[%s3399_s0 + $0x58] sm:$0xff] }
  0x87   :  { %v1679_v23 = vsel %vm560_vm3, 1.0, %v2015_v5  ;;  %vm692_vm10 = vcmp.gt.f32.partialorder %v2708_v25, %v2265_v0  ;;  %v542_v9 = vadd.f32 %v1662_v3, %v476_v4  ;;  %vm758_vm12 = vcmp.gt.f32.partialorder %v2708_v25, %v2268_v1 }
  0x88   :  { %v871_v8 = vadd.f32 %v1746_v62, %v805_v60  ;;  %v157_v14 = vmul.f32 %v2134_v16, %v2722_v34  ;;  %v1780_v20 = vsel %vm955_vm4, 1.0, %v2015_v5  ;;  %v1797_v21 = vsel %vm1021_vm5, 1.0, %v2015_v5 }
  0x89   :  { %v1814_v52 = vsel %vm1087_vm7, 1.0, %v2015_v5  ;;  %v1696_v56 = vsel %vm626_vm8, 1.0, %v2015_v5  ;;  %v1831_v24 = vsel %vm1153_vm9, 1.0, %v2015_v5  ;;  %v608_v33 = vadd.f32 %v1679_v23, %v542_v9 }
  0x8a   :  { %v937_v22 = vadd.f32 %v1763_v6, %v871_v8  ;;  %v1713_v16 = vsel %vm692_vm10, 1.0, %v2015_v5  ;;  %v1730_v26 = vsel %vm758_vm12, 1.0, %v2015_v5  ;;  %vm824_vm13 = vcmp.gt.f32.partialorder %v2708_v25, %v2288_v10 }
  0x8b   :  { %vm890_vm11 = vcmp.gt.f32.partialorder %v2708_v25, %v2291_v11  ;;  %v2799_v38 = vmul.f32 %v2187_v36, %v195_v47  ;;  %v674_v28 = vadd.f32 %v1696_v56, %v608_v33  ;;  %vm956_vm14 = vcmp.gt.f32.partialorder %v2708_v25, %v2294_v12 }
  0x8c   :  { %v1003_v27 = vadd.f32 %v1780_v20, %v937_v22  ;;  %vm1022_vm15 = vcmp.gt.f32.partialorder %v2708_v25, %v2298_v17  ;;  %v1747_v37 = vsel %vm824_vm13, 1.0, %v2015_v5  ;;  %v173_v13 = vsel %vm134_vm6, %v2722_v34, %v157_v14 }
  0x8d   :  { %vm231_vm0 = vcmp.gt.f32.partialorder %v2799_v38, %v2204_v44  ;;  %vm297_vm1 = vcmp.gt.f32.partialorder %v2799_v38, %v2207_v45  ;;  %vm363_vm2 = vcmp.gt.f32.partialorder %v2799_v38, %v2210_v46  ;;  %vm429_vm3 = vcmp.gt.f32.partialorder %v2799_v38, %v2216_v48 }
  0x8e   :  { %v1069_v29 = vadd.f32 %v1797_v21, %v1003_v27  ;;  %v740_v55 = vadd.f32 %v1713_v16, %v674_v28  ;;  %v1595_v32 = vsel %vm231_vm0, 1.0, %v2015_v5  ;;  %v1612_v35 = vsel %vm297_vm1, 1.0, %v2015_v5 }
  0x8f   :  { %v345_v47 = vadd.f32 %v1612_v35, %v1595_v32  ;;  %v1629_v39 = vsel %vm363_vm2, 1.0, %v2015_v5  ;;  %vm495_vm4 = vcmp.gt.f32.partialorder %v2799_v38, %v2223_v51  ;;  %v1646_v7 = vsel %vm429_vm3, 1.0, %v2015_v5 }
  0x90   :  { %v1135_v15 = vadd.f32 %v1814_v52, %v1069_v29  ;;  %v806_v40 = vadd.f32 %v1730_v26, %v740_v55  ;;  %v1764_v41 = vsel %vm890_vm11, 1.0, %v2015_v5  ;;  %v1781_v49 = vsel %vm956_vm14, 1.0, %v2015_v5  ;;  %v2876_v52 = vld [vmem:[%s3401_s2] ss:$0 sm:$0xff] }
  0x91   :  { %v411_v50 = vadd.f32 %v1629_v39, %v345_v47  ;;  %vm561_vm5 = vcmp.gt.f32.partialorder %v2799_v38, %v2240_v54  ;;  %vm1088_vm7 = vcmp.gt.f32.partialorder %v2708_v25, %v2301_v18  ;;  %v1663_v34 = vsel %vm495_vm4, 1.0, %v2015_v5 }
  0x92   :  { %v1201_v53 = vadd.f32 %v1831_v24, %v1135_v15  ;;  %v872_v19 = vadd.f32 %v1747_v37, %v806_v40  ;;  %vm1154_vm6 = vcmp.gt.f32.partialorder %v2708_v25, %v2335_v31  ;;  %vm627_vm8 = vcmp.gt.f32.partialorder %v2799_v38, %v2262_v63 }
  0x93   :  { %v477_v57 = vadd.f32 %v1646_v7, %v411_v50  ;;  %v196_v58 = vadd.f32 %v2175_v30, %v173_v13  ;;  %v1680_v62 = vsel %vm561_vm5, 1.0, %v2015_v5  ;;  %vm693_vm9 = vcmp.gt.f32.partialorder %v2799_v38, %v2265_v0  ;;  %v2857_v30 = vld [vmem:[%s3400_s1] ss:$0 sm:$0xff] }
  0x94   :  { %v1219_v59 = vmul.f32 %v2362_v42, %v1201_v53  ;;  %v938_v61 = vadd.f32 %v1764_v41, %v872_v19  ;;  %v1798_v3 = vsel %vm1022_vm15, 1.0, %v2015_v5  ;;  %vm759_vm10 = vcmp.gt.f32.partialorder %v2799_v38, %v2268_v1  ;;  %v2924_v50 = vld [vmem:[%s3402_s3] ss:$0 sm:$0xff] }
  0x95   :  { %v543_v60 = vadd.f32 %v1663_v34, %v477_v57  ;;  %v97_v4 = vmul.f32 %v2857_v30, %v74_v43  ;;  %v1815_v23 = vsel %vm1088_vm7, 1.0, %v2015_v5  ;;  %v1832_v8 = vsel %vm1154_vm6, 1.0, %v2015_v5 }
  0x96   :  { %1915 = vmatprep.mubr.f32.mxu0 %v1219_v59  ;;  %v1004_v6 = vadd.f32 %v1781_v49, %v938_v61  ;;  %v1697_v9 = vsel %vm627_vm8, 1.0, %v2015_v5  ;;  %v1714_v20 = vsel %vm693_vm9, 1.0, %v2015_v5  ;;  %v2871_v21 = vmul.f32 %v2187_v36, %v196_v58 }
  0x97   :  { %v609_v14 = vadd.f32 %v1680_v62, %v543_v60  ;;  %v119_v56 = vadd.f32 %v2876_v52, %v2726_v2  ;;  %v1731_v25 = vsel %vm759_vm10, 1.0, %v2015_v5  ;;  %vm825_vm12 = vcmp.gt.f32.partialorder %v2799_v38, %v2288_v10 }
  0x98   :  { %v1070_v22 = vadd.f32 %v1798_v3, %v1004_v6  ;;  %vm891_vm13 = vcmp.gt.f32.partialorder %v2799_v38, %v2291_v11  ;;  %vm232_vm11 = vcmp.gt.f32.partialorder %v2871_v21, %v2204_v44  ;;  %vm298_vm14 = vcmp.gt.f32.partialorder %v2871_v21, %v2207_v45  ;;  %v75_v3 = vld [vmem:[%s3399_s0 + $0x60] sm:$0xff] }
  0x99   :  { %v675_v24 = vadd.f32 %v1697_v9, %v609_v14  ;;  %vm364_vm15 = vcmp.gt.f32.partialorder %v2871_v21, %v2210_v46  ;;  %v1596_v33 = vsel %vm232_vm11, 1.0, %v2015_v5  ;;  %v1613_v16 = vsel %vm298_vm14, 1.0, %v2015_v5 }
  0x9a   :  { %v1136_v2 = vadd.f32 %v1815_v23, %v1070_v22  ;;  %v1630_v26 = vsel %vm364_vm15, 1.0, %v2015_v5  ;;  %v346_v28 = vadd.f32 %v1613_v16, %v1596_v33  ;;  %vm430_vm0 = vcmp.gt.f32.partialorder %v2871_v21, %v2216_v48 }
  0x9b   :  { %v741_v27 = vadd.f32 %v1714_v20, %v675_v24  ;;  %vm496_vm1 = vcmp.gt.f32.partialorder %v2871_v21, %v2223_v51  ;;  %v1748_v55 = vsel %vm825_vm12, 1.0, %v2015_v5  ;;  %v1647_v32 = vsel %vm430_vm0, 1.0, %v2015_v5 }
  0x9c   :  { %v1202_v29 = vadd.f32 %v1832_v8, %v1136_v2  ;;  %v120_v35 = vadd.f32 %v2876_v52, %v97_v4  ;;  %vm957_vm2 = vcmp.gt.f32.partialorder %v2799_v38, %v2294_v12  ;;  %v412_v47 = vadd.f32 %v1630_v26, %v346_v28  ;;  %v2948_v8 = vld [vmem:[%s3403_s4] ss:$0 sm:$0xff] }
  0x9d   :  { %v807_v37 = vadd.f32 %v1731_v25, %v741_v27  ;;  %vm562_vm3 = vcmp.gt.f32.partialorder %v2871_v21, %v2240_v54  ;;  %v1765_v15 = vsel %vm891_vm13, 1.0, %v2015_v5  ;;  %vm1023_vm4 = vcmp.gt.f32.partialorder %v2799_v38, %v2298_v17 }
  0x9e   :  { %v1220_v39 = vmul.f32 %v2362_v42, %v1202_v29  ;;  %v1664_v40 = vsel %vm496_vm1, 1.0, %v2015_v5  ;;  %vm1089_vm5 = vcmp.gt.f32.partialorder %v2799_v38, %v2301_v18  ;;  %v478_v13 = vadd.f32 %v1647_v32, %v412_v47 }
  0x9f   :  { %v873_v7 = vadd.f32 %v1748_v55, %v807_v37  ;;  %vm628_vm7 = vcmp.gt.f32.partialorder %v2871_v21, %v2262_v63  ;;  %v1782_v41 = vsel %vm957_vm2, 1.0, %v2015_v5  ;;  %v1681_v49 = vsel %vm562_vm3, 1.0, %v2015_v5 }
  0xa0   :  { %1916 = vmatmul.mubr.f32.gmra.mrb[6].mxu0 %v1220_v39  ;;  %vm694_vm6 = vcmp.gt.f32.partialorder %v2871_v21, %v2265_v0  ;;  %v158_v53 = vmul.f32 %v2924_v50, %v119_v56  ;;  %v1799_v34 = vsel %vm1023_vm4, 1.0, %v2015_v5  ;;  %v544_v43 = vadd.f32 %v1664_v40, %v478_v13 }
  0xa1   :  { %v939_v19 = vadd.f32 %v1765_v15, %v873_v7  ;;  %vm135_vm8 = vcmp.gt.f32.partialorder %v119_v56, 0.0  ;;  %v1816_v57 = vsel %vm1089_vm5, 1.0, %v2015_v5  ;;  %vm1155_vm9 = vcmp.gt.f32.partialorder %v2799_v38, %v2335_v31  ;;  %v76_v7 = vld [vmem:[%s3399_s0 + $0x68] sm:$0xff] }
  0xa2   :  { %v1698_v58 = vsel %vm628_vm7, 1.0, %v2015_v5  ;;  %vm760_vm10 = vcmp.gt.f32.partialorder %v2871_v21, %v2268_v1  ;;  %v610_v61 = vadd.f32 %v1681_v49, %v544_v43  ;;  %v1715_v62 = vsel %vm694_vm6, 1.0, %v2015_v5  ;;  %v77_v43 = vld [vmem:[%s3399_s0 + $0x70] sm:$0xff] }
  0xa3   :  { %v1005_v59 = vadd.f32 %v1782_v41, %v939_v19  ;;  %vm826_vm12 = vcmp.gt.f32.partialorder %v2871_v21, %v2288_v10  ;;  %vm892_vm13 = vcmp.gt.f32.partialorder %v2871_v21, %v2291_v11  ;;  %vm958_vm11 = vcmp.gt.f32.partialorder %v2871_v21, %v2294_v12 }
  0xa4   :  { %v174_v60 = vsel %vm135_vm8, %v119_v56, %v158_v53  ;;  %v159_v4 = vmul.f32 %v2924_v50, %v120_v35  ;;  %v676_v23 = vadd.f32 %v1698_v58, %v610_v61  ;;  %vm136_vm14 = vcmp.gt.f32.partialorder %v120_v35, 0.0 }
  0xa5   :  { %v1071_v6 = vadd.f32 %v1799_v34, %v1005_v59  ;;  %v197_v9 = vadd.f32 %v2948_v8, %v174_v60  ;;  %v1833_v14 = vsel %vm1155_vm9, 1.0, %v2015_v5  ;;  %v1732_v20 = vsel %vm760_vm10, 1.0, %v2015_v5 }
  0xa6   :  { %v98_v56 = vmul.f32 %v2857_v30, %v75_v3  ;;  %v742_v25 = vadd.f32 %v1715_v62, %v676_v23  ;;  %vm1024_vm15 = vcmp.gt.f32.partialorder %v2871_v21, %v2298_v17  ;;  %v1749_v38 = vsel %vm826_vm12, 1.0, %v2015_v5 }
  0xa7   :  { %v1137_v22 = vadd.f32 %v1816_v57, %v1071_v6  ;;  %v2963_v24 = vmul.f32 %v2187_v36, %v197_v9  ;;  %v1766_v2 = vsel %vm892_vm13, 1.0, %v2015_v5  ;;  %v1783_v33 = vsel %vm958_vm11, 1.0, %v2015_v5 }
  0xa8   :  { %v175_v16 = vsel %vm136_vm14, %v120_v35, %v159_v4  ;;  %v808_v27 = vadd.f32 %v1732_v20, %v742_v25  ;;  %vm1090_vm4 = vcmp.gt.f32.partialorder %v2871_v21, %v2301_v18  ;;  %vm1156_vm5 = vcmp.gt.f32.partialorder %v2871_v21, %v2335_v31 }
  0xa9   :  { %v1203_v26 = vadd.f32 %v1833_v14, %v1137_v22  ;;  %vm233_vm0 = vcmp.gt.f32.partialorder %v2963_v24, %v2204_v44  ;;  %vm299_vm1 = vcmp.gt.f32.partialorder %v2963_v24, %v2207_v45  ;;  %vm365_vm2 = vcmp.gt.f32.partialorder %v2963_v24, %v2210_v46 }
  0xaa   :  { %v1597_v28 = vsel %vm233_vm0, 1.0, %v2015_v5  ;;  %v1614_v29 = vsel %vm299_vm1, 1.0, %v2015_v5  ;;  %vm431_vm3 = vcmp.gt.f32.partialorder %v2963_v24, %v2216_v48  ;;  %v874_v32 = vadd.f32 %v1749_v38, %v808_v27 }
  0xab   :  { %v1221_v55 = vmul.f32 %v2362_v42, %v1203_v26  ;;  %v347_v35 = vadd.f32 %v1614_v29, %v1597_v28  ;;  %v1631_v37 = vsel %vm365_vm2, 1.0, %v2015_v5  ;;  %v1648_v47 = vsel %vm431_vm3, 1.0, %v2015_v5 }
  0xac   :  { %vm497_vm7 = vcmp.gt.f32.partialorder %v2963_v24, %v2223_v51  ;;  %v940_v39 = vadd.f32 %v1766_v2, %v874_v32  ;;  %vm563_vm6 = vcmp.gt.f32.partialorder %v2963_v24, %v2240_v54  ;;  %v121_v40 = vadd.f32 %v2876_v52, %v98_v56 }
  0xad   :  { %1918 = vmatprep.mubr.f32.mxu1 %v1221_v55  ;;  %v413_v15 = vadd.f32 %v1631_v37, %v347_v35  ;;  %v1800_v13 = vsel %vm1024_vm15, 1.0, %v2015_v5  ;;  %v1665_v41 = vsel %vm497_vm7, 1.0, %v2015_v5  ;;  %v198_v49 = vadd.f32 %v2948_v8, %v175_v16 }
  0xae   :  { %v1006_v53 = vadd.f32 %v1783_v33, %v940_v39  ;;  %v1817_v19 = vsel %vm1090_vm4, 1.0, %v2015_v5  ;;  %vm629_vm8 = vcmp.gt.f32.partialorder %v2963_v24, %v2262_v63  ;;  %v1834_v57 = vsel %vm1156_vm5, 1.0, %v2015_v5 }
  0xaf   :  { %v479_v34 = vadd.f32 %v1648_v47, %v413_v15  ;;  %v1682_v58 = vsel %vm563_vm6, 1.0, %v2015_v5  ;;  %vm695_vm9 = vcmp.gt.f32.partialorder %v2963_v24, %v2265_v0  ;;  %v99_v59 = vmul.f32 %v2857_v30, %v76_v7 }
  0xb0   :  { %v1072_v61 = vadd.f32 %v1800_v13, %v1006_v53  ;;  %vm137_vm10 = vcmp.gt.f32.partialorder %v121_v40, 0.0  ;;  %v160_v3 = vmul.f32 %v2924_v50, %v121_v40  ;;  %v1699_v60 = vsel %vm629_vm8, 1.0, %v2015_v5 }
  0xb1   :  { %v545_v62 = vadd.f32 %v1665_v41, %v479_v34  ;;  %vm761_vm12 = vcmp.gt.f32.partialorder %v2963_v24, %v2268_v1  ;;  %v3027_v21 = vmul.f32 %v2187_v36, %v198_v49  ;;  %v100_v4 = vmul.f32 %v2857_v30, %v77_v43  ;;  %v78_v49 = vld [vmem:[%s3399_s0 + $0x78] sm:$0xff] }
  0xb2   :  { %v1138_v6 = vadd.f32 %v1817_v19, %v1072_v61  ;;  %v1716_v9 = vsel %vm695_vm9, 1.0, %v2015_v5  ;;  %vm827_vm13 = vcmp.gt.f32.partialorder %v2963_v24, %v2288_v10  ;;  %v1733_v25 = vsel %vm761_vm12, 1.0, %v2015_v5 }
  0xb3   :  { %v611_v23 = vadd.f32 %v1682_v58, %v545_v62  ;;  %vm234_vm11 = vcmp.gt.f32.partialorder %v3027_v21, %v2204_v44  ;;  %vm300_vm14 = vcmp.gt.f32.partialorder %v3027_v21, %v2207_v45  ;;  %vm366_vm15 = vcmp.gt.f32.partialorder %v3027_v21, %v2210_v46 }
  0xb4   :  { %vm432_vm0 = vcmp.gt.f32.partialorder %v3027_v21, %v2216_v48  ;;  %v1204_v14 = vadd.f32 %v1834_v57, %v1138_v6  ;;  %v1598_v56 = vsel %vm234_vm11, 1.0, %v2015_v5  ;;  %v1615_v22 = vsel %vm300_vm14, 1.0, %v2015_v5 }
  0xb5   :  { %v677_v20 = vadd.f32 %v1699_v60, %v611_v23  ;;  %v348_v38 = vadd.f32 %v1615_v22, %v1598_v56  ;;  %v1632_v2 = vsel %vm366_vm15, 1.0, %v2015_v5  ;;  %vm498_vm1 = vcmp.gt.f32.partialorder %v3027_v21, %v2223_v51 }
  0xb6   :  { %v1222_v33 = vmul.f32 %v2362_v42, %v1204_v14  ;;  %vm893_vm2 = vcmp.gt.f32.partialorder %v2963_v24, %v2291_v11  ;;  %v1649_v26 = vsel %vm432_vm0, 1.0, %v2015_v5  ;;  %v1750_v27 = vsel %vm827_vm13, 1.0, %v2015_v5 }
  0xb7   :  { %v743_v16 = vadd.f32 %v1716_v9, %v677_v20  ;;  %vm959_vm3 = vcmp.gt.f32.partialorder %v2963_v24, %v2294_v12  ;;  %v414_v28 = vadd.f32 %v1632_v2, %v348_v38  ;;  %vm564_vm4 = vcmp.gt.f32.partialorder %v3027_v21, %v2240_v54 }
  0xb8   :  { %1919 = vmatmul.mubr.f32.vlgmr.msra.gmra.mrb[0].mxu1 %v1222_v33  ;;  %vm1025_vm5 = vcmp.gt.f32.partialorder %v2963_v24, %v2298_v17  ;;  %v1666_v55 = vsel %vm498_vm1, 1.0, %v2015_v5  ;;  %v176_v32 = vsel %vm137_vm10, %v121_v40, %v160_v3  ;;  %v1767_v35 = vsel %vm893_vm2, 1.0, %v2015_v5 }
  0xb9   :  { %v809_v29 = vadd.f32 %v1733_v25, %v743_v16  ;;  %v480_v37 = vadd.f32 %v1649_v26, %v414_v28  ;;  %vm630_vm7 = vcmp.gt.f32.partialorder %v3027_v21, %v2262_v63  ;;  %v3067_v47 = vadd.f32 %v2876_v52, %v99_v59 }
  0xba   :  { %v1784_v15 = vsel %vm959_vm3, 1.0, %v2015_v5  ;;  %v1683_v7 = vsel %vm564_vm4, 1.0, %v2015_v5  ;;  %v3072_v13 = vadd.f32 %v2876_v52, %v100_v4  ;;  %v1801_v41 = vsel %vm1025_vm5, 1.0, %v2015_v5 }
  0xbb   :  { %v875_v39 = vadd.f32 %v1750_v27, %v809_v29  ;;  %vm1091_vm6 = vcmp.gt.f32.partialorder %v2963_v24, %v2301_v18  ;;  %v546_v40 = vadd.f32 %v1666_v55, %v480_v37  ;;  %vm696_vm8 = vcmp.gt.f32.partialorder %v3027_v21, %v2265_v0 }
  0xbc   :  { %vm1157_vm9 = vcmp.gt.f32.partialorder %v2963_v24, %v2335_v31  ;;  %v1700_v19 = vsel %vm630_vm7, 1.0, %v2015_v5  ;;  %vm762_vm10 = vcmp.gt.f32.partialorder %v3027_v21, %v2268_v1  ;;  %vm828_vm12 = vcmp.gt.f32.partialorder %v3027_v21, %v2288_v10 }
  0xbd   :  { %v941_v53 = vadd.f32 %v1767_v35, %v875_v39  ;;  %v612_v34 = vadd.f32 %v1683_v7, %v546_v40  ;;  %vm894_vm13 = vcmp.gt.f32.partialorder %v3027_v21, %v2291_v11  ;;  %v199_v43 = vadd.f32 %v2948_v8, %v176_v32 }
  0xbe   :  { %v1818_v58 = vsel %vm1091_vm6, 1.0, %v2015_v5  ;;  %v1717_v59 = vsel %vm696_vm8, 1.0, %v2015_v5  ;;  %v101_v24 = vmul.f32 %v2857_v30, %v78_v49  ;;  %v1835_v61 = vsel %vm1157_vm9, 1.0, %v2015_v5 }
  0xbf   :  { %v1007_v57 = vadd.f32 %v1784_v15, %v941_v53  ;;  %v678_v62 = vadd.f32 %v1700_v19, %v612_v34  ;;  %v1734_v3 = vsel %vm762_vm10, 1.0, %v2015_v5  ;;  %v3098_v60 = vmul.f32 %v2187_v36, %v199_v43 }
  0xc0   :  { %v1751_v6 = vsel %vm828_vm12, 1.0, %v2015_v5  ;;  %v1768_v23 = vsel %vm894_vm13, 1.0, %v2015_v5  ;;  %vm960_vm11 = vcmp.gt.f32.partialorder %v3027_v21, %v2294_v12  ;;  %vm1026_vm3 = vcmp.gt.f32.partialorder %v3027_v21, %v2298_v17 }
  0xc1   :  { %v1073_v4 = vadd.f32 %v1801_v41, %v1007_v57  ;;  %v744_v9 = vadd.f32 %v1717_v59, %v678_v62  ;;  %vm235_vm14 = vcmp.gt.f32.partialorder %v3098_v60, %v2204_v44  ;;  %vm301_vm15 = vcmp.gt.f32.partialorder %v3098_v60, %v2207_v45 }
  0xc2   :  { %vm367_vm0 = vcmp.gt.f32.partialorder %v3098_v60, %v2210_v46  ;;  %v1599_v14 = vsel %vm235_vm14, 1.0, %v2015_v5  ;;  %v1616_v20 = vsel %vm301_vm15, 1.0, %v2015_v5  ;;  %vm433_vm1 = vcmp.gt.f32.partialorder %v3098_v60, %v2216_v48 }
  0xc3   :  { %v1139_v30 = vadd.f32 %v1818_v58, %v1073_v4  ;;  %v1633_v56 = vsel %vm367_vm0, 1.0, %v2015_v5  ;;  %v810_v22 = vadd.f32 %v1734_v3, %v744_v9  ;;  %v349_v25 = vadd.f32 %v1616_v20, %v1599_v14 }
  0xc4   :  { %vm499_vm2 = vcmp.gt.f32.partialorder %v3098_v60, %v2223_v51  ;;  %v1785_v2 = vsel %vm960_vm11, 1.0, %v2015_v5  ;;  %v1650_v33 = vsel %vm433_vm1, 1.0, %v2015_v5  ;;  %vm565_vm4 = vcmp.gt.f32.partialorder %v3098_v60, %v2240_v54 }
  0xc5   :  { %v1205_v38 = vadd.f32 %v1835_v61, %v1139_v30  ;;  %v876_v16 = vadd.f32 %v1751_v6, %v810_v22  ;;  %v415_v26 = vadd.f32 %v1633_v56, %v349_v25  ;;  %v161_v27 = vmul.f32 %v2924_v50, %v3067_v47 }
  0xc6   :  { %vm1092_vm5 = vcmp.gt.f32.partialorder %v3027_v21, %v2301_v18  ;;  %v1667_v29 = vsel %vm499_vm2, 1.0, %v2015_v5  ;;  %vm138_vm7 = vcmp.gt.f32.partialorder %v3067_v47, 0.0  ;;  %v1802_v32 = vsel %vm1026_vm3, 1.0, %v2015_v5 }
  0xc7   :  { %v1223_v28 = vmul.f32 %v2362_v42, %v1205_v38  ;;  %v942_v55 = vadd.f32 %v1768_v23, %v876_v16  ;;  %v481_v35 = vadd.f32 %v1650_v33, %v415_v26  ;;  %vm631_vm6 = vcmp.gt.f32.partialorder %v3098_v60, %v2262_v63 }
  0xc8   :  { %vm1158_vm8 = vcmp.gt.f32.partialorder %v3027_v21, %v2335_v31  ;;  %v1684_v37 = vsel %vm565_vm4, 1.0, %v2015_v5  ;;  %vm139_vm9 = vcmp.gt.f32.partialorder %v3072_v13, 0.0  ;;  %v162_v39 = vmul.f32 %v2924_v50, %v3072_v13 }
  0xc9   :  { %1921 = vmatprep.mubr.f32.mxu1 %v1223_v28  ;;  %v1008_v15 = vadd.f32 %v1785_v2, %v942_v55  ;;  %v547_v7 = vadd.f32 %v1667_v29, %v481_v35  ;;  %vm697_vm10 = vcmp.gt.f32.partialorder %v3098_v60, %v2265_v0  ;;  %v177_v41 = vsel %vm138_vm7, %v3067_v47, %v161_v27 }
  0xca   :  { %v1819_v40 = vsel %vm1092_vm5, 1.0, %v2015_v5  ;;  %v1701_v49 = vsel %vm631_vm6, 1.0, %v2015_v5  ;;  %vm763_vm12 = vcmp.gt.f32.partialorder %v3098_v60, %v2268_v1  ;;  %v1836_v19 = vsel %vm1158_vm8, 1.0, %v2015_v5 }
  0xcb   :  { %v1074_v53 = vadd.f32 %v1802_v32, %v1008_v15  ;;  %v613_v34 = vadd.f32 %v1684_v37, %v547_v7  ;;  %vm829_vm13 = vcmp.gt.f32.partialorder %v3098_v60, %v2288_v10  ;;  %v1718_v43 = vsel %vm697_vm10, 1.0, %v2015_v5 }
  0xcc   :  { %vm895_vm11 = vcmp.gt.f32.partialorder %v3098_v60, %v2291_v11  ;;  %v200_v21 = vadd.f32 %v2948_v8, %v177_v41  ;;  %v178_v47 = vsel %vm139_vm9, %v3072_v13, %v162_v39  ;;  %v1735_v59 = vsel %vm763_vm12, 1.0, %v2015_v5 }
  0xcd   :  { %v1140_v57 = vadd.f32 %v1819_v40, %v1074_v53  ;;  %v679_v58 = vadd.f32 %v1701_v49, %v613_v34  ;;  %v124_v61 = vadd.f32 %v2876_v52, %v101_v24  ;;  %v1752_v62 = vsel %vm829_vm13, 1.0, %v2015_v5 }
  0xce   :  { %vm961_vm14 = vcmp.gt.f32.partialorder %v3098_v60, %v2294_v12  ;;  %vm1027_vm15 = vcmp.gt.f32.partialorder %v3098_v60, %v2298_v17  ;;  %v3167_v3 = vmul.f32 %v2187_v36, %v200_v21  ;;  %v1769_v13 = vsel %vm895_vm11, 1.0, %v2015_v5 }
  0xcf   :  { %v1206_v4 = vadd.f32 %v1836_v19, %v1140_v57  ;;  %v745_v6 = vadd.f32 %v1718_v43, %v679_v58  ;;  %v201_v23 = vadd.f32 %v2948_v8, %v178_v47  ;;  %v1786_v14 = vsel %vm961_vm14, 1.0, %v2015_v5 }
  0xd0   :  { %vm236_vm0 = vcmp.gt.f32.partialorder %v3167_v3, %v2204_v44  ;;  %vm302_vm1 = vcmp.gt.f32.partialorder %v3167_v3, %v2207_v45  ;;  %vm368_vm2 = vcmp.gt.f32.partialorder %v3167_v3, %v2210_v46  ;;  %vm434_vm3 = vcmp.gt.f32.partialorder %v3167_v3, %v2216_v48 }
  0xd1   :  { %v1224_v52 = vmul.f32 %v2362_v42, %v1206_v4  ;;  %v811_v24 = vadd.f32 %v1735_v59, %v745_v6  ;;  %v1600_v9 = vsel %vm236_vm0, 1.0, %v2015_v5  ;;  %v1617_v30 = vsel %vm302_vm1, 1.0, %v2015_v5 }
  0xd2   :  { %v350_v20 = vadd.f32 %v1617_v30, %v1600_v9  ;;  %v1634_v56 = vsel %vm368_vm2, 1.0, %v2015_v5  ;;  %vm500_vm4 = vcmp.gt.f32.partialorder %v3167_v3, %v2223_v51  ;;  %vm1093_vm5 = vcmp.gt.f32.partialorder %v3098_v60, %v2301_v18 }
  0xd3   :  { %1922 = vmatmul.mubr.f32.gmra.mrb[2].mxu1 %v1224_v52  ;;  %v877_v22 = vadd.f32 %v1752_v62, %v811_v24  ;;  %vm1159_vm7 = vcmp.gt.f32.partialorder %v3098_v60, %v2335_v31  ;;  %v1651_v25 = vsel %vm434_vm3, 1.0, %v2015_v5  ;;  %vm566_vm6 = vcmp.gt.f32.partialorder %v3167_v3, %v2240_v54 }
  0xd4   :  { %v416_v38 = vadd.f32 %v1634_v56, %v350_v20  ;;  %vm140_vm8 = vcmp.gt.f32.partialorder %v124_v61, 0.0  ;;  %v163_v2 = vmul.f32 %v2924_v50, %v124_v61  ;;  %v1668_v16 = vsel %vm500_vm4, 1.0, %v2015_v5 }
  0xd5   :  { %v943_v33 = vadd.f32 %v1769_v13, %v877_v22  ;;  %vm632_vm9 = vcmp.gt.f32.partialorder %v3167_v3, %v2262_v63  ;;  %v3198_v26 = vmul.f32 %v2187_v36, %v201_v23  ;;  %v1803_v27 = vsel %vm1027_vm15, 1.0, %v2015_v5 }
  0xd6   :  { %v482_v28 = vadd.f32 %v1651_v25, %v416_v38  ;;  %vm698_vm10 = vcmp.gt.f32.partialorder %v3167_v3, %v2265_v0  ;;  %v1820_v50 = vsel %vm1093_vm5, 1.0, %v2015_v5  ;;  %v1685_v55 = vsel %vm566_vm6, 1.0, %v2015_v5 }
  0xd7   :  { %v1009_v29 = vadd.f32 %v1786_v14, %v943_v33  ;;  %v1837_v32 = vsel %vm1159_vm7, 1.0, %v2015_v5  ;;  %v1702_v37 = vsel %vm632_vm9, 1.0, %v2015_v5  ;;  %v179_v39 = vsel %vm140_vm8, %v124_v61, %v163_v2 }
  0xd8   :  { %v548_v35 = vadd.f32 %v1668_v16, %v482_v28  ;;  %v1719_v7 = vsel %vm698_vm10, 1.0, %v2015_v5  ;;  %vm764_vm12 = vcmp.gt.f32.partialorder %v3167_v3, %v2268_v1  ;;  %vm237_vm13 = vcmp.gt.f32.partialorder %v3198_v26, %v2204_v44 }
  0xd9   :  { %v1075_v15 = vadd.f32 %v1803_v27, %v1009_v29  ;;  %vm830_vm11 = vcmp.gt.f32.partialorder %v3167_v3, %v2288_v10  ;;  %v1601_v60 = vsel %vm237_vm13, 1.0, %v2015_v5  ;;  %vm303_vm14 = vcmp.gt.f32.partialorder %v3198_v26, %v2207_v45 }
  0xda   :  { %v614_v41 = vadd.f32 %v1685_v55, %v548_v35  ;;  %v1618_v49 = vsel %vm303_vm14, 1.0, %v2015_v5  ;;  %vm369_vm15 = vcmp.gt.f32.partialorder %v3198_v26, %v2210_v46  ;;  %vm435_vm0 = vcmp.gt.f32.partialorder %v3198_v26, %v2216_v48 }
  0xdb   :  { %v1141_v40 = vadd.f32 %v1820_v50, %v1075_v15  ;;  %vm896_vm1 = vcmp.gt.f32.partialorder %v3167_v3, %v2291_v11  ;;  %v351_v19 = vadd.f32 %v1618_v49, %v1601_v60  ;;  %v1635_v34 = vsel %vm369_vm15, 1.0, %v2015_v5 }
  0xdc   :  { %v680_v53 = vadd.f32 %v1702_v37, %v614_v41  ;;  %v1736_v21 = vsel %vm764_vm12, 1.0, %v2015_v5  ;;  %v1652_v47 = vsel %vm435_vm0, 1.0, %v2015_v5  ;;  %vm501_vm2 = vcmp.gt.f32.partialorder %v3198_v26, %v2223_v51 }
  0xdd   :  { %v1207_v43 = vadd.f32 %v1837_v32, %v1141_v40  ;;  %v417_v58 = vadd.f32 %v1635_v34, %v351_v19  ;;  %vm567_vm3 = vcmp.gt.f32.partialorder %v3198_v26, %v2240_v54  ;;  %v202_v59 = vadd.f32 %v2948_v8, %v179_v39 }
  0xde   :  { %v746_v57 = vadd.f32 %v1719_v7, %v680_v53  ;;  %v1753_v62 = vsel %vm830_vm11, 1.0, %v2015_v5  ;;  %v1770_v4 = vsel %vm896_vm1, 1.0, %v2015_v5  ;;  %v1669_v6 = vsel %vm501_vm2, 1.0, %v2015_v5 }
  0xdf   :  { %v1225_v61 = vmul.f32 %v2362_v42, %v1207_v43  ;;  %vm962_vm4 = vcmp.gt.f32.partialorder %v3167_v3, %v2294_v12  ;;  %v483_v23 = vadd.f32 %v1652_v47, %v417_v58  ;;  %vm633_vm5 = vcmp.gt.f32.partialorder %v3198_v26, %v2262_v63 }
  0xe0   :  { %v812_v13 = vadd.f32 %v1736_v21, %v746_v57  ;;  %vm1028_vm7 = vcmp.gt.f32.partialorder %v3167_v3, %v2298_v17  ;;  %vm1094_vm6 = vcmp.gt.f32.partialorder %v3167_v3, %v2301_v18  ;;  %vm1160_vm8 = vcmp.gt.f32.partialorder %v3167_v3, %v2335_v31 }
  0xe1   :  { %1924 = vmatprep.mubr.f32.mxu1 %v1225_v61  ;;  %v1686_v8 = vsel %vm567_vm3, 1.0, %v2015_v5  ;;  %v549_v24 = vadd.f32 %v1669_v6, %v483_v23  ;;  %vm699_vm9 = vcmp.gt.f32.partialorder %v3198_v26, %v2265_v0  ;;  %vm765_vm10 = vcmp.gt.f32.partialorder %v3198_v26, %v2268_v1 }
  0xe2   :  { %v878_v52 = vadd.f32 %v1753_v62, %v812_v13  ;;  %v1787_v9 = vsel %vm962_vm4, 1.0, %v2015_v5  ;;  %v1703_v30 = vsel %vm633_vm5, 1.0, %v2015_v5  ;;  %v1804_v20 = vsel %vm1028_vm7, 1.0, %v2015_v5 }
  0xe3   :  { %v1821_v56 = vsel %vm1094_vm6, 1.0, %v2015_v5  ;;  %v615_v3 = vadd.f32 %v1686_v8, %v549_v24  ;;  %v1838_v22 = vsel %vm1160_vm8, 1.0, %v2015_v5  ;;  %v1720_v25 = vsel %vm699_vm9, 1.0, %v2015_v5 }
  0xe4   :  { %v944_v14 = vadd.f32 %v1770_v4, %v878_v52  ;;  %v1737_v38 = vsel %vm765_vm10, 1.0, %v2015_v5  ;;  %v3268_v2 = vmul.f32 %v2187_v36, %v202_v59  ;;  %vm831_vm12 = vcmp.gt.f32.partialorder %v3198_v26, %v2288_v10 }
  0xe5   :  { %v681_v16 = vadd.f32 %v1703_v30, %v615_v3  ;;  %vm897_vm13 = vcmp.gt.f32.partialorder %v3198_v26, %v2291_v11  ;;  %v1754_v50 = vsel %vm831_vm12, 1.0, %v2015_v5  ;;  %vm963_vm2 = vcmp.gt.f32.partialorder %v3198_v26, %v2294_v12 }
  0xe6   :  { %v1010_v33 = vadd.f32 %v1787_v9, %v944_v14  ;;  %vm238_vm11 = vcmp.gt.f32.partialorder %v3268_v2, %v2204_v44  ;;  %vm304_vm14 = vcmp.gt.f32.partialorder %v3268_v2, %v2207_v45  ;;  %vm370_vm15 = vcmp.gt.f32.partialorder %v3268_v2, %v2210_v46 }
  0xe7   :  { %vm436_vm0 = vcmp.gt.f32.partialorder %v3268_v2, %v2216_v48  ;;  %v747_v27 = vadd.f32 %v1720_v25, %v681_v16  ;;  %v1602_v28 = vsel %vm238_vm11, 1.0, %v2015_v5  ;;  %v1619_v29 = vsel %vm304_vm14, 1.0, %v2015_v5 }
  0xe8   :  { %v1076_v36 = vadd.f32 %v1804_v20, %v1010_v33  ;;  %v352_v55 = vadd.f32 %v1619_v29, %v1602_v28  ;;  %v1636_v44 = vsel %vm370_vm15, 1.0, %v2015_v5  ;;  %vm502_vm1 = vcmp.gt.f32.partialorder %v3268_v2, %v2223_v51 }
  0xe9   :  { %v813_v32 = vadd.f32 %v1737_v38, %v747_v27  ;;  %v1653_v46 = vsel %vm436_vm0, 1.0, %v2015_v5  ;;  %v1771_v48 = vsel %vm897_vm13, 1.0, %v2015_v5  ;;  %vm568_vm3 = vcmp.gt.f32.partialorder %v3268_v2, %v2240_v54 }
  0xea   :  { %v1142_v45 = vadd.f32 %v1821_v56, %v1076_v36  ;;  %v418_v35 = vadd.f32 %v1636_v44, %v352_v55  ;;  %vm1029_vm4 = vcmp.gt.f32.partialorder %v3198_v26, %v2298_v17  ;;  %v1670_v51 = vsel %vm502_vm1, 1.0, %v2015_v5 }
  0xeb   :  { %v879_v39 = vadd.f32 %v1754_v50, %v813_v32  ;;  %v1788_v15 = vsel %vm963_vm2, 1.0, %v2015_v5  ;;  %vm634_vm5 = vcmp.gt.f32.partialorder %v3268_v2, %v2262_v63  ;;  %vm1095_vm7 = vcmp.gt.f32.partialorder %v3198_v26, %v2301_v18 }
  0xec   :  { %v1208_v37 = vadd.f32 %v1838_v22, %v1142_v45  ;;  %v484_v7 = vadd.f32 %v1653_v46, %v418_v35  ;;  %v1687_v54 = vsel %vm568_vm3, 1.0, %v2015_v5  ;;  %v1805_v40 = vsel %vm1029_vm4, 1.0, %v2015_v5 }
  0xed   :  { %v945_v60 = vadd.f32 %v1771_v48, %v879_v39  ;;  %vm700_vm6 = vcmp.gt.f32.partialorder %v3268_v2, %v2265_v0  ;;  %vm1161_vm8 = vcmp.gt.f32.partialorder %v3198_v26, %v2335_v31  ;;  %v1704_v63 = vsel %vm634_vm5, 1.0, %v2015_v5 }
  0xee   :  { %v1226_v41 = vmul.f32 %v2362_v42, %v1208_v37  ;;  %v550_v49 = vadd.f32 %v1670_v51, %v484_v7  ;;  %v1822_v19 = vsel %vm1095_vm7, 1.0, %v2015_v5  ;;  %vm766_vm9 = vcmp.gt.f32.partialorder %v3268_v2, %v2268_v1 }
  0xef   :  { %v1011_v53 = vadd.f32 %v1788_v15, %v945_v60  ;;  %v1721_v21 = vsel %vm700_vm6, 1.0, %v2015_v5  ;;  %v1839_v47 = vsel %vm1161_vm8, 1.0, %v2015_v5  ;;  %vm832_vm10 = vcmp.gt.f32.partialorder %v3268_v2, %v2288_v10 }
  0xf0   :  { %1925 = vmatmul.mubr.f32.gmra.mrb[4].mxu1 %v1226_v41  ;;  %v616_v34 = vadd.f32 %v1687_v54, %v550_v49  ;;  %v1738_v26 = vsel %vm766_vm9, 1.0, %v2015_v5  ;;  %vm898_vm12 = vcmp.gt.f32.partialorder %v3268_v2, %v2291_v11  ;;  %v1755_v61 = vsel %vm832_vm10, 1.0, %v2015_v5 }
  0xf1   :  { %v1077_v43 = vadd.f32 %v1805_v40, %v1011_v53  ;;  %vm964_vm13 = vcmp.gt.f32.partialorder %v3268_v2, %v2294_v12  ;;  %v1772_v4 = vsel %vm898_vm12, 1.0, %v2015_v5  ;;  %vm1030_vm11 = vcmp.gt.f32.partialorder %v3268_v2, %v2298_v17 }
  0xf2   :  { %v682_v57 = vadd.f32 %v1704_v63, %v616_v34  ;;  %v1789_v10 = vsel %vm964_vm13, 1.0, %v2015_v5  ;;  %vm1096_vm14 = vcmp.gt.f32.partialorder %v3268_v2, %v2301_v18  ;;  %v1806_v11 = vsel %vm1030_vm11, 1.0, %v2015_v5 }
  0xf3   :  { %v1143_v0 = vadd.f32 %v1822_v19, %v1077_v43  ;;  %vm1162_vm15 = vcmp.gt.f32.partialorder %v3268_v2, %v2335_v31  ;;  %v1823_v12 = vsel %vm1096_vm14, 1.0, %v2015_v5 }
  0xf4   :  { %v748_v58 = vadd.f32 %v1721_v21, %v682_v57  ;;  %v1840_v52 = vsel %vm1162_vm15, 1.0, %v2015_v5 }
  0xf5   :  { %v1209_v59 = vadd.f32 %v1839_v47, %v1143_v0 }
  0xf6   :  { %v814_v1 = vadd.f32 %v1738_v26, %v748_v58 }
  0xf7   :  { %v1227_v62 = vmul.f32 %v2362_v42, %v1209_v59 }
  0xf8   :  { %v880_v6 = vadd.f32 %v1755_v61, %v814_v1 }
  0xf9   :  { %1927 = vmatprep.mubr.f32.mxu1 %v1227_v62 }
  0xfa   :  { %v946_v13 = vadd.f32 %v1772_v4, %v880_v6 }
  0xfc   :  { %v1012_v23 = vadd.f32 %v1789_v10, %v946_v13 }
  0xfe   :  { %v1078_v8 = vadd.f32 %v1806_v11, %v1012_v23 }
 0x100   :  { %v1144_v24 = vadd.f32 %v1823_v12, %v1078_v8 }
 0x102   :  { %v1210_v17 = vadd.f32 %v1840_v52, %v1144_v24 }
 0x104   :  { %v1228_v9 = vmul.f32 %v2362_v42, %v1210_v17 }
 0x106   :  { %1928 = vmatmul.mubr.f32.gmra.mrb[6].mxu1 %v1228_v9 }
 0x126   :  { %v1908_v30 = vpop.f32.mrb[0].mxu0 }
 0x127   :  { %1391 = vst [vmem:[%s3407_s8 + $0x8] sm:$0xff] %v1908_v30  ;;  %v1531_v18 = vmul.f32 %v1908_v30, %v1908_v30  ;;  %v1311_v14 = vpop.f32.mrb[1].mxu0 }
 0x128   :  { %1390 = vst [vmem:[%s3407_s8] sm:$0xff] %v1311_v14  ;;  %v1506_v31 = vadd.f32 %v1908_v30, %v1311_v14  ;;  %v1530_v20 = vmul.f32 %v1311_v14, %v1311_v14 }
 0x12a   :  { %v1546_v56 = vadd.f32 %v1531_v18, %v1530_v20 }
 0x141   :  { %v1911_v5 = vpop.f32.mrb[2].mxu0 }
 0x142   :  { %1393 = vst [vmem:[%s3407_s8 + $0x18] sm:$0xff] %v1911_v5  ;;  %v1321_v42 = vpop.f32.mrb[3].mxu0  ;;  %v1533_v25 = vmul.f32 %v1911_v5, %v1911_v5 }
 0x143   :  { %1392 = vst [vmem:[%s3407_s8 + $0x10] sm:$0xff] %v1321_v42  ;;  %v1507_v3 = vadd.f32 %v1506_v31, %v1321_v42  ;;  %v1532_v22 = vmul.f32 %v1321_v42, %v1321_v42  ;;  %v1505_v42 = vld [vmem:[%s3408_s9] sm:$0x1] }
 0x145   :  { %v1547_v38 = vadd.f32 %v1546_v56, %v1532_v22  ;;  %v1508_v2 = vadd.f32 %v1911_v5, %v1507_v3 }
 0x147   :  { %v1548_v33 = vadd.f32 %v1547_v38, %v1533_v25  ;;  %v1529_v25 = vld [vmem:[%s3409_s10] sm:$0x1] }
 0x158   :  { %v1914_v16 = vpop.f32.mrb[4].mxu0 }
 0x159   :  { %1395 = vst [vmem:[%s3407_s8 + $0x28] sm:$0xff] %v1914_v16  ;;  %v1331_v36 = vpop.f32.mrb[5].mxu0  ;;  %v1535_v29 = vmul.f32 %v1914_v16, %v1914_v16 }
 0x15a   :  { %1394 = vst [vmem:[%s3407_s8 + $0x20] sm:$0xff] %v1331_v36  ;;  %v1509_v27 = vadd.f32 %v1508_v2, %v1331_v36  ;;  %v1534_v28 = vmul.f32 %v1331_v36, %v1331_v36 }
 0x15c   :  { %v1549_v50 = vadd.f32 %v1548_v33, %v1534_v28  ;;  %v1510_v55 = vadd.f32 %v1914_v16, %v1509_v27 }
 0x15e   :  { %v1550_v44 = vadd.f32 %v1549_v50, %v1535_v29 }
 0x173   :  { %v1917_v45 = vpop.f32.mrb[6].mxu0 }
 0x174   :  { %1397 = vst [vmem:[%s3407_s8 + $0x38] sm:$0xff] %v1917_v45  ;;  %v1341_v32 = vpop.f32.mrb[7].mxu0  ;;  %v1537_v35 = vmul.f32 %v1917_v45, %v1917_v45 }
 0x175   :  { %1396 = vst [vmem:[%s3407_s8 + $0x30] sm:$0xff] %v1341_v32  ;;  %v1511_v46 = vadd.f32 %v1510_v55, %v1341_v32  ;;  %v1536_v48 = vmul.f32 %v1341_v32, %v1341_v32 }
 0x177   :  { %v1512_v37 = vadd.f32 %v1917_v45, %v1511_v46  ;;  %v1551_v39 = vadd.f32 %v1550_v44, %v1536_v48 }
 0x179   :  { %v1552_v51 = vadd.f32 %v1551_v39, %v1537_v35 }
 0x18b   :  { %v1920_v15 = vpop.f32.mrb[0].mxu1 }
 0x18c   :  { %1399 = vst [vmem:[%s3407_s8 + $0x48] sm:$0xff] %v1920_v15  ;;  %v1351_v7 = vpop.f32.mrb[1].mxu1  ;;  %v1539_v54 = vmul.f32 %v1920_v15, %v1920_v15 }
 0x18d   :  { %1398 = vst [vmem:[%s3407_s8 + $0x40] sm:$0xff] %v1351_v7  ;;  %v1513_v41 = vadd.f32 %v1512_v37, %v1351_v7  ;;  %v1538_v60 = vmul.f32 %v1351_v7, %v1351_v7 }
 0x18f   :  { %v1553_v40 = vadd.f32 %v1552_v51, %v1538_v60  ;;  %v1514_v49 = vadd.f32 %v1920_v15, %v1513_v41 }
 0x191   :  { %v1554_v53 = vadd.f32 %v1553_v40, %v1539_v54 }
 0x1a6   :  { %v1923_v63 = vpop.f32.mrb[2].mxu1 }
 0x1a7   :  { %1401 = vst [vmem:[%s3407_s8 + $0x58] sm:$0xff] %v1923_v63  ;;  %v1361_v19 = vpop.f32.mrb[3].mxu1  ;;  %v1541_v21 = vmul.f32 %v1923_v63, %v1923_v63 }
 0x1a8   :  { %1400 = vst [vmem:[%s3407_s8 + $0x50] sm:$0xff] %v1361_v19  ;;  %v1515_v34 = vadd.f32 %v1514_v49, %v1361_v19  ;;  %v1540_v43 = vmul.f32 %v1361_v19, %v1361_v19 }
 0x1aa   :  { %v1555_v47 = vadd.f32 %v1554_v53, %v1540_v43  ;;  %v1516_v57 = vadd.f32 %v1923_v63, %v1515_v34 }
 0x1ac   :  { %v1556_v0 = vadd.f32 %v1555_v47, %v1541_v21 }
 0x1c3   :  { %v1926_v26 = vpop.f32.mrb[4].mxu1 }
 0x1c4   :  { %1403 = vst [vmem:[%s3407_s8 + $0x68] sm:$0xff] %v1926_v26  ;;  %v1371_v58 = vpop.f32.mrb[5].mxu1  ;;  %v1543_v1 = vmul.f32 %v1926_v26, %v1926_v26 }
 0x1c5   :  { %1402 = vst [vmem:[%s3407_s8 + $0x60] sm:$0xff] %v1371_v58  ;;  %v1517_v59 = vadd.f32 %v1516_v57, %v1371_v58  ;;  %v1542_v61 = vmul.f32 %v1371_v58, %v1371_v58 }
 0x1c7   :  { %v1557_v62 = vadd.f32 %v1556_v0, %v1542_v61  ;;  %v1518_v4 = vadd.f32 %v1926_v26, %v1517_v59 }
 0x1c9   :  { %v1558_v6 = vadd.f32 %v1557_v62, %v1543_v1 }
 0x1d9   :  { %v1929_v10 = vpop.f32.mrb[6].mxu1 }
 0x1da   :  { %1405 = vst [vmem:[%s3407_s8 + $0x78] sm:$0xff] %v1929_v10  ;;  %v1381_v13 = vpop.f32.mrb[7].mxu1  ;;  %v1545_v12 = vmul.f32 %v1929_v10, %v1929_v10 }
 0x1db   :  { %1404 = vst [vmem:[%s3407_s8 + $0x70] sm:$0xff] %v1381_v13  ;;  %v1519_v11 = vadd.f32 %v1518_v4, %v1381_v13  ;;  %v1544_v23 = vmul.f32 %v1381_v13, %v1381_v13 }
 0x1dd   :  { %v1520_v8 = vadd.f32 %v1929_v10, %v1519_v11  ;;  %v1559_v52 = vadd.f32 %v1558_v6, %v1544_v23 }
 0x1df   :  { %v1521_v24 = vrot.slane %v1520_v8, 4  ;;  %v1560_v17 = vadd.f32 %v1559_v52, %v1545_v12 }
 0x1e1   :  { %v1522_v9 = vadd.f32 %v1521_v24, %v1520_v8  ;;  %v1561_v30 = vrot.slane %v1560_v17, 4 }
 0x1e3   :  { %v1523_v18 = vrot.slane %v1522_v9, 2  ;;  %v1562_v14 = vadd.f32 %v1561_v30, %v1560_v17 }
 0x1e5   :  { %v1524_v31 = vadd.f32 %v1523_v18, %v1522_v9  ;;  %v1563_v20 = vrot.slane %v1562_v14, 2 }
 0x1e7   :  { %v1525_v56 = vrot.slane %v1524_v31, 1  ;;  %v1564_v5 = vadd.f32 %v1563_v20, %v1562_v14 }
 0x1e9   :  { %v1526_v3 = vadd.f32 %v1525_v56, %v1524_v31  ;;  %v1565_v22 = vrot.slane %v1564_v5, 1 }
 0x1eb   :  { %v1527_v38 = vadd.f32 %v1526_v3, %v1505_v42  ;;  %v1566_v2 = vadd.f32 %v1565_v22, %v1564_v5 }
 0x1ed   :  { %1528 = vst [vmem:[%s3408_s9] sm:$0x1] %v1527_v38  ;;  %v1567_v33 = vadd.f32 %v1566_v2, %v1529_v25 }
 0x1ef   :  { %1568 = vst [vmem:[%s3409_s10] sm:$0x1] %v1567_v33 }
 0x1f0   :  { %1581 = vsyncpa [#allocation3], 1 }
 0x1f1   :  { %1582 = vsyncpa [#allocation5], 1 }

</bundles_post_ra>
